<compile_context>
chip_gen: v6e
topology: v6e:2x2x1
jax: 0.10.0
libtpu: 0.0.40
codegen_flags: <defaults>
</compile_context>

<pallas_src>
import numpy as np
import jax
import jax.numpy as jnp
from jax import lax
from jax.experimental import pallas as pl
from jax.experimental.pallas import tpu as pltpu

BN_EPS = 1e-5
C1, C2, HID = 32, 64, 256      # channel / hidden sizes fixed by the module
NC_PAD = 128                   # lane-dense padded width of the fc2 output


def _round_up(x, m):
    return ((x + m - 1) // m) * m


def _geometry(image_size):
    """Static layout constants shared by the kernel and the wrapper."""
    H = W = image_size
    Ho1, Wo1 = H // 2, W // 2                       # spatial size after pool1
    Ho2, Wo2 = Ho1 // 2, Wo1 // 2                   # spatial size after pool2
    P2 = _round_up(Wo1 + 2, 8)                      # row pitch of padded layer-2 buffer
    BASE = _round_up(P2 + 1, 8)                     # leading zero margin (>= P2 + 1)
    L2 = Ho1 * P2                                   # conv2 output rows (incl. slack cols)
    PADLEN = _round_up(BASE + (Ho1 + 1) * P2 + 1, 8)
    return H, W, Ho1, Wo1, Ho2, Wo2, P2, BASE, L2, PADLEN


# ---------------------------------------------------------------------------
# Fused per-tile kernel (processes TB samples per grid step)
# ---------------------------------------------------------------------------
def make_fused_cnn_kernel(image_size, tb):
    H, W, Ho1, Wo1, Ho2, Wo2, P2, BASE, L2, PADLEN = _geometry(image_size)
    HW = H * W
    S2 = Ho2 * Wo2

    def kernel(x_ref, w1_ref, s1_ref, t1_ref, w2_ref, s2_ref, t2_ref,
               w3_ref, b1_ref, w4_ref, b2_ref, o_ref,
               y1_scr, pad_scr, col_scr, y2_scr, p2_scr):
        # x_ref:  (TB, H*W, 9*Cin) bf16   im2col'd layer-1 input (row r = i*W + j)
        # w1_ref: (9*Cin, C1)      bf16   layer-1 conv weights
        # w2_ref: (9*C1, C2)       bf16   layer-2 conv weights, K index = tap*C1 + ci
        # s*/t*:  (1, C)           f32    folded BN scale / shift (incl. conv bias)
        # w3_ref: (S2*C2, HID)     bf16   fc1 weights, K index = pooled_pixel*C2 + c
        # w4_ref: (HID, NC_PAD)    bf16   fc2 weights (output padded to 128 lanes)
        # b1/b2:  (1, HID)/(1, NC_PAD) f32
        # o_ref:  (1, TB, NC_PAD)  f32

        # ---- layer 1: conv3x3 as one K=9*Cin matmul per sample + folded BN + ReLU ----
        for t in range(tb):
            y1 = jnp.dot(x_ref[t], w1_ref[...], preferred_element_type=jnp.float32)
            y1_scr[pl.ds(t * HW, HW), :] = jnp.maximum(
                y1 * s1_ref[...] + t1_ref[...], 0.0)                     # (HW, C1) f32

        # Zero the padded layer-2 input each step: conv2 correctness relies on zero
        # margins/slack, and the scratch is per-core under "parallel" semantics.
        pad_scr[...] = jnp.zeros((tb * PADLEN, C1), jnp.float32)

        # ---- maxpool1 2x2/2: strided row reads + VPU max into the zero-padded buffer ----
        for t in range(tb):
            for oi in range(Ho1):
                r0 = t * HW + (2 * oi) * W
                r1 = t * HW + (2 * oi + 1) * W
                p = jnp.maximum(
                    jnp.maximum(y1_scr[pl.ds(r0, Wo1, stride=2), :],
                                y1_scr[pl.ds(r0 + 1, Wo1, stride=2), :]),
                    jnp.maximum(y1_scr[pl.ds(r1, Wo1, stride=2), :],
                                y1_scr[pl.ds(r1 + 1, Wo1, stride=2), :]))   # (Wo1, C1)
                pad_scr[pl.ds(t * PADLEN + BASE + oi * P2, Wo1), :] = p

        # ---- layer 2: in-VMEM im2col (9 shifted slabs -> lane-concatenated bf16 columns),
        #      then ONE K=9*C1=288 matmul over all TB samples, + folded BN + ReLU ----
        for t in range(tb):
            for kh in range(3):
                for kw in range(3):
                    j = kh * 3 + kw
                    off = t * PADLEN + BASE + (kh - 1) * P2 + (kw - 1)
                    col_scr[pl.ds(t * L2, L2), j * C1:(j + 1) * C1] = (
                        pad_scr[pl.ds(off, L2), :].astype(jnp.bfloat16))
        y2 = jnp.dot(col_scr[...], w2_ref[...], preferred_element_type=jnp.float32)
        y2_scr[...] = jnp.maximum(y2 * s2_ref[...] + t2_ref[...], 0.0)      # (TB*L2, C2)

        # ---- maxpool2: per pooled pixel, a cross-sample strided read (stride = L2) gives
        #      the (TB, C2) block for all samples; pack lane-wise into (TB, S2*C2) ----
        for ph in range(Ho2):
            for pw in range(Wo2):
                r = ph * Wo2 + pw
                i00 = (2 * ph) * P2 + 2 * pw
                i10 = (2 * ph + 1) * P2 + 2 * pw
                pooled = jnp.maximum(
                    jnp.maximum(y2_scr[pl.ds(i00, tb, stride=L2), :],
                                y2_scr[pl.ds(i00 + 1, tb, stride=L2), :]),
                    jnp.maximum(y2_scr[pl.ds(i10, tb, stride=L2), :],
                                y2_scr[pl.ds(i10 + 1, tb, stride=L2), :]))  # (TB, C2)
                p2_scr[:, r * C2:(r + 1) * C2] = pooled.astype(jnp.bfloat16)

        # ---- fc1 as one deep K = S2*C2 matmul, ReLU, (dropout = identity in eval), fc2 ----
        h = jnp.dot(p2_scr[...], w3_ref[...],
                    preferred_element_type=jnp.float32) + b1_ref[...]       # (TB, HID)
        h = jnp.maximum(h, 0.0)
        # TODO(synk): nn.Dropout(0.5) is the identity in eval(); training-mode mask not implemented.
        out = jnp.dot(h.astype(jnp.bfloat16), w4_ref[...],
                      preferred_element_type=jnp.float32) + b2_ref[...]     # (TB, NC_PAD)
        o_ref[0] = out

    return kernel


# ---------------------------------------------------------------------------
# Wrapper: im2col of the input once in XLA, then a single fused pallas_call
# ---------------------------------------------------------------------------
def simple_cnn_forward(x_nchw, p, num_classes, tile_b=2):
    N, Cin, H, W = x_nchw.shape
    assert H == W and H % 4 == 0, "image_size must be square and divisible by 4"
    assert N % tile_b == 0, "batch must be divisible by the batch tile"
    _, _, Ho1, Wo1, Ho2, Wo2, P2, BASE, L2, PADLEN = _geometry(H)
    S2 = Ho2 * Wo2
    NB = N // tile_b

    # NCHW -> NHWC, zero-pad, im2col: 9 shifted views concatenated on channels (bf16).
    x = jnp.transpose(x_nchw, (0, 2, 3, 1)).astype(jnp.float32)
    xp = jnp.pad(x, ((0, 0), (1, 1), (1, 1), (0, 0)))
    cols = [xp[:, kh:kh + H, kw:kw + W, :] for kh in range(3) for kw in range(3)]
    x1col = jnp.concatenate(cols, axis=-1).reshape(N, H * W, 9 * Cin).astype(jnp.bfloat16)

    kernel = make_fused_cnn_kernel(H, tile_b)
    out = pl.pallas_call(
        kernel,
        out_shape=jax.ShapeDtypeStruct((NB, tile_b, NC_PAD), jnp.float32),
        grid_spec=pltpu.PrefetchScalarGridSpec(
            num_scalar_prefetch=0,
            grid=(NB,),
            in_specs=[
                pl.BlockSpec((tile_b, H * W, 9 * Cin), lambda n: (n, 0, 0)),
                pl.BlockSpec((9 * Cin, C1), lambda n: (0, 0)),
                pl.BlockSpec((1, C1), lambda n: (0, 0)),
                pl.BlockSpec((1, C1), lambda n: (0, 0)),
                pl.BlockSpec((9 * C1, C2), lambda n: (0, 0)),
                pl.BlockSpec((1, C2), lambda n: (0, 0)),
                pl.BlockSpec((1, C2), lambda n: (0, 0)),
                pl.BlockSpec((S2 * C2, HID), lambda n: (0, 0)),
                pl.BlockSpec((1, HID), lambda n: (0, 0)),
                pl.BlockSpec((HID, NC_PAD), lambda n: (0, 0)),
                pl.BlockSpec((1, NC_PAD), lambda n: (0, 0)),
            ],
            out_specs=pl.BlockSpec((1, tile_b, NC_PAD), lambda n: (n, 0, 0)),
            scratch_shapes=[
                pltpu.VMEM((tile_b * H * W, C1), jnp.float32),      # layer-1 conv output
                pltpu.VMEM((tile_b * PADLEN, C1), jnp.float32),     # zero-padded pool1 output
                pltpu.VMEM((tile_b * L2, 9 * C1), jnp.bfloat16),    # conv2 im2col columns
                pltpu.VMEM((tile_b * L2, C2), jnp.float32),         # layer-2 conv output
                pltpu.VMEM((tile_b, S2 * C2), jnp.bfloat16),        # lane-packed pool2 output
            ]),
        compiler_params=pltpu.CompilerParams(
            dimension_semantics=("parallel",),                      # 2 TCs on v7x
            vmem_limit_bytes=32 * 1024 * 1024),
    )(x1col, p["w1col"], p["scale1"], p["shift1"], p["w2col"], p["scale2"],
      p["shift2"], p["w3"], p["fc1_b2d"], p["fc2_wT_pad"], p["fc2_b_pad"])
    return out.reshape(N, NC_PAD)[:, :num_classes]


# ---------------------------------------------------------------------------
# Deterministic parameter init (PyTorch layouts) + folding / bf16 casts for the kernel
# ---------------------------------------------------------------------------
def init_params(key, num_channels, image_size, num_classes):
    ks = jax.random.split(key, 16)
    S2 = (image_size // 4) * (image_size // 4)
    F = C2 * S2
    p = {}
    # conv1 / bn1
    p["conv1_w"] = 0.10 * jax.random.normal(ks[0], (C1, num_channels, 3, 3), jnp.float32)
    p["conv1_b"] = 0.10 * jax.random.normal(ks[1], (C1,), jnp.float32)
    p["bn1_g"] = 1.0 + 0.1 * jax.random.normal(ks[2], (C1,), jnp.float32)
    p["bn1_b"] = 0.1 * jax.random.normal(ks[3], (C1,), jnp.float32)
    p["bn1_m"] = 0.1 * jax.random.normal(ks[4], (C1,), jnp.float32)
    p["bn1_v"] = 1.0 + 0.1 * jnp.abs(jax.random.normal(ks[5], (C1,), jnp.float32))
    # conv2 / bn2
    p["conv2_w"] = 0.05 * jax.random.normal(ks[6], (C2, C1, 3, 3), jnp.float32)
    p["conv2_b"] = 0.10 * jax.random.normal(ks[7], (C2,), jnp.float32)
    p["bn2_g"] = 1.0 + 0.1 * jax.random.normal(ks[8], (C2,), jnp.float32)
    p["bn2_b"] = 0.1 * jax.random.normal(ks[9], (C2,), jnp.float32)
    p["bn2_m"] = 0.1 * jax.random.normal(ks[10], (C2,), jnp.float32)
    p["bn2_v"] = 1.0 + 0.1 * jnp.abs(jax.random.normal(ks[11], (C2,), jnp.float32))
    # fc1 / fc2 (PyTorch: y = x @ W.T + b, W: (out, in))
    p["fc1_w"] = 0.03 * jax.random.normal(ks[12], (HID, F), jnp.float32)
    p["fc1_b"] = 0.10 * jax.random.normal(ks[13], (HID,), jnp.float32)
    p["fc2_w"] = 0.06 * jax.random.normal(ks[14], (num_classes, HID), jnp.float32)
    p["fc2_b"] = 0.10 * jax.random.normal(ks[15], (num_classes,), jnp.float32)

    def fold(conv_b, g, beta, m, v):
        # fold eval-mode BN (+ conv bias) into per-channel scale / shift (kept f32)
        scale = g / jnp.sqrt(v + BN_EPS)
        shift = beta + (conv_b - m) * scale
        return scale.reshape(1, -1), shift.reshape(1, -1)

    # layer 1: OIHW -> rows (kh*3+kw)*Cin + ci, cols Cout (matches wrapper im2col order)
    p["w1col"] = jnp.transpose(p["conv1_w"], (2, 3, 1, 0)).reshape(
        9 * num_channels, C1).astype(jnp.bfloat16)
    p["scale1"], p["shift1"] = fold(p["conv1_b"], p["bn1_g"], p["bn1_b"], p["bn1_m"], p["bn1_v"])
    # layer 2: K index = (kh*3+kw)*C1 + ci (matches the in-kernel im2col lane order)
    p["w2col"] = jnp.transpose(p["conv2_w"], (2, 3, 1, 0)).reshape(
        9 * C1, C2).astype(jnp.bfloat16)
    p["scale2"], p["shift2"] = fold(p["conv2_b"], p["bn2_g"], p["bn2_b"], p["bn2_m"], p["bn2_v"])
    # fc1: fold PyTorch's NCHW flatten (c*S2 + r) into the weights so that the kernel's
    # K index r*C2 + c (pooled pixel major, channel minor) is correct.
    p["w3"] = jnp.transpose(p["fc1_w"].reshape(HID, C2, S2), (2, 1, 0)).reshape(
        S2 * C2, HID).astype(jnp.bfloat16)
    p["fc1_b2d"] = p["fc1_b"].reshape(1, HID)
    # fc2: transpose and pad the output dim to 128 lanes (lane-dense store; sliced later)
    p["fc2_wT_pad"] = jnp.pad(p["fc2_w"].T,
                              ((0, 0), (0, NC_PAD - num_classes))).astype(jnp.bfloat16)
    p["fc2_b_pad"] = jnp.pad(p["fc2_b"].reshape(1, -1), ((0, 0), (0, NC_PAD - num_classes)))
    return p


# ---------------------------------------------------------------------------
# Pure-JAX reference (mirrors PyTorch eval-mode forward) for validation
# ---------------------------------------------------------------------------
def reference_forward(x_nchw, p):
    def block(x, w, b, g, beta, m, v):
        y = lax.conv_general_dilated(x, w, (1, 1), ((1, 1), (1, 1)),
                                     dimension_numbers=("NCHW", "OIHW", "NCHW"),
                                     precision=lax.Precision.HIGHEST)
        y = y + b[None, :, None, None]
        y = (y - m[None, :, None, None]) / jnp.sqrt(v[None, :, None, None] + BN_EPS) \
            * g[None, :, None, None] + beta[None, :, None, None]
        y = jnp.maximum(y, 0.0)
        return lax.reduce_window(y, -jnp.inf, lax.max, (1, 1, 2, 2), (1, 1, 2, 2), "VALID")

    y = block(x_nchw, p["conv1_w"], p["conv1_b"], p["bn1_g"], p["bn1_b"], p["bn1_m"], p["bn1_v"])
    y = block(y, p["conv2_w"], p["conv2_b"], p["bn2_g"], p["bn2_b"], p["bn2_m"], p["bn2_v"])
    y = y.reshape(y.shape[0], -1)
    y = jnp.maximum(jnp.matmul(y, p["fc1_w"].T, precision=lax.Precision.HIGHEST) + p["fc1_b"], 0.0)
    y = jnp.matmul(y, p["fc2_w"].T, precision=lax.Precision.HIGHEST) + p["fc2_b"]
    return y


if __name__ == "__main__":
    batch, num_channels, image_size, num_classes = 4, 4, 16, 10
    tile_b = 2                                   # 2 samples per grid step -> grid length 2
    key = jax.random.PRNGKey(0)
    kx, kp = jax.random.split(key)
    x = jax.random.normal(kx, (batch, num_channels, image_size, image_size), jnp.float32)
    params = init_params(kp, num_channels, image_size, num_classes)

    out = jax.block_until_ready(simple_cnn_forward(x, params, num_classes, tile_b=tile_b))
    ref = jax.block_until_ready(reference_forward(x, params))

    assert out.shape == (batch, num_classes), out.shape
    if not np.allclose(np.asarray(out), np.asarray(ref), rtol=5e-2, atol=5e-2):
        raise AssertionError(
            f"Pallas output mismatch vs reference: max abs diff = "
            f"{float(np.max(np.abs(np.asarray(out) - np.asarray(ref))))}")
    print("KERNEL_OK")
</pallas_src>

<mosaic_0001>
module attributes {stable_mosaic.version = 11 : i64} {
  func.func @kernel(%arg0: i32, %arg1: memref<2x256x36xbf16, #tpu.memory_space<vmem>>, %arg2: memref<36x32xbf16, #tpu.memory_space<vmem>>, %arg3: memref<1x32xf32, #tpu.memory_space<vmem>>, %arg4: memref<1x32xf32, #tpu.memory_space<vmem>>, %arg5: memref<288x64xbf16, #tpu.memory_space<vmem>>, %arg6: memref<1x64xf32, #tpu.memory_space<vmem>>, %arg7: memref<1x64xf32, #tpu.memory_space<vmem>>, %arg8: memref<1024x256xbf16, #tpu.memory_space<vmem>>, %arg9: memref<1x256xf32, #tpu.memory_space<vmem>>, %arg10: memref<256x128xbf16, #tpu.memory_space<vmem>>, %arg11: memref<1x128xf32, #tpu.memory_space<vmem>>, %arg12: memref<1x2x128xf32, #tpu.memory_space<vmem>>, %arg13: memref<512x32xf32, #tpu.memory_space<vmem>>, %arg14: memref<352x32xf32, #tpu.memory_space<vmem>>, %arg15: memref<256x288xbf16, #tpu.memory_space<vmem>>, %arg16: memref<256x64xf32, #tpu.memory_space<vmem>>, %arg17: memref<2x1024xbf16, #tpu.memory_space<vmem>>) attributes {dimension_semantics = [#tpu.dimension_semantics<parallel>], iteration_bounds = array<i64: 2>, scalar_prefetch = 0 : i64, scratch_operands = 5 : i64, tpu.core_type = #tpu.core_type<tc>, window_params = [{transform_indices = @transform_0, window_bounds = array<i64: 2, 256, 36>}, {pipeline_mode = #tpu.pipeline_mode<synchronous>, transform_indices = @transform_1, window_bounds = array<i64: 36, 32>}, {pipeline_mode = #tpu.pipeline_mode<synchronous>, transform_indices = @transform_2, window_bounds = array<i64: 1, 32>}, {pipeline_mode = #tpu.pipeline_mode<synchronous>, transform_indices = @transform_3, window_bounds = array<i64: 1, 32>}, {pipeline_mode = #tpu.pipeline_mode<synchronous>, transform_indices = @transform_4, window_bounds = array<i64: 288, 64>}, {pipeline_mode = #tpu.pipeline_mode<synchronous>, transform_indices = @transform_5, window_bounds = array<i64: 1, 64>}, {pipeline_mode = #tpu.pipeline_mode<synchronous>, transform_indices = @transform_6, window_bounds = array<i64: 1, 64>}, {pipeline_mode = #tpu.pipeline_mode<synchronous>, transform_indices = @transform_7, window_bounds = array<i64: 1024, 256>}, {pipeline_mode = #tpu.pipeline_mode<synchronous>, transform_indices = @transform_8, window_bounds = array<i64: 1, 256>}, {pipeline_mode = #tpu.pipeline_mode<synchronous>, transform_indices = @transform_9, window_bounds = array<i64: 256, 128>}, {pipeline_mode = #tpu.pipeline_mode<synchronous>, transform_indices = @transform_10, window_bounds = array<i64: 1, 128>}, {transform_indices = @transform_11, window_bounds = array<i64: 1, 2, 128>}]} {
    %c0 = arith.constant 0 : index
    %c0_0 = arith.constant 0 : index
    %c0_1 = arith.constant 0 : index
    %0 = vector.load %arg1[%c0, %c0_0, %c0_1] : memref<2x256x36xbf16, #tpu.memory_space<vmem>>, vector<1x256x36xbf16>
    %1 = vector.shape_cast %0 : vector<1x256x36xbf16> to vector<256x36xbf16>
    %c0_2 = arith.constant 0 : index
    %c0_3 = arith.constant 0 : index
    %2 = vector.load %arg2[%c0_2, %c0_3] : memref<36x32xbf16, #tpu.memory_space<vmem>>, vector<36x32xbf16>
    %cst = arith.constant dense<0.000000e+00> : vector<256x32xf32>
    %3 = tpu.matmul %1, %2, %cst {dimension_numbers = #tpu.dot_dimension_numbers<[1], [0], [0], [1], [0, 0, 1, 1], [], []>} : vector<256x36xbf16>, vector<36x32xbf16>, vector<256x32xf32> -> vector<256x32xf32>
    %c0_4 = arith.constant 0 : index
    %c0_5 = arith.constant 0 : index
    %4 = vector.load %arg3[%c0_4, %c0_5] : memref<1x32xf32, #tpu.memory_space<vmem>>, vector<1x32xf32>
    %5 = vector.broadcast %4 : vector<1x32xf32> to vector<256x32xf32>
    %6 = arith.mulf %3, %5 : vector<256x32xf32>
    %c0_6 = arith.constant 0 : index
    %c0_7 = arith.constant 0 : index
    %7 = vector.load %arg4[%c0_6, %c0_7] : memref<1x32xf32, #tpu.memory_space<vmem>>, vector<1x32xf32>
    %8 = vector.broadcast %7 : vector<1x32xf32> to vector<256x32xf32>
    %9 = arith.addf %6, %8 : vector<256x32xf32>
    %cst_8 = arith.constant 0.000000e+00 : f32
    %10 = vector.broadcast %cst_8 : f32 to vector<256x32xf32>
    %11 = arith.maximumf %9, %10 : vector<256x32xf32>
    %c0_9 = arith.constant 0 : index
    %c0_10 = arith.constant 0 : index
    %12 = vector.load %arg13[%c0_9, %c0_10] : memref<512x32xf32, #tpu.memory_space<vmem>>, vector<256x32xf32>
    tpu.vector_store %arg13[%c0_9, %c0_10], %11 {strides = array<i32>} : memref<512x32xf32, #tpu.memory_space<vmem>>, vector<256x32xf32>,
    %c1 = arith.constant 1 : index
    %c0_11 = arith.constant 0 : index
    %c0_12 = arith.constant 0 : index
    %13 = vector.load %arg1[%c1, %c0_11, %c0_12] : memref<2x256x36xbf16, #tpu.memory_space<vmem>>, vector<1x256x36xbf16>
    %14 = vector.shape_cast %13 : vector<1x256x36xbf16> to vector<256x36xbf16>
    %c0_13 = arith.constant 0 : index
    %c0_14 = arith.constant 0 : index
    %15 = vector.load %arg2[%c0_13, %c0_14] : memref<36x32xbf16, #tpu.memory_space<vmem>>, vector<36x32xbf16>
    %cst_15 = arith.constant dense<0.000000e+00> : vector<256x32xf32>
    %16 = tpu.matmul %14, %15, %cst_15 {dimension_numbers = #tpu.dot_dimension_numbers<[1], [0], [0], [1], [0, 0, 1, 1], [], []>} : vector<256x36xbf16>, vector<36x32xbf16>, vector<256x32xf32> -> vector<256x32xf32>
    %c0_16 = arith.constant 0 : index
    %c0_17 = arith.constant 0 : index
    %17 = vector.load %arg3[%c0_16, %c0_17] : memref<1x32xf32, #tpu.memory_space<vmem>>, vector<1x32xf32>
    %18 = vector.broadcast %17 : vector<1x32xf32> to vector<256x32xf32>
    %19 = arith.mulf %16, %18 : vector<256x32xf32>
    %c0_18 = arith.constant 0 : index
    %c0_19 = arith.constant 0 : index
    %20 = vector.load %arg4[%c0_18, %c0_19] : memref<1x32xf32, #tpu.memory_space<vmem>>, vector<1x32xf32>
    %21 = vector.broadcast %20 : vector<1x32xf32> to vector<256x32xf32>
    %22 = arith.addf %19, %21 : vector<256x32xf32>
    %cst_20 = arith.constant 0.000000e+00 : f32
    %23 = vector.broadcast %cst_20 : f32 to vector<256x32xf32>
    %24 = arith.maximumf %22, %23 : vector<256x32xf32>
    %c256 = arith.constant 256 : index
    %c0_21 = arith.constant 0 : index
    %25 = vector.load %arg13[%c256, %c0_21] : memref<512x32xf32, #tpu.memory_space<vmem>>, vector<256x32xf32>
    tpu.vector_store %arg13[%c256, %c0_21], %24 {strides = array<i32>} : memref<512x32xf32, #tpu.memory_space<vmem>>, vector<256x32xf32>,
    %cst_22 = arith.constant 0.000000e+00 : f32
    %26 = vector.broadcast %cst_22 : f32 to vector<352x32xf32>
    %c0_23 = arith.constant 0 : index
    %c0_24 = arith.constant 0 : index
    %27 = vector.load %arg14[%c0_23, %c0_24] : memref<352x32xf32, #tpu.memory_space<vmem>>, vector<352x32xf32>
    tpu.vector_store %arg14[%c0_23, %c0_24], %26 {strides = array<i32>} : memref<352x32xf32, #tpu.memory_space<vmem>>, vector<352x32xf32>,
    %c0_25 = arith.constant 0 : index
    %c0_26 = arith.constant 0 : index
    %28 = tpu.strided_load %arg13[%c0_25, %c0_26] {strides = array<i32: 2, 1>} : memref<512x32xf32, #tpu.memory_space<vmem>>, vector<8x32xf32>
    %c1_27 = arith.constant 1 : index
    %c0_28 = arith.constant 0 : index
    %29 = tpu.strided_load %arg13[%c1_27, %c0_28] {strides = array<i32: 2, 1>} : memref<512x32xf32, #tpu.memory_space<vmem>>, vector<8x32xf32>
    %30 = arith.maximumf %28, %29 : vector<8x32xf32>
    %c16 = arith.constant 16 : index
    %c0_29 = arith.constant 0 : index
    %31 = tpu.strided_load %arg13[%c16, %c0_29] {strides = array<i32: 2, 1>} : memref<512x32xf32, #tpu.memory_space<vmem>>, vector<8x32xf32>
    %c17 = arith.constant 17 : index
    %c0_30 = arith.constant 0 : index
    %32 = tpu.strided_load %arg13[%c17, %c0_30] {strides = array<i32: 2, 1>} : memref<512x32xf32, #tpu.memory_space<vmem>>, vector<8x32xf32>
    %33 = arith.maximumf %31, %32 : vector<8x32xf32>
    %34 = arith.maximumf %30, %33 : vector<8x32xf32>
    %c24 = arith.constant 24 : index
    %c0_31 = arith.constant 0 : index
    %35 = vector.load %arg14[%c24, %c0_31] : memref<352x32xf32, #tpu.memory_space<vmem>>, vector<8x32xf32>
    tpu.vector_store %arg14[%c24, %c0_31], %34 {strides = array<i32>} : memref<352x32xf32, #tpu.memory_space<vmem>>, vector<8x32xf32>,
    %c32 = arith.constant 32 : index
    %c0_32 = arith.constant 0 : index
    %36 = tpu.strided_load %arg13[%c32, %c0_32] {strides = array<i32: 2, 1>} : memref<512x32xf32, #tpu.memory_space<vmem>>, vector<8x32xf32>
    %c33 = arith.constant 33 : index
    %c0_33 = arith.constant 0 : index
    %37 = tpu.strided_load %arg13[%c33, %c0_33] {strides = array<i32: 2, 1>} : memref<512x32xf32, #tpu.memory_space<vmem>>, vector<8x32xf32>
    %38 = arith.maximumf %36, %37 : vector<8x32xf32>
    %c48 = arith.constant 48 : index
    %c0_34 = arith.constant 0 : index
    %39 = tpu.strided_load %arg13[%c48, %c0_34] {strides = array<i32: 2, 1>} : memref<512x32xf32, #tpu.memory_space<vmem>>, vector<8x32xf32>
    %c49 = arith.constant 49 : index
    %c0_35 = arith.constant 0 : index
    %40 = tpu.strided_load %arg13[%c49, %c0_35] {strides = array<i32: 2, 1>} : memref<512x32xf32, #tpu.memory_space<vmem>>, vector<8x32xf32>
    %41 = arith.maximumf %39, %40 : vector<8x32xf32>
    %42 = arith.maximumf %38, %41 : vector<8x32xf32>
    %c40 = arith.constant 40 : index
    %c0_36 = arith.constant 0 : index
    %43 = vector.load %arg14[%c40, %c0_36] : memref<352x32xf32, #tpu.memory_space<vmem>>, vector<8x32xf32>
    tpu.vector_store %arg14[%c40, %c0_36], %42 {strides = array<i32>} : memref<352x32xf32, #tpu.memory_space<vmem>>, vector<8x32xf32>,
    %c64 = arith.constant 64 : index
    %c0_37 = arith.constant 0 : index
    %44 = tpu.strided_load %arg13[%c64, %c0_37] {strides = array<i32: 2, 1>} : memref<512x32xf32, #tpu.memory_space<vmem>>, vector<8x32xf32>
    %c65 = arith.constant 65 : index
    %c0_38 = arith.constant 0 : index
    %45 = tpu.strided_load %arg13[%c65, %c0_38] {strides = array<i32: 2, 1>} : memref<512x32xf32, #tpu.memory_space<vmem>>, vector<8x32xf32>
    %46 = arith.maximumf %44, %45 : vector<8x32xf32>
    %c80 = arith.constant 80 : index
    %c0_39 = arith.constant 0 : index
    %47 = tpu.strided_load %arg13[%c80, %c0_39] {strides = array<i32: 2, 1>} : memref<512x32xf32, #tpu.memory_space<vmem>>, vector<8x32xf32>
    %c81 = arith.constant 81 : index
    %c0_40 = arith.constant 0 : index
    %48 = tpu.strided_load %arg13[%c81, %c0_40] {strides = array<i32: 2, 1>} : memref<512x32xf32, #tpu.memory_space<vmem>>, vector<8x32xf32>
    %49 = arith.maximumf %47, %48 : vector<8x32xf32>
    %50 = arith.maximumf %46, %49 : vector<8x32xf32>
    %c56 = arith.constant 56 : index
    %c0_41 = arith.constant 0 : index
    %51 = vector.load %arg14[%c56, %c0_41] : memref<352x32xf32, #tpu.memory_space<vmem>>, vector<8x32xf32>
    tpu.vector_store %arg14[%c56, %c0_41], %50 {strides = array<i32>} : memref<352x32xf32, #tpu.memory_space<vmem>>, vector<8x32xf32>,
    %c96 = arith.constant 96 : index
    %c0_42 = arith.constant 0 : index
    %52 = tpu.strided_load %arg13[%c96, %c0_42] {strides = array<i32: 2, 1>} : memref<512x32xf32, #tpu.memory_space<vmem>>, vector<8x32xf32>
    %c97 = arith.constant 97 : index
    %c0_43 = arith.constant 0 : index
    %53 = tpu.strided_load %arg13[%c97, %c0_43] {strides = array<i32: 2, 1>} : memref<512x32xf32, #tpu.memory_space<vmem>>, vector<8x32xf32>
    %54 = arith.maximumf %52, %53 : vector<8x32xf32>
    %c112 = arith.constant 112 : index
    %c0_44 = arith.constant 0 : index
    %55 = tpu.strided_load %arg13[%c112, %c0_44] {strides = array<i32: 2, 1>} : memref<512x32xf32, #tpu.memory_space<vmem>>, vector<8x32xf32>
    %c113 = arith.constant 113 : index
    %c0_45 = arith.constant 0 : index
    %56 = tpu.strided_load %arg13[%c113, %c0_45] {strides = array<i32: 2, 1>} : memref<512x32xf32, #tpu.memory_space<vmem>>, vector<8x32xf32>
    %57 = arith.maximumf %55, %56 : vector<8x32xf32>
    %58 = arith.maximumf %54, %57 : vector<8x32xf32>
    %c72 = arith.constant 72 : index
    %c0_46 = arith.constant 0 : index
    %59 = vector.load %arg14[%c72, %c0_46] : memref<352x32xf32, #tpu.memory_space<vmem>>, vector<8x32xf32>
    tpu.vector_store %arg14[%c72, %c0_46], %58 {strides = array<i32>} : memref<352x32xf32, #tpu.memory_space<vmem>>, vector<8x32xf32>,
    %c128 = arith.constant 128 : index
    %c0_47 = arith.constant 0 : index
    %60 = tpu.strided_load %arg13[%c128, %c0_47] {strides = array<i32: 2, 1>} : memref<512x32xf32, #tpu.memory_space<vmem>>, vector<8x32xf32>
    %c129 = arith.constant 129 : index
    %c0_48 = arith.constant 0 : index
    %61 = tpu.strided_load %arg13[%c129, %c0_48] {strides = array<i32: 2, 1>} : memref<512x32xf32, #tpu.memory_space<vmem>>, vector<8x32xf32>
    %62 = arith.maximumf %60, %61 : vector<8x32xf32>
    %c144 = arith.constant 144 : index
    %c0_49 = arith.constant 0 : index
    %63 = tpu.strided_load %arg13[%c144, %c0_49] {strides = array<i32: 2, 1>} : memref<512x32xf32, #tpu.memory_space<vmem>>, vector<8x32xf32>
    %c145 = arith.constant 145 : index
    %c0_50 = arith.constant 0 : index
    %64 = tpu.strided_load %arg13[%c145, %c0_50] {strides = array<i32: 2, 1>} : memref<512x32xf32, #tpu.memory_space<vmem>>, vector<8x32xf32>
    %65 = arith.maximumf %63, %64 : vector<8x32xf32>
    %66 = arith.maximumf %62, %65 : vector<8x32xf32>
    %c88 = arith.constant 88 : index
    %c0_51 = arith.constant 0 : index
    %67 = vector.load %arg14[%c88, %c0_51] : memref<352x32xf32, #tpu.memory_space<vmem>>, vector<8x32xf32>
    tpu.vector_store %arg14[%c88, %c0_51], %66 {strides = array<i32>} : memref<352x32xf32, #tpu.memory_space<vmem>>, vector<8x32xf32>,
    %c160 = arith.constant 160 : index
    %c0_52 = arith.constant 0 : index
    %68 = tpu.strided_load %arg13[%c160, %c0_52] {strides = array<i32: 2, 1>} : memref<512x32xf32, #tpu.memory_space<vmem>>, vector<8x32xf32>
    %c161 = arith.constant 161 : index
    %c0_53 = arith.constant 0 : index
    %69 = tpu.strided_load %arg13[%c161, %c0_53] {strides = array<i32: 2, 1>} : memref<512x32xf32, #tpu.memory_space<vmem>>, vector<8x32xf32>
    %70 = arith.maximumf %68, %69 : vector<8x32xf32>
    %c176 = arith.constant 176 : index
    %c0_54 = arith.constant 0 : index
    %71 = tpu.strided_load %arg13[%c176, %c0_54] {strides = array<i32: 2, 1>} : memref<512x32xf32, #tpu.memory_space<vmem>>, vector<8x32xf32>
    %c177 = arith.constant 177 : index
    %c0_55 = arith.constant 0 : index
    %72 = tpu.strided_load %arg13[%c177, %c0_55] {strides = array<i32: 2, 1>} : memref<512x32xf32, #tpu.memory_space<vmem>>, vector<8x32xf32>
    %73 = arith.maximumf %71, %72 : vector<8x32xf32>
    %74 = arith.maximumf %70, %73 : vector<8x32xf32>
    %c104 = arith.constant 104 : index
    %c0_56 = arith.constant 0 : index
    %75 = vector.load %arg14[%c104, %c0_56] : memref<352x32xf32, #tpu.memory_space<vmem>>, vector<8x32xf32>
    tpu.vector_store %arg14[%c104, %c0_56], %74 {strides = array<i32>} : memref<352x32xf32, #tpu.memory_space<vmem>>, vector<8x32xf32>,
    %c192 = arith.constant 192 : index
    %c0_57 = arith.constant 0 : index
    %76 = tpu.strided_load %arg13[%c192, %c0_57] {strides = array<i32: 2, 1>} : memref<512x32xf32, #tpu.memory_space<vmem>>, vector<8x32xf32>
    %c193 = arith.constant 193 : index
    %c0_58 = arith.constant 0 : index
    %77 = tpu.strided_load %arg13[%c193, %c0_58] {strides = array<i32: 2, 1>} : memref<512x32xf32, #tpu.memory_space<vmem>>, vector<8x32xf32>
    %78 = arith.maximumf %76, %77 : vector<8x32xf32>
    %c208 = arith.constant 208 : index
    %c0_59 = arith.constant 0 : index
    %79 = tpu.strided_load %arg13[%c208, %c0_59] {strides = array<i32: 2, 1>} : memref<512x32xf32, #tpu.memory_space<vmem>>, vector<8x32xf32>
    %c209 = arith.constant 209 : index
    %c0_60 = arith.constant 0 : index
    %80 = tpu.strided_load %arg13[%c209, %c0_60] {strides = array<i32: 2, 1>} : memref<512x32xf32, #tpu.memory_space<vmem>>, vector<8x32xf32>
    %81 = arith.maximumf %79, %80 : vector<8x32xf32>
    %82 = arith.maximumf %78, %81 : vector<8x32xf32>
    %c120 = arith.constant 120 : index
    %c0_61 = arith.constant 0 : index
    %83 = vector.load %arg14[%c120, %c0_61] : memref<352x32xf32, #tpu.memory_space<vmem>>, vector<8x32xf32>
    tpu.vector_store %arg14[%c120, %c0_61], %82 {strides = array<i32>} : memref<352x32xf32, #tpu.memory_space<vmem>>, vector<8x32xf32>,
    %c224 = arith.constant 224 : index
    %c0_62 = arith.constant 0 : index
    %84 = tpu.strided_load %arg13[%c224, %c0_62] {strides = array<i32: 2, 1>} : memref<512x32xf32, #tpu.memory_space<vmem>>, vector<8x32xf32>
    %c225 = arith.constant 225 : index
    %c0_63 = arith.constant 0 : index
    %85 = tpu.strided_load %arg13[%c225, %c0_63] {strides = array<i32: 2, 1>} : memref<512x32xf32, #tpu.memory_space<vmem>>, vector<8x32xf32>
    %86 = arith.maximumf %84, %85 : vector<8x32xf32>
    %c240 = arith.constant 240 : index
    %c0_64 = arith.constant 0 : index
    %87 = tpu.strided_load %arg13[%c240, %c0_64] {strides = array<i32: 2, 1>} : memref<512x32xf32, #tpu.memory_space<vmem>>, vector<8x32xf32>
    %c241 = arith.constant 241 : index
    %c0_65 = arith.constant 0 : index
    %88 = tpu.strided_load %arg13[%c241, %c0_65] {strides = array<i32: 2, 1>} : memref<512x32xf32, #tpu.memory_space<vmem>>, vector<8x32xf32>
    %89 = arith.maximumf %87, %88 : vector<8x32xf32>
    %90 = arith.maximumf %86, %89 : vector<8x32xf32>
    %c136 = arith.constant 136 : index
    %c0_66 = arith.constant 0 : index
    %91 = vector.load %arg14[%c136, %c0_66] : memref<352x32xf32, #tpu.memory_space<vmem>>, vector<8x32xf32>
    tpu.vector_store %arg14[%c136, %c0_66], %90 {strides = array<i32>} : memref<352x32xf32, #tpu.memory_space<vmem>>, vector<8x32xf32>,
    %c256_67 = arith.constant 256 : index
    %c0_68 = arith.constant 0 : index
    %92 = tpu.strided_load %arg13[%c256_67, %c0_68] {strides = array<i32: 2, 1>} : memref<512x32xf32, #tpu.memory_space<vmem>>, vector<8x32xf32>
    %c257 = arith.constant 257 : index
    %c0_69 = arith.constant 0 : index
    %93 = tpu.strided_load %arg13[%c257, %c0_69] {strides = array<i32: 2, 1>} : memref<512x32xf32, #tpu.memory_space<vmem>>, vector<8x32xf32>
    %94 = arith.maximumf %92, %93 : vector<8x32xf32>
    %c272 = arith.constant 272 : index
    %c0_70 = arith.constant 0 : index
    %95 = tpu.strided_load %arg13[%c272, %c0_70] {strides = array<i32: 2, 1>} : memref<512x32xf32, #tpu.memory_space<vmem>>, vector<8x32xf32>
    %c273 = arith.constant 273 : index
    %c0_71 = arith.constant 0 : index
    %96 = tpu.strided_load %arg13[%c273, %c0_71] {strides = array<i32: 2, 1>} : memref<512x32xf32, #tpu.memory_space<vmem>>, vector<8x32xf32>
    %97 = arith.maximumf %95, %96 : vector<8x32xf32>
    %98 = arith.maximumf %94, %97 : vector<8x32xf32>
    %c200 = arith.constant 200 : index
    %c0_72 = arith.constant 0 : index
    %99 = vector.load %arg14[%c200, %c0_72] : memref<352x32xf32, #tpu.memory_space<vmem>>, vector<8x32xf32>
    tpu.vector_store %arg14[%c200, %c0_72], %98 {strides = array<i32>} : memref<352x32xf32, #tpu.memory_space<vmem>>, vector<8x32xf32>,
    %c288 = arith.constant 288 : index
    %c0_73 = arith.constant 0 : index
    %100 = tpu.strided_load %arg13[%c288, %c0_73] {strides = array<i32: 2, 1>} : memref<512x32xf32, #tpu.memory_space<vmem>>, vector<8x32xf32>
    %c289 = arith.constant 289 : index
    %c0_74 = arith.constant 0 : index
    %101 = tpu.strided_load %arg13[%c289, %c0_74] {strides = array<i32: 2, 1>} : memref<512x32xf32, #tpu.memory_space<vmem>>, vector<8x32xf32>
    %102 = arith.maximumf %100, %101 : vector<8x32xf32>
    %c304 = arith.constant 304 : index
    %c0_75 = arith.constant 0 : index
    %103 = tpu.strided_load %arg13[%c304, %c0_75] {strides = array<i32: 2, 1>} : memref<512x32xf32, #tpu.memory_space<vmem>>, vector<8x32xf32>
    %c305 = arith.constant 305 : index
    %c0_76 = arith.constant 0 : index
    %104 = tpu.strided_load %arg13[%c305, %c0_76] {strides = array<i32: 2, 1>} : memref<512x32xf32, #tpu.memory_space<vmem>>, vector<8x32xf32>
    %105 = arith.maximumf %103, %104 : vector<8x32xf32>
    %106 = arith.maximumf %102, %105 : vector<8x32xf32>
    %c216 = arith.constant 216 : index
    %c0_77 = arith.constant 0 : index
    %107 = vector.load %arg14[%c216, %c0_77] : memref<352x32xf32, #tpu.memory_space<vmem>>, vector<8x32xf32>
    tpu.vector_store %arg14[%c216, %c0_77], %106 {strides = array<i32>} : memref<352x32xf32, #tpu.memory_space<vmem>>, vector<8x32xf32>,
    %c320 = arith.constant 320 : index
    %c0_78 = arith.constant 0 : index
    %108 = tpu.strided_load %arg13[%c320, %c0_78] {strides = array<i32: 2, 1>} : memref<512x32xf32, #tpu.memory_space<vmem>>, vector<8x32xf32>
    %c321 = arith.constant 321 : index
    %c0_79 = arith.constant 0 : index
    %109 = tpu.strided_load %arg13[%c321, %c0_79] {strides = array<i32: 2, 1>} : memref<512x32xf32, #tpu.memory_space<vmem>>, vector<8x32xf32>
    %110 = arith.maximumf %108, %109 : vector<8x32xf32>
    %c336 = arith.constant 336 : index
    %c0_80 = arith.constant 0 : index
    %111 = tpu.strided_load %arg13[%c336, %c0_80] {strides = array<i32: 2, 1>} : memref<512x32xf32, #tpu.memory_space<vmem>>, vector<8x32xf32>
    %c337 = arith.constant 337 : index
    %c0_81 = arith.constant 0 : index
    %112 = tpu.strided_load %arg13[%c337, %c0_81] {strides = array<i32: 2, 1>} : memref<512x32xf32, #tpu.memory_space<vmem>>, vector<8x32xf32>
    %113 = arith.maximumf %111, %112 : vector<8x32xf32>
    %114 = arith.maximumf %110, %113 : vector<8x32xf32>
    %c232 = arith.constant 232 : index
    %c0_82 = arith.constant 0 : index
    %115 = vector.load %arg14[%c232, %c0_82] : memref<352x32xf32, #tpu.memory_space<vmem>>, vector<8x32xf32>
    tpu.vector_store %arg14[%c232, %c0_82], %114 {strides = array<i32>} : memref<352x32xf32, #tpu.memory_space<vmem>>, vector<8x32xf32>,
    %c352 = arith.constant 352 : index
    %c0_83 = arith.constant 0 : index
    %116 = tpu.strided_load %arg13[%c352, %c0_83] {strides = array<i32: 2, 1>} : memref<512x32xf32, #tpu.memory_space<vmem>>, vector<8x32xf32>
    %c353 = arith.constant 353 : index
    %c0_84 = arith.constant 0 : index
    %117 = tpu.strided_load %arg13[%c353, %c0_84] {strides = array<i32: 2, 1>} : memref<512x32xf32, #tpu.memory_space<vmem>>, vector<8x32xf32>
    %118 = arith.maximumf %116, %117 : vector<8x32xf32>
    %c368 = arith.constant 368 : index
    %c0_85 = arith.constant 0 : index
    %119 = tpu.strided_load %arg13[%c368, %c0_85] {strides = array<i32: 2, 1>} : memref<512x32xf32, #tpu.memory_space<vmem>>, vector<8x32xf32>
    %c369 = arith.constant 369 : index
    %c0_86 = arith.constant 0 : index
    %120 = tpu.strided_load %arg13[%c369, %c0_86] {strides = array<i32: 2, 1>} : memref<512x32xf32, #tpu.memory_space<vmem>>, vector<8x32xf32>
    %121 = arith.maximumf %119, %120 : vector<8x32xf32>
    %122 = arith.maximumf %118, %121 : vector<8x32xf32>
    %c248 = arith.constant 248 : index
    %c0_87 = arith.constant 0 : index
    %123 = vector.load %arg14[%c248, %c0_87] : memref<352x32xf32, #tpu.memory_space<vmem>>, vector<8x32xf32>
    tpu.vector_store %arg14[%c248, %c0_87], %122 {strides = array<i32>} : memref<352x32xf32, #tpu.memory_space<vmem>>, vector<8x32xf32>,
    %c384 = arith.constant 384 : index
    %c0_88 = arith.constant 0 : index
    %124 = tpu.strided_load %arg13[%c384, %c0_88] {strides = array<i32: 2, 1>} : memref<512x32xf32, #tpu.memory_space<vmem>>, vector<8x32xf32>
    %c385 = arith.constant 385 : index
    %c0_89 = arith.constant 0 : index
    %125 = tpu.strided_load %arg13[%c385, %c0_89] {strides = array<i32: 2, 1>} : memref<512x32xf32, #tpu.memory_space<vmem>>, vector<8x32xf32>
    %126 = arith.maximumf %124, %125 : vector<8x32xf32>
    %c400 = arith.constant 400 : index
    %c0_90 = arith.constant 0 : index
    %127 = tpu.strided_load %arg13[%c400, %c0_90] {strides = array<i32: 2, 1>} : memref<512x32xf32, #tpu.memory_space<vmem>>, vector<8x32xf32>
    %c401 = arith.constant 401 : index
    %c0_91 = arith.constant 0 : index
    %128 = tpu.strided_load %arg13[%c401, %c0_91] {strides = array<i32: 2, 1>} : memref<512x32xf32, #tpu.memory_space<vmem>>, vector<8x32xf32>
    %129 = arith.maximumf %127, %128 : vector<8x32xf32>
    %130 = arith.maximumf %126, %129 : vector<8x32xf32>
    %c264 = arith.constant 264 : index
    %c0_92 = arith.constant 0 : index
    %131 = vector.load %arg14[%c264, %c0_92] : memref<352x32xf32, #tpu.memory_space<vmem>>, vector<8x32xf32>
    tpu.vector_store %arg14[%c264, %c0_92], %130 {strides = array<i32>} : memref<352x32xf32, #tpu.memory_space<vmem>>, vector<8x32xf32>,
    %c416 = arith.constant 416 : index
    %c0_93 = arith.constant 0 : index
    %132 = tpu.strided_load %arg13[%c416, %c0_93] {strides = array<i32: 2, 1>} : memref<512x32xf32, #tpu.memory_space<vmem>>, vector<8x32xf32>
    %c417 = arith.constant 417 : index
    %c0_94 = arith.constant 0 : index
    %133 = tpu.strided_load %arg13[%c417, %c0_94] {strides = array<i32: 2, 1>} : memref<512x32xf32, #tpu.memory_space<vmem>>, vector<8x32xf32>
    %134 = arith.maximumf %132, %133 : vector<8x32xf32>
    %c432 = arith.constant 432 : index
    %c0_95 = arith.constant 0 : index
    %135 = tpu.strided_load %arg13[%c432, %c0_95] {strides = array<i32: 2, 1>} : memref<512x32xf32, #tpu.memory_space<vmem>>, vector<8x32xf32>
    %c433 = arith.constant 433 : index
    %c0_96 = arith.constant 0 : index
    %136 = tpu.strided_load %arg13[%c433, %c0_96] {strides = array<i32: 2, 1>} : memref<512x32xf32, #tpu.memory_space<vmem>>, vector<8x32xf32>
    %137 = arith.maximumf %135, %136 : vector<8x32xf32>
    %138 = arith.maximumf %134, %137 : vector<8x32xf32>
    %c280 = arith.constant 280 : index
    %c0_97 = arith.constant 0 : index
    %139 = vector.load %arg14[%c280, %c0_97] : memref<352x32xf32, #tpu.memory_space<vmem>>, vector<8x32xf32>
    tpu.vector_store %arg14[%c280, %c0_97], %138 {strides = array<i32>} : memref<352x32xf32, #tpu.memory_space<vmem>>, vector<8x32xf32>,
    %c448 = arith.constant 448 : index
    %c0_98 = arith.constant 0 : index
    %140 = tpu.strided_load %arg13[%c448, %c0_98] {strides = array<i32: 2, 1>} : memref<512x32xf32, #tpu.memory_space<vmem>>, vector<8x32xf32>
    %c449 = arith.constant 449 : index
    %c0_99 = arith.constant 0 : index
    %141 = tpu.strided_load %arg13[%c449, %c0_99] {strides = array<i32: 2, 1>} : memref<512x32xf32, #tpu.memory_space<vmem>>, vector<8x32xf32>
    %142 = arith.maximumf %140, %141 : vector<8x32xf32>
    %c464 = arith.constant 464 : index
    %c0_100 = arith.constant 0 : index
    %143 = tpu.strided_load %arg13[%c464, %c0_100] {strides = array<i32: 2, 1>} : memref<512x32xf32, #tpu.memory_space<vmem>>, vector<8x32xf32>
    %c465 = arith.constant 465 : index
    %c0_101 = arith.constant 0 : index
    %144 = tpu.strided_load %arg13[%c465, %c0_101] {strides = array<i32: 2, 1>} : memref<512x32xf32, #tpu.memory_space<vmem>>, vector<8x32xf32>
    %145 = arith.maximumf %143, %144 : vector<8x32xf32>
    %146 = arith.maximumf %142, %145 : vector<8x32xf32>
    %c296 = arith.constant 296 : index
    %c0_102 = arith.constant 0 : index
    %147 = vector.load %arg14[%c296, %c0_102] : memref<352x32xf32, #tpu.memory_space<vmem>>, vector<8x32xf32>
    tpu.vector_store %arg14[%c296, %c0_102], %146 {strides = array<i32>} : memref<352x32xf32, #tpu.memory_space<vmem>>, vector<8x32xf32>,
    %c480 = arith.constant 480 : index
    %c0_103 = arith.constant 0 : index
    %148 = tpu.strided_load %arg13[%c480, %c0_103] {strides = array<i32: 2, 1>} : memref<512x32xf32, #tpu.memory_space<vmem>>, vector<8x32xf32>
    %c481 = arith.constant 481 : index
    %c0_104 = arith.constant 0 : index
    %149 = tpu.strided_load %arg13[%c481, %c0_104] {strides = array<i32: 2, 1>} : memref<512x32xf32, #tpu.memory_space<vmem>>, vector<8x32xf32>
    %150 = arith.maximumf %148, %149 : vector<8x32xf32>
    %c496 = arith.constant 496 : index
    %c0_105 = arith.constant 0 : index
    %151 = tpu.strided_load %arg13[%c496, %c0_105] {strides = array<i32: 2, 1>} : memref<512x32xf32, #tpu.memory_space<vmem>>, vector<8x32xf32>
    %c497 = arith.constant 497 : index
    %c0_106 = arith.constant 0 : index
    %152 = tpu.strided_load %arg13[%c497, %c0_106] {strides = array<i32: 2, 1>} : memref<512x32xf32, #tpu.memory_space<vmem>>, vector<8x32xf32>
    %153 = arith.maximumf %151, %152 : vector<8x32xf32>
    %154 = arith.maximumf %150, %153 : vector<8x32xf32>
    %c312 = arith.constant 312 : index
    %c0_107 = arith.constant 0 : index
    %155 = vector.load %arg14[%c312, %c0_107] : memref<352x32xf32, #tpu.memory_space<vmem>>, vector<8x32xf32>
    tpu.vector_store %arg14[%c312, %c0_107], %154 {strides = array<i32>} : memref<352x32xf32, #tpu.memory_space<vmem>>, vector<8x32xf32>,
    %c7 = arith.constant 7 : index
    %c0_108 = arith.constant 0 : index
    %156 = vector.load %arg14[%c7, %c0_108] : memref<352x32xf32, #tpu.memory_space<vmem>>, vector<128x32xf32>
    %157 = arith.truncf %156 : vector<128x32xf32> to vector<128x32xbf16>
    %c0_109 = arith.constant 0 : index
    %c0_110 = arith.constant 0 : index
    %158 = vector.load %arg15[%c0_109, %c0_110] : memref<256x288xbf16, #tpu.memory_space<vmem>>, vector<128x32xbf16>
    tpu.vector_store %arg15[%c0_109, %c0_110], %157 {strides = array<i32>} : memref<256x288xbf16, #tpu.memory_space<vmem>>, vector<128x32xbf16>,
    %c8 = arith.constant 8 : index
    %c0_111 = arith.constant 0 : index
    %159 = vector.load %arg14[%c8, %c0_111] : memref<352x32xf32, #tpu.memory_space<vmem>>, vector<128x32xf32>
    %160 = arith.truncf %159 : vector<128x32xf32> to vector<128x32xbf16>
    %c0_112 = arith.constant 0 : index
    %c32_113 = arith.constant 32 : index
    %161 = vector.load %arg15[%c0_112, %c32_113] : memref<256x288xbf16, #tpu.memory_space<vmem>>, vector<128x32xbf16>
    tpu.vector_store %arg15[%c0_112, %c32_113], %160 {strides = array<i32>} : memref<256x288xbf16, #tpu.memory_space<vmem>>, vector<128x32xbf16>,
    %c9 = arith.constant 9 : index
    %c0_114 = arith.constant 0 : index
    %162 = vector.load %arg14[%c9, %c0_114] : memref<352x32xf32, #tpu.memory_space<vmem>>, vector<128x32xf32>
    %163 = arith.truncf %162 : vector<128x32xf32> to vector<128x32xbf16>
    %c0_115 = arith.constant 0 : index
    %c64_116 = arith.constant 64 : index
    %164 = vector.load %arg15[%c0_115, %c64_116] : memref<256x288xbf16, #tpu.memory_space<vmem>>, vector<128x32xbf16>
    tpu.vector_store %arg15[%c0_115, %c64_116], %163 {strides = array<i32>} : memref<256x288xbf16, #tpu.memory_space<vmem>>, vector<128x32xbf16>,
    %c23 = arith.constant 23 : index
    %c0_117 = arith.constant 0 : index
    %165 = vector.load %arg14[%c23, %c0_117] : memref<352x32xf32, #tpu.memory_space<vmem>>, vector<128x32xf32>
    %166 = arith.truncf %165 : vector<128x32xf32> to vector<128x32xbf16>
    %c0_118 = arith.constant 0 : index
    %c96_119 = arith.constant 96 : index
    %167 = vector.load %arg15[%c0_118, %c96_119] : memref<256x288xbf16, #tpu.memory_space<vmem>>, vector<128x32xbf16>
    tpu.vector_store %arg15[%c0_118, %c96_119], %166 {strides = array<i32>} : memref<256x288xbf16, #tpu.memory_space<vmem>>, vector<128x32xbf16>,
    %c24_120 = arith.constant 24 : index
    %c0_121 = arith.constant 0 : index
    %168 = vector.load %arg14[%c24_120, %c0_121] : memref<352x32xf32, #tpu.memory_space<vmem>>, vector<128x32xf32>
    %169 = arith.truncf %168 : vector<128x32xf32> to vector<128x32xbf16>
    %c0_122 = arith.constant 0 : index
    %c128_123 = arith.constant 128 : index
    %170 = vector.load %arg15[%c0_122, %c128_123] : memref<256x288xbf16, #tpu.memory_space<vmem>>, vector<128x32xbf16>
    tpu.vector_store %arg15[%c0_122, %c128_123], %169 {strides = array<i32>} : memref<256x288xbf16, #tpu.memory_space<vmem>>, vector<128x32xbf16>,
    %c25 = arith.constant 25 : index
    %c0_124 = arith.constant 0 : index
    %171 = vector.load %arg14[%c25, %c0_124] : memref<352x32xf32, #tpu.memory_space<vmem>>, vector<128x32xf32>
    %172 = arith.truncf %171 : vector<128x32xf32> to vector<128x32xbf16>
    %c0_125 = arith.constant 0 : index
    %c160_126 = arith.constant 160 : index
    %173 = vector.load %arg15[%c0_125, %c160_126] : memref<256x288xbf16, #tpu.memory_space<vmem>>, vector<128x32xbf16>
    tpu.vector_store %arg15[%c0_125, %c160_126], %172 {strides = array<i32>} : memref<256x288xbf16, #tpu.memory_space<vmem>>, vector<128x32xbf16>,
    %c39 = arith.constant 39 : index
    %c0_127 = arith.constant 0 : index
    %174 = vector.load %arg14[%c39, %c0_127] : memref<352x32xf32, #tpu.memory_space<vmem>>, vector<128x32xf32>
    %175 = arith.truncf %174 : vector<128x32xf32> to vector<128x32xbf16>
    %c0_128 = arith.constant 0 : index
    %c192_129 = arith.constant 192 : index
    %176 = vector.load %arg15[%c0_128, %c192_129] : memref<256x288xbf16, #tpu.memory_space<vmem>>, vector<128x32xbf16>
    tpu.vector_store %arg15[%c0_128, %c192_129], %175 {strides = array<i32>} : memref<256x288xbf16, #tpu.memory_space<vmem>>, vector<128x32xbf16>,
    %c40_130 = arith.constant 40 : index
    %c0_131 = arith.constant 0 : index
    %177 = vector.load %arg14[%c40_130, %c0_131] : memref<352x32xf32, #tpu.memory_space<vmem>>, vector<128x32xf32>
    %178 = arith.truncf %177 : vector<128x32xf32> to vector<128x32xbf16>
    %c0_132 = arith.constant 0 : index
    %c224_133 = arith.constant 224 : index
    %179 = vector.load %arg15[%c0_132, %c224_133] : memref<256x288xbf16, #tpu.memory_space<vmem>>, vector<128x32xbf16>
    tpu.vector_store %arg15[%c0_132, %c224_133], %178 {strides = array<i32>} : memref<256x288xbf16, #tpu.memory_space<vmem>>, vector<128x32xbf16>,
    %c41 = arith.constant 41 : index
    %c0_134 = arith.constant 0 : index
    %180 = vector.load %arg14[%c41, %c0_134] : memref<352x32xf32, #tpu.memory_space<vmem>>, vector<128x32xf32>
    %181 = arith.truncf %180 : vector<128x32xf32> to vector<128x32xbf16>
    %c0_135 = arith.constant 0 : index
    %c256_136 = arith.constant 256 : index
    %182 = vector.load %arg15[%c0_135, %c256_136] : memref<256x288xbf16, #tpu.memory_space<vmem>>, vector<128x32xbf16>
    tpu.vector_store %arg15[%c0_135, %c256_136], %181 {strides = array<i32>} : memref<256x288xbf16, #tpu.memory_space<vmem>>, vector<128x32xbf16>,
    %c183 = arith.constant 183 : index
    %c0_137 = arith.constant 0 : index
    %183 = vector.load %arg14[%c183, %c0_137] : memref<352x32xf32, #tpu.memory_space<vmem>>, vector<128x32xf32>
    %184 = arith.truncf %183 : vector<128x32xf32> to vector<128x32xbf16>
    %c128_138 = arith.constant 128 : index
    %c0_139 = arith.constant 0 : index
    %185 = vector.load %arg15[%c128_138, %c0_139] : memref<256x288xbf16, #tpu.memory_space<vmem>>, vector<128x32xbf16>
    tpu.vector_store %arg15[%c128_138, %c0_139], %184 {strides = array<i32>} : memref<256x288xbf16, #tpu.memory_space<vmem>>, vector<128x32xbf16>,
    %c184 = arith.constant 184 : index
    %c0_140 = arith.constant 0 : index
    %186 = vector.load %arg14[%c184, %c0_140] : memref<352x32xf32, #tpu.memory_space<vmem>>, vector<128x32xf32>
    %187 = arith.truncf %186 : vector<128x32xf32> to vector<128x32xbf16>
    %c128_141 = arith.constant 128 : index
    %c32_142 = arith.constant 32 : index
    %188 = vector.load %arg15[%c128_141, %c32_142] : memref<256x288xbf16, #tpu.memory_space<vmem>>, vector<128x32xbf16>
    tpu.vector_store %arg15[%c128_141, %c32_142], %187 {strides = array<i32>} : memref<256x288xbf16, #tpu.memory_space<vmem>>, vector<128x32xbf16>,
    %c185 = arith.constant 185 : index
    %c0_143 = arith.constant 0 : index
    %189 = vector.load %arg14[%c185, %c0_143] : memref<352x32xf32, #tpu.memory_space<vmem>>, vector<128x32xf32>
    %190 = arith.truncf %189 : vector<128x32xf32> to vector<128x32xbf16>
    %c128_144 = arith.constant 128 : index
    %c64_145 = arith.constant 64 : index
    %191 = vector.load %arg15[%c128_144, %c64_145] : memref<256x288xbf16, #tpu.memory_space<vmem>>, vector<128x32xbf16>
    tpu.vector_store %arg15[%c128_144, %c64_145], %190 {strides = array<i32>} : memref<256x288xbf16, #tpu.memory_space<vmem>>, vector<128x32xbf16>,
    %c199 = arith.constant 199 : index
    %c0_146 = arith.constant 0 : index
    %192 = vector.load %arg14[%c199, %c0_146] : memref<352x32xf32, #tpu.memory_space<vmem>>, vector<128x32xf32>
    %193 = arith.truncf %192 : vector<128x32xf32> to vector<128x32xbf16>
    %c128_147 = arith.constant 128 : index
    %c96_148 = arith.constant 96 : index
    %194 = vector.load %arg15[%c128_147, %c96_148] : memref<256x288xbf16, #tpu.memory_space<vmem>>, vector<128x32xbf16>
    tpu.vector_store %arg15[%c128_147, %c96_148], %193 {strides = array<i32>} : memref<256x288xbf16, #tpu.memory_space<vmem>>, vector<128x32xbf16>,
    %c200_149 = arith.constant 200 : index
    %c0_150 = arith.constant 0 : index
    %195 = vector.load %arg14[%c200_149, %c0_150] : memref<352x32xf32, #tpu.memory_space<vmem>>, vector<128x32xf32>
    %196 = arith.truncf %195 : vector<128x32xf32> to vector<128x32xbf16>
    %c128_151 = arith.constant 128 : index
    %c128_152 = arith.constant 128 : index
    %197 = vector.load %arg15[%c128_151, %c128_152] : memref<256x288xbf16, #tpu.memory_space<vmem>>, vector<128x32xbf16>
    tpu.vector_store %arg15[%c128_151, %c128_152], %196 {strides = array<i32>} : memref<256x288xbf16, #tpu.memory_space<vmem>>, vector<128x32xbf16>,
    %c201 = arith.constant 201 : index
    %c0_153 = arith.constant 0 : index
    %198 = vector.load %arg14[%c201, %c0_153] : memref<352x32xf32, #tpu.memory_space<vmem>>, vector<128x32xf32>
    %199 = arith.truncf %198 : vector<128x32xf32> to vector<128x32xbf16>
    %c128_154 = arith.constant 128 : index
    %c160_155 = arith.constant 160 : index
    %200 = vector.load %arg15[%c128_154, %c160_155] : memref<256x288xbf16, #tpu.memory_space<vmem>>, vector<128x32xbf16>
    tpu.vector_store %arg15[%c128_154, %c160_155], %199 {strides = array<i32>} : memref<256x288xbf16, #tpu.memory_space<vmem>>, vector<128x32xbf16>,
    %c215 = arith.constant 215 : index
    %c0_156 = arith.constant 0 : index
    %201 = vector.load %arg14[%c215, %c0_156] : memref<352x32xf32, #tpu.memory_space<vmem>>, vector<128x32xf32>
    %202 = arith.truncf %201 : vector<128x32xf32> to vector<128x32xbf16>
    %c128_157 = arith.constant 128 : index
    %c192_158 = arith.constant 192 : index
    %203 = vector.load %arg15[%c128_157, %c192_158] : memref<256x288xbf16, #tpu.memory_space<vmem>>, vector<128x32xbf16>
    tpu.vector_store %arg15[%c128_157, %c192_158], %202 {strides = array<i32>} : memref<256x288xbf16, #tpu.memory_space<vmem>>, vector<128x32xbf16>,
    %c216_159 = arith.constant 216 : index
    %c0_160 = arith.constant 0 : index
    %204 = vector.load %arg14[%c216_159, %c0_160] : memref<352x32xf32, #tpu.memory_space<vmem>>, vector<128x32xf32>
    %205 = arith.truncf %204 : vector<128x32xf32> to vector<128x32xbf16>
    %c128_161 = arith.constant 128 : index
    %c224_162 = arith.constant 224 : index
    %206 = vector.load %arg15[%c128_161, %c224_162] : memref<256x288xbf16, #tpu.memory_space<vmem>>, vector<128x32xbf16>
    tpu.vector_store %arg15[%c128_161, %c224_162], %205 {strides = array<i32>} : memref<256x288xbf16, #tpu.memory_space<vmem>>, vector<128x32xbf16>,
    %c217 = arith.constant 217 : index
    %c0_163 = arith.constant 0 : index
    %207 = vector.load %arg14[%c217, %c0_163] : memref<352x32xf32, #tpu.memory_space<vmem>>, vector<128x32xf32>
    %208 = arith.truncf %207 : vector<128x32xf32> to vector<128x32xbf16>
    %c128_164 = arith.constant 128 : index
    %c256_165 = arith.constant 256 : index
    %209 = vector.load %arg15[%c128_164, %c256_165] : memref<256x288xbf16, #tpu.memory_space<vmem>>, vector<128x32xbf16>
    tpu.vector_store %arg15[%c128_164, %c256_165], %208 {strides = array<i32>} : memref<256x288xbf16, #tpu.memory_space<vmem>>, vector<128x32xbf16>,
    %c0_166 = arith.constant 0 : index
    %c0_167 = arith.constant 0 : index
    %210 = vector.load %arg15[%c0_166, %c0_167] : memref<256x288xbf16, #tpu.memory_space<vmem>>, vector<256x288xbf16>
    %c0_168 = arith.constant 0 : index
    %c0_169 = arith.constant 0 : index
    %211 = vector.load %arg5[%c0_168, %c0_169] : memref<288x64xbf16, #tpu.memory_space<vmem>>, vector<288x64xbf16>
    %cst_170 = arith.constant dense<0.000000e+00> : vector<256x64xf32>
    %212 = tpu.matmul %210, %211, %cst_170 {dimension_numbers = #tpu.dot_dimension_numbers<[1], [0], [0], [1], [0, 0, 1, 1], [], []>} : vector<256x288xbf16>, vector<288x64xbf16>, vector<256x64xf32> -> vector<256x64xf32>
    %c0_171 = arith.constant 0 : index
    %c0_172 = arith.constant 0 : index
    %213 = vector.load %arg6[%c0_171, %c0_172] : memref<1x64xf32, #tpu.memory_space<vmem>>, vector<1x64xf32>
    %214 = vector.broadcast %213 : vector<1x64xf32> to vector<256x64xf32>
    %215 = arith.mulf %212, %214 : vector<256x64xf32>
    %c0_173 = arith.constant 0 : index
    %c0_174 = arith.constant 0 : index
    %216 = vector.load %arg7[%c0_173, %c0_174] : memref<1x64xf32, #tpu.memory_space<vmem>>, vector<1x64xf32>
    %217 = vector.broadcast %216 : vector<1x64xf32> to vector<256x64xf32>
    %218 = arith.addf %215, %217 : vector<256x64xf32>
    %cst_175 = arith.constant 0.000000e+00 : f32
    %219 = vector.broadcast %cst_175 : f32 to vector<256x64xf32>
    %220 = arith.maximumf %218, %219 : vector<256x64xf32>
    %c0_176 = arith.constant 0 : index
    %c0_177 = arith.constant 0 : index
    %221 = vector.load %arg16[%c0_176, %c0_177] : memref<256x64xf32, #tpu.memory_space<vmem>>, vector<256x64xf32>
    tpu.vector_store %arg16[%c0_176, %c0_177], %220 {strides = array<i32>} : memref<256x64xf32, #tpu.memory_space<vmem>>, vector<256x64xf32>,
    %c0_178 = arith.constant 0 : index
    %c0_179 = arith.constant 0 : index
    %222 = tpu.strided_load %arg16[%c0_178, %c0_179] {strides = array<i32: 128, 1>} : memref<256x64xf32, #tpu.memory_space<vmem>>, vector<2x64xf32>
    %c1_180 = arith.constant 1 : index
    %c0_181 = arith.constant 0 : index
    %223 = tpu.strided_load %arg16[%c1_180, %c0_181] {strides = array<i32: 128, 1>} : memref<256x64xf32, #tpu.memory_space<vmem>>, vector<2x64xf32>
    %224 = arith.maximumf %222, %223 : vector<2x64xf32>
    %c16_182 = arith.constant 16 : index
    %c0_183 = arith.constant 0 : index
    %225 = tpu.strided_load %arg16[%c16_182, %c0_183] {strides = array<i32: 128, 1>} : memref<256x64xf32, #tpu.memory_space<vmem>>, vector<2x64xf32>
    %c17_184 = arith.constant 17 : index
    %c0_185 = arith.constant 0 : index
    %226 = tpu.strided_load %arg16[%c17_184, %c0_185] {strides = array<i32: 128, 1>} : memref<256x64xf32, #tpu.memory_space<vmem>>, vector<2x64xf32>
    %227 = arith.maximumf %225, %226 : vector<2x64xf32>
    %228 = arith.maximumf %224, %227 : vector<2x64xf32>
    %229 = arith.truncf %228 : vector<2x64xf32> to vector<2x64xbf16>
    %c0_186 = arith.constant 0 : index
    %c0_187 = arith.constant 0 : index
    %230 = vector.load %arg17[%c0_186, %c0_187] : memref<2x1024xbf16, #tpu.memory_space<vmem>>, vector<2x64xbf16>
    tpu.vector_store %arg17[%c0_186, %c0_187], %229 {strides = array<i32>} : memref<2x1024xbf16, #tpu.memory_space<vmem>>, vector<2x64xbf16>,
    %c2 = arith.constant 2 : index
    %c0_188 = arith.constant 0 : index
    %231 = tpu.strided_load %arg16[%c2, %c0_188] {strides = array<i32: 128, 1>} : memref<256x64xf32, #tpu.memory_space<vmem>>, vector<2x64xf32>
    %c3 = arith.constant 3 : index
    %c0_189 = arith.constant 0 : index
    %232 = tpu.strided_load %arg16[%c3, %c0_189] {strides = array<i32: 128, 1>} : memref<256x64xf32, #tpu.memory_space<vmem>>, vector<2x64xf32>
    %233 = arith.maximumf %231, %232 : vector<2x64xf32>
    %c18 = arith.constant 18 : index
    %c0_190 = arith.constant 0 : index
    %234 = tpu.strided_load %arg16[%c18, %c0_190] {strides = array<i32: 128, 1>} : memref<256x64xf32, #tpu.memory_space<vmem>>, vector<2x64xf32>
    %c19 = arith.constant 19 : index
    %c0_191 = arith.constant 0 : index
    %235 = tpu.strided_load %arg16[%c19, %c0_191] {strides = array<i32: 128, 1>} : memref<256x64xf32, #tpu.memory_space<vmem>>, vector<2x64xf32>
    %236 = arith.maximumf %234, %235 : vector<2x64xf32>
    %237 = arith.maximumf %233, %236 : vector<2x64xf32>
    %238 = arith.truncf %237 : vector<2x64xf32> to vector<2x64xbf16>
    %c0_192 = arith.constant 0 : index
    %c64_193 = arith.constant 64 : index
    %239 = vector.load %arg17[%c0_192, %c64_193] : memref<2x1024xbf16, #tpu.memory_space<vmem>>, vector<2x64xbf16>
    tpu.vector_store %arg17[%c0_192, %c64_193], %238 {strides = array<i32>} : memref<2x1024xbf16, #tpu.memory_space<vmem>>, vector<2x64xbf16>,
    %c4 = arith.constant 4 : index
    %c0_194 = arith.constant 0 : index
    %240 = tpu.strided_load %arg16[%c4, %c0_194] {strides = array<i32: 128, 1>} : memref<256x64xf32, #tpu.memory_space<vmem>>, vector<2x64xf32>
    %c5 = arith.constant 5 : index
    %c0_195 = arith.constant 0 : index
    %241 = tpu.strided_load %arg16[%c5, %c0_195] {strides = array<i32: 128, 1>} : memref<256x64xf32, #tpu.memory_space<vmem>>, vector<2x64xf32>
    %242 = arith.maximumf %240, %241 : vector<2x64xf32>
    %c20 = arith.constant 20 : index
    %c0_196 = arith.constant 0 : index
    %243 = tpu.strided_load %arg16[%c20, %c0_196] {strides = array<i32: 128, 1>} : memref<256x64xf32, #tpu.memory_space<vmem>>, vector<2x64xf32>
    %c21 = arith.constant 21 : index
    %c0_197 = arith.constant 0 : index
    %244 = tpu.strided_load %arg16[%c21, %c0_197] {strides = array<i32: 128, 1>} : memref<256x64xf32, #tpu.memory_space<vmem>>, vector<2x64xf32>
    %245 = arith.maximumf %243, %244 : vector<2x64xf32>
    %246 = arith.maximumf %242, %245 : vector<2x64xf32>
    %247 = arith.truncf %246 : vector<2x64xf32> to vector<2x64xbf16>
    %c0_198 = arith.constant 0 : index
    %c128_199 = arith.constant 128 : index
    %248 = vector.load %arg17[%c0_198, %c128_199] : memref<2x1024xbf16, #tpu.memory_space<vmem>>, vector<2x64xbf16>
    tpu.vector_store %arg17[%c0_198, %c128_199], %247 {strides = array<i32>} : memref<2x1024xbf16, #tpu.memory_space<vmem>>, vector<2x64xbf16>,
    %c6 = arith.constant 6 : index
    %c0_200 = arith.constant 0 : index
    %249 = tpu.strided_load %arg16[%c6, %c0_200] {strides = array<i32: 128, 1>} : memref<256x64xf32, #tpu.memory_space<vmem>>, vector<2x64xf32>
    %c7_201 = arith.constant 7 : index
    %c0_202 = arith.constant 0 : index
    %250 = tpu.strided_load %arg16[%c7_201, %c0_202] {strides = array<i32: 128, 1>} : memref<256x64xf32, #tpu.memory_space<vmem>>, vector<2x64xf32>
    %251 = arith.maximumf %249, %250 : vector<2x64xf32>
    %c22 = arith.constant 22 : index
    %c0_203 = arith.constant 0 : index
    %252 = tpu.strided_load %arg16[%c22, %c0_203] {strides = array<i32: 128, 1>} : memref<256x64xf32, #tpu.memory_space<vmem>>, vector<2x64xf32>
    %c23_204 = arith.constant 23 : index
    %c0_205 = arith.constant 0 : index
    %253 = tpu.strided_load %arg16[%c23_204, %c0_205] {strides = array<i32: 128, 1>} : memref<256x64xf32, #tpu.memory_space<vmem>>, vector<2x64xf32>
    %254 = arith.maximumf %252, %253 : vector<2x64xf32>
    %255 = arith.maximumf %251, %254 : vector<2x64xf32>
    %256 = arith.truncf %255 : vector<2x64xf32> to vector<2x64xbf16>
    %c0_206 = arith.constant 0 : index
    %c192_207 = arith.constant 192 : index
    %257 = vector.load %arg17[%c0_206, %c192_207] : memref<2x1024xbf16, #tpu.memory_space<vmem>>, vector<2x64xbf16>
    tpu.vector_store %arg17[%c0_206, %c192_207], %256 {strides = array<i32>} : memref<2x1024xbf16, #tpu.memory_space<vmem>>, vector<2x64xbf16>,
    %c32_208 = arith.constant 32 : index
    %c0_209 = arith.constant 0 : index
    %258 = tpu.strided_load %arg16[%c32_208, %c0_209] {strides = array<i32: 128, 1>} : memref<256x64xf32, #tpu.memory_space<vmem>>, vector<2x64xf32>
    %c33_210 = arith.constant 33 : index
    %c0_211 = arith.constant 0 : index
    %259 = tpu.strided_load %arg16[%c33_210, %c0_211] {strides = array<i32: 128, 1>} : memref<256x64xf32, #tpu.memory_space<vmem>>, vector<2x64xf32>
    %260 = arith.maximumf %258, %259 : vector<2x64xf32>
    %c48_212 = arith.constant 48 : index
    %c0_213 = arith.constant 0 : index
    %261 = tpu.strided_load %arg16[%c48_212, %c0_213] {strides = array<i32: 128, 1>} : memref<256x64xf32, #tpu.memory_space<vmem>>, vector<2x64xf32>
    %c49_214 = arith.constant 49 : index
    %c0_215 = arith.constant 0 : index
    %262 = tpu.strided_load %arg16[%c49_214, %c0_215] {strides = array<i32: 128, 1>} : memref<256x64xf32, #tpu.memory_space<vmem>>, vector<2x64xf32>
    %263 = arith.maximumf %261, %262 : vector<2x64xf32>
    %264 = arith.maximumf %260, %263 : vector<2x64xf32>
    %265 = arith.truncf %264 : vector<2x64xf32> to vector<2x64xbf16>
    %c0_216 = arith.constant 0 : index
    %c256_217 = arith.constant 256 : index
    %266 = vector.load %arg17[%c0_216, %c256_217] : memref<2x1024xbf16, #tpu.memory_space<vmem>>, vector<2x64xbf16>
    tpu.vector_store %arg17[%c0_216, %c256_217], %265 {strides = array<i32>} : memref<2x1024xbf16, #tpu.memory_space<vmem>>, vector<2x64xbf16>,
    %c34 = arith.constant 34 : index
    %c0_218 = arith.constant 0 : index
    %267 = tpu.strided_load %arg16[%c34, %c0_218] {strides = array<i32: 128, 1>} : memref<256x64xf32, #tpu.memory_space<vmem>>, vector<2x64xf32>
    %c35 = arith.constant 35 : index
    %c0_219 = arith.constant 0 : index
    %268 = tpu.strided_load %arg16[%c35, %c0_219] {strides = array<i32: 128, 1>} : memref<256x64xf32, #tpu.memory_space<vmem>>, vector<2x64xf32>
    %269 = arith.maximumf %267, %268 : vector<2x64xf32>
    %c50 = arith.constant 50 : index
    %c0_220 = arith.constant 0 : index
    %270 = tpu.strided_load %arg16[%c50, %c0_220] {strides = array<i32: 128, 1>} : memref<256x64xf32, #tpu.memory_space<vmem>>, vector<2x64xf32>
    %c51 = arith.constant 51 : index
    %c0_221 = arith.constant 0 : index
    %271 = tpu.strided_load %arg16[%c51, %c0_221] {strides = array<i32: 128, 1>} : memref<256x64xf32, #tpu.memory_space<vmem>>, vector<2x64xf32>
    %272 = arith.maximumf %270, %271 : vector<2x64xf32>
    %273 = arith.maximumf %269, %272 : vector<2x64xf32>
    %274 = arith.truncf %273 : vector<2x64xf32> to vector<2x64xbf16>
    %c0_222 = arith.constant 0 : index
    %c320_223 = arith.constant 320 : index
    %275 = vector.load %arg17[%c0_222, %c320_223] : memref<2x1024xbf16, #tpu.memory_space<vmem>>, vector<2x64xbf16>
    tpu.vector_store %arg17[%c0_222, %c320_223], %274 {strides = array<i32>} : memref<2x1024xbf16, #tpu.memory_space<vmem>>, vector<2x64xbf16>,
    %c36 = arith.constant 36 : index
    %c0_224 = arith.constant 0 : index
    %276 = tpu.strided_load %arg16[%c36, %c0_224] {strides = array<i32: 128, 1>} : memref<256x64xf32, #tpu.memory_space<vmem>>, vector<2x64xf32>
    %c37 = arith.constant 37 : index
    %c0_225 = arith.constant 0 : index
    %277 = tpu.strided_load %arg16[%c37, %c0_225] {strides = array<i32: 128, 1>} : memref<256x64xf32, #tpu.memory_space<vmem>>, vector<2x64xf32>
    %278 = arith.maximumf %276, %277 : vector<2x64xf32>
    %c52 = arith.constant 52 : index
    %c0_226 = arith.constant 0 : index
    %279 = tpu.strided_load %arg16[%c52, %c0_226] {strides = array<i32: 128, 1>} : memref<256x64xf32, #tpu.memory_space<vmem>>, vector<2x64xf32>
    %c53 = arith.constant 53 : index
    %c0_227 = arith.constant 0 : index
    %280 = tpu.strided_load %arg16[%c53, %c0_227] {strides = array<i32: 128, 1>} : memref<256x64xf32, #tpu.memory_space<vmem>>, vector<2x64xf32>
    %281 = arith.maximumf %279, %280 : vector<2x64xf32>
    %282 = arith.maximumf %278, %281 : vector<2x64xf32>
    %283 = arith.truncf %282 : vector<2x64xf32> to vector<2x64xbf16>
    %c0_228 = arith.constant 0 : index
    %c384_229 = arith.constant 384 : index
    %284 = vector.load %arg17[%c0_228, %c384_229] : memref<2x1024xbf16, #tpu.memory_space<vmem>>, vector<2x64xbf16>
    tpu.vector_store %arg17[%c0_228, %c384_229], %283 {strides = array<i32>} : memref<2x1024xbf16, #tpu.memory_space<vmem>>, vector<2x64xbf16>,
    %c38 = arith.constant 38 : index
    %c0_230 = arith.constant 0 : index
    %285 = tpu.strided_load %arg16[%c38, %c0_230] {strides = array<i32: 128, 1>} : memref<256x64xf32, #tpu.memory_space<vmem>>, vector<2x64xf32>
    %c39_231 = arith.constant 39 : index
    %c0_232 = arith.constant 0 : index
    %286 = tpu.strided_load %arg16[%c39_231, %c0_232] {strides = array<i32: 128, 1>} : memref<256x64xf32, #tpu.memory_space<vmem>>, vector<2x64xf32>
    %287 = arith.maximumf %285, %286 : vector<2x64xf32>
    %c54 = arith.constant 54 : index
    %c0_233 = arith.constant 0 : index
    %288 = tpu.strided_load %arg16[%c54, %c0_233] {strides = array<i32: 128, 1>} : memref<256x64xf32, #tpu.memory_space<vmem>>, vector<2x64xf32>
    %c55 = arith.constant 55 : index
    %c0_234 = arith.constant 0 : index
    %289 = tpu.strided_load %arg16[%c55, %c0_234] {strides = array<i32: 128, 1>} : memref<256x64xf32, #tpu.memory_space<vmem>>, vector<2x64xf32>
    %290 = arith.maximumf %288, %289 : vector<2x64xf32>
    %291 = arith.maximumf %287, %290 : vector<2x64xf32>
    %292 = arith.truncf %291 : vector<2x64xf32> to vector<2x64xbf16>
    %c0_235 = arith.constant 0 : index
    %c448_236 = arith.constant 448 : index
    %293 = vector.load %arg17[%c0_235, %c448_236] : memref<2x1024xbf16, #tpu.memory_space<vmem>>, vector<2x64xbf16>
    tpu.vector_store %arg17[%c0_235, %c448_236], %292 {strides = array<i32>} : memref<2x1024xbf16, #tpu.memory_space<vmem>>, vector<2x64xbf16>,
    %c64_237 = arith.constant 64 : index
    %c0_238 = arith.constant 0 : index
    %294 = tpu.strided_load %arg16[%c64_237, %c0_238] {strides = array<i32: 128, 1>} : memref<256x64xf32, #tpu.memory_space<vmem>>, vector<2x64xf32>
    %c65_239 = arith.constant 65 : index
    %c0_240 = arith.constant 0 : index
    %295 = tpu.strided_load %arg16[%c65_239, %c0_240] {strides = array<i32: 128, 1>} : memref<256x64xf32, #tpu.memory_space<vmem>>, vector<2x64xf32>
    %296 = arith.maximumf %294, %295 : vector<2x64xf32>
    %c80_241 = arith.constant 80 : index
    %c0_242 = arith.constant 0 : index
    %297 = tpu.strided_load %arg16[%c80_241, %c0_242] {strides = array<i32: 128, 1>} : memref<256x64xf32, #tpu.memory_space<vmem>>, vector<2x64xf32>
    %c81_243 = arith.constant 81 : index
    %c0_244 = arith.constant 0 : index
    %298 = tpu.strided_load %arg16[%c81_243, %c0_244] {strides = array<i32: 128, 1>} : memref<256x64xf32, #tpu.memory_space<vmem>>, vector<2x64xf32>
    %299 = arith.maximumf %297, %298 : vector<2x64xf32>
    %300 = arith.maximumf %296, %299 : vector<2x64xf32>
    %301 = arith.truncf %300 : vector<2x64xf32> to vector<2x64xbf16>
    %c0_245 = arith.constant 0 : index
    %c512 = arith.constant 512 : index
    %302 = vector.load %arg17[%c0_245, %c512] : memref<2x1024xbf16, #tpu.memory_space<vmem>>, vector<2x64xbf16>
    tpu.vector_store %arg17[%c0_245, %c512], %301 {strides = array<i32>} : memref<2x1024xbf16, #tpu.memory_space<vmem>>, vector<2x64xbf16>,
    %c66 = arith.constant 66 : index
    %c0_246 = arith.constant 0 : index
    %303 = tpu.strided_load %arg16[%c66, %c0_246] {strides = array<i32: 128, 1>} : memref<256x64xf32, #tpu.memory_space<vmem>>, vector<2x64xf32>
    %c67 = arith.constant 67 : index
    %c0_247 = arith.constant 0 : index
    %304 = tpu.strided_load %arg16[%c67, %c0_247] {strides = array<i32: 128, 1>} : memref<256x64xf32, #tpu.memory_space<vmem>>, vector<2x64xf32>
    %305 = arith.maximumf %303, %304 : vector<2x64xf32>
    %c82 = arith.constant 82 : index
    %c0_248 = arith.constant 0 : index
    %306 = tpu.strided_load %arg16[%c82, %c0_248] {strides = array<i32: 128, 1>} : memref<256x64xf32, #tpu.memory_space<vmem>>, vector<2x64xf32>
    %c83 = arith.constant 83 : index
    %c0_249 = arith.constant 0 : index
    %307 = tpu.strided_load %arg16[%c83, %c0_249] {strides = array<i32: 128, 1>} : memref<256x64xf32, #tpu.memory_space<vmem>>, vector<2x64xf32>
    %308 = arith.maximumf %306, %307 : vector<2x64xf32>
    %309 = arith.maximumf %305, %308 : vector<2x64xf32>
    %310 = arith.truncf %309 : vector<2x64xf32> to vector<2x64xbf16>
    %c0_250 = arith.constant 0 : index
    %c576 = arith.constant 576 : index
    %311 = vector.load %arg17[%c0_250, %c576] : memref<2x1024xbf16, #tpu.memory_space<vmem>>, vector<2x64xbf16>
    tpu.vector_store %arg17[%c0_250, %c576], %310 {strides = array<i32>} : memref<2x1024xbf16, #tpu.memory_space<vmem>>, vector<2x64xbf16>,
    %c68 = arith.constant 68 : index
    %c0_251 = arith.constant 0 : index
    %312 = tpu.strided_load %arg16[%c68, %c0_251] {strides = array<i32: 128, 1>} : memref<256x64xf32, #tpu.memory_space<vmem>>, vector<2x64xf32>
    %c69 = arith.constant 69 : index
    %c0_252 = arith.constant 0 : index
    %313 = tpu.strided_load %arg16[%c69, %c0_252] {strides = array<i32: 128, 1>} : memref<256x64xf32, #tpu.memory_space<vmem>>, vector<2x64xf32>
    %314 = arith.maximumf %312, %313 : vector<2x64xf32>
    %c84 = arith.constant 84 : index
    %c0_253 = arith.constant 0 : index
    %315 = tpu.strided_load %arg16[%c84, %c0_253] {strides = array<i32: 128, 1>} : memref<256x64xf32, #tpu.memory_space<vmem>>, vector<2x64xf32>
    %c85 = arith.constant 85 : index
    %c0_254 = arith.constant 0 : index
    %316 = tpu.strided_load %arg16[%c85, %c0_254] {strides = array<i32: 128, 1>} : memref<256x64xf32, #tpu.memory_space<vmem>>, vector<2x64xf32>
    %317 = arith.maximumf %315, %316 : vector<2x64xf32>
    %318 = arith.maximumf %314, %317 : vector<2x64xf32>
    %319 = arith.truncf %318 : vector<2x64xf32> to vector<2x64xbf16>
    %c0_255 = arith.constant 0 : index
    %c640 = arith.constant 640 : index
    %320 = vector.load %arg17[%c0_255, %c640] : memref<2x1024xbf16, #tpu.memory_space<vmem>>, vector<2x64xbf16>
    tpu.vector_store %arg17[%c0_255, %c640], %319 {strides = array<i32>} : memref<2x1024xbf16, #tpu.memory_space<vmem>>, vector<2x64xbf16>,
    %c70 = arith.constant 70 : index
    %c0_256 = arith.constant 0 : index
    %321 = tpu.strided_load %arg16[%c70, %c0_256] {strides = array<i32: 128, 1>} : memref<256x64xf32, #tpu.memory_space<vmem>>, vector<2x64xf32>
    %c71 = arith.constant 71 : index
    %c0_257 = arith.constant 0 : index
    %322 = tpu.strided_load %arg16[%c71, %c0_257] {strides = array<i32: 128, 1>} : memref<256x64xf32, #tpu.memory_space<vmem>>, vector<2x64xf32>
    %323 = arith.maximumf %321, %322 : vector<2x64xf32>
    %c86 = arith.constant 86 : index
    %c0_258 = arith.constant 0 : index
    %324 = tpu.strided_load %arg16[%c86, %c0_258] {strides = array<i32: 128, 1>} : memref<256x64xf32, #tpu.memory_space<vmem>>, vector<2x64xf32>
    %c87 = arith.constant 87 : index
    %c0_259 = arith.constant 0 : index
    %325 = tpu.strided_load %arg16[%c87, %c0_259] {strides = array<i32: 128, 1>} : memref<256x64xf32, #tpu.memory_space<vmem>>, vector<2x64xf32>
    %326 = arith.maximumf %324, %325 : vector<2x64xf32>
    %327 = arith.maximumf %323, %326 : vector<2x64xf32>
    %328 = arith.truncf %327 : vector<2x64xf32> to vector<2x64xbf16>
    %c0_260 = arith.constant 0 : index
    %c704 = arith.constant 704 : index
    %329 = vector.load %arg17[%c0_260, %c704] : memref<2x1024xbf16, #tpu.memory_space<vmem>>, vector<2x64xbf16>
    tpu.vector_store %arg17[%c0_260, %c704], %328 {strides = array<i32>} : memref<2x1024xbf16, #tpu.memory_space<vmem>>, vector<2x64xbf16>,
    %c96_261 = arith.constant 96 : index
    %c0_262 = arith.constant 0 : index
    %330 = tpu.strided_load %arg16[%c96_261, %c0_262] {strides = array<i32: 128, 1>} : memref<256x64xf32, #tpu.memory_space<vmem>>, vector<2x64xf32>
    %c97_263 = arith.constant 97 : index
    %c0_264 = arith.constant 0 : index
    %331 = tpu.strided_load %arg16[%c97_263, %c0_264] {strides = array<i32: 128, 1>} : memref<256x64xf32, #tpu.memory_space<vmem>>, vector<2x64xf32>
    %332 = arith.maximumf %330, %331 : vector<2x64xf32>
    %c112_265 = arith.constant 112 : index
    %c0_266 = arith.constant 0 : index
    %333 = tpu.strided_load %arg16[%c112_265, %c0_266] {strides = array<i32: 128, 1>} : memref<256x64xf32, #tpu.memory_space<vmem>>, vector<2x64xf32>
    %c113_267 = arith.constant 113 : index
    %c0_268 = arith.constant 0 : index
    %334 = tpu.strided_load %arg16[%c113_267, %c0_268] {strides = array<i32: 128, 1>} : memref<256x64xf32, #tpu.memory_space<vmem>>, vector<2x64xf32>
    %335 = arith.maximumf %333, %334 : vector<2x64xf32>
    %336 = arith.maximumf %332, %335 : vector<2x64xf32>
    %337 = arith.truncf %336 : vector<2x64xf32> to vector<2x64xbf16>
    %c0_269 = arith.constant 0 : index
    %c768 = arith.constant 768 : index
    %338 = vector.load %arg17[%c0_269, %c768] : memref<2x1024xbf16, #tpu.memory_space<vmem>>, vector<2x64xbf16>
    tpu.vector_store %arg17[%c0_269, %c768], %337 {strides = array<i32>} : memref<2x1024xbf16, #tpu.memory_space<vmem>>, vector<2x64xbf16>,
    %c98 = arith.constant 98 : index
    %c0_270 = arith.constant 0 : index
    %339 = tpu.strided_load %arg16[%c98, %c0_270] {strides = array<i32: 128, 1>} : memref<256x64xf32, #tpu.memory_space<vmem>>, vector<2x64xf32>
    %c99 = arith.constant 99 : index
    %c0_271 = arith.constant 0 : index
    %340 = tpu.strided_load %arg16[%c99, %c0_271] {strides = array<i32: 128, 1>} : memref<256x64xf32, #tpu.memory_space<vmem>>, vector<2x64xf32>
    %341 = arith.maximumf %339, %340 : vector<2x64xf32>
    %c114 = arith.constant 114 : index
    %c0_272 = arith.constant 0 : index
    %342 = tpu.strided_load %arg16[%c114, %c0_272] {strides = array<i32: 128, 1>} : memref<256x64xf32, #tpu.memory_space<vmem>>, vector<2x64xf32>
    %c115 = arith.constant 115 : index
    %c0_273 = arith.constant 0 : index
    %343 = tpu.strided_load %arg16[%c115, %c0_273] {strides = array<i32: 128, 1>} : memref<256x64xf32, #tpu.memory_space<vmem>>, vector<2x64xf32>
    %344 = arith.maximumf %342, %343 : vector<2x64xf32>
    %345 = arith.maximumf %341, %344 : vector<2x64xf32>
    %346 = arith.truncf %345 : vector<2x64xf32> to vector<2x64xbf16>
    %c0_274 = arith.constant 0 : index
    %c832 = arith.constant 832 : index
    %347 = vector.load %arg17[%c0_274, %c832] : memref<2x1024xbf16, #tpu.memory_space<vmem>>, vector<2x64xbf16>
    tpu.vector_store %arg17[%c0_274, %c832], %346 {strides = array<i32>} : memref<2x1024xbf16, #tpu.memory_space<vmem>>, vector<2x64xbf16>,
    %c100 = arith.constant 100 : index
    %c0_275 = arith.constant 0 : index
    %348 = tpu.strided_load %arg16[%c100, %c0_275] {strides = array<i32: 128, 1>} : memref<256x64xf32, #tpu.memory_space<vmem>>, vector<2x64xf32>
    %c101 = arith.constant 101 : index
    %c0_276 = arith.constant 0 : index
    %349 = tpu.strided_load %arg16[%c101, %c0_276] {strides = array<i32: 128, 1>} : memref<256x64xf32, #tpu.memory_space<vmem>>, vector<2x64xf32>
    %350 = arith.maximumf %348, %349 : vector<2x64xf32>
    %c116 = arith.constant 116 : index
    %c0_277 = arith.constant 0 : index
    %351 = tpu.strided_load %arg16[%c116, %c0_277] {strides = array<i32: 128, 1>} : memref<256x64xf32, #tpu.memory_space<vmem>>, vector<2x64xf32>
    %c117 = arith.constant 117 : index
    %c0_278 = arith.constant 0 : index
    %352 = tpu.strided_load %arg16[%c117, %c0_278] {strides = array<i32: 128, 1>} : memref<256x64xf32, #tpu.memory_space<vmem>>, vector<2x64xf32>
    %353 = arith.maximumf %351, %352 : vector<2x64xf32>
    %354 = arith.maximumf %350, %353 : vector<2x64xf32>
    %355 = arith.truncf %354 : vector<2x64xf32> to vector<2x64xbf16>
    %c0_279 = arith.constant 0 : index
    %c896 = arith.constant 896 : index
    %356 = vector.load %arg17[%c0_279, %c896] : memref<2x1024xbf16, #tpu.memory_space<vmem>>, vector<2x64xbf16>
    tpu.vector_store %arg17[%c0_279, %c896], %355 {strides = array<i32>} : memref<2x1024xbf16, #tpu.memory_space<vmem>>, vector<2x64xbf16>,
    %c102 = arith.constant 102 : index
    %c0_280 = arith.constant 0 : index
    %357 = tpu.strided_load %arg16[%c102, %c0_280] {strides = array<i32: 128, 1>} : memref<256x64xf32, #tpu.memory_space<vmem>>, vector<2x64xf32>
    %c103 = arith.constant 103 : index
    %c0_281 = arith.constant 0 : index
    %358 = tpu.strided_load %arg16[%c103, %c0_281] {strides = array<i32: 128, 1>} : memref<256x64xf32, #tpu.memory_space<vmem>>, vector<2x64xf32>
    %359 = arith.maximumf %357, %358 : vector<2x64xf32>
    %c118 = arith.constant 118 : index
    %c0_282 = arith.constant 0 : index
    %360 = tpu.strided_load %arg16[%c118, %c0_282] {strides = array<i32: 128, 1>} : memref<256x64xf32, #tpu.memory_space<vmem>>, vector<2x64xf32>
    %c119 = arith.constant 119 : index
    %c0_283 = arith.constant 0 : index
    %361 = tpu.strided_load %arg16[%c119, %c0_283] {strides = array<i32: 128, 1>} : memref<256x64xf32, #tpu.memory_space<vmem>>, vector<2x64xf32>
    %362 = arith.maximumf %360, %361 : vector<2x64xf32>
    %363 = arith.maximumf %359, %362 : vector<2x64xf32>
    %364 = arith.truncf %363 : vector<2x64xf32> to vector<2x64xbf16>
    %c0_284 = arith.constant 0 : index
    %c960 = arith.constant 960 : index
    %365 = vector.load %arg17[%c0_284, %c960] : memref<2x1024xbf16, #tpu.memory_space<vmem>>, vector<2x64xbf16>
    tpu.vector_store %arg17[%c0_284, %c960], %364 {strides = array<i32>} : memref<2x1024xbf16, #tpu.memory_space<vmem>>, vector<2x64xbf16>,
    %c0_285 = arith.constant 0 : index
    %c0_286 = arith.constant 0 : index
    %366 = vector.load %arg17[%c0_285, %c0_286] : memref<2x1024xbf16, #tpu.memory_space<vmem>>, vector<2x1024xbf16>
    %c0_287 = arith.constant 0 : index
    %c0_288 = arith.constant 0 : index
    %367 = vector.load %arg8[%c0_287, %c0_288] : memref<1024x256xbf16, #tpu.memory_space<vmem>>, vector<1024x256xbf16>
    %cst_289 = arith.constant dense<0.000000e+00> : vector<2x256xf32>
    %368 = tpu.matmul %366, %367, %cst_289 {dimension_numbers = #tpu.dot_dimension_numbers<[1], [0], [0], [1], [0, 0, 1, 1], [], []>} : vector<2x1024xbf16>, vector<1024x256xbf16>, vector<2x256xf32> -> vector<2x256xf32>
    %c0_290 = arith.constant 0 : index
    %c0_291 = arith.constant 0 : index
    %369 = vector.load %arg9[%c0_290, %c0_291] : memref<1x256xf32, #tpu.memory_space<vmem>>, vector<1x256xf32>
    %370 = vector.broadcast %369 : vector<1x256xf32> to vector<2x256xf32>
    %371 = arith.addf %368, %370 : vector<2x256xf32>
    %cst_292 = arith.constant 0.000000e+00 : f32
    %372 = vector.broadcast %cst_292 : f32 to vector<2x256xf32>
    %373 = arith.maximumf %371, %372 : vector<2x256xf32>
    %374 = arith.truncf %373 : vector<2x256xf32> to vector<2x256xbf16>
    %c0_293 = arith.constant 0 : index
    %c0_294 = arith.constant 0 : index
    %375 = vector.load %arg10[%c0_293, %c0_294] : memref<256x128xbf16, #tpu.memory_space<vmem>>, vector<256x128xbf16>
    %cst_295 = arith.constant dense<0.000000e+00> : vector<2x128xf32>
    %376 = tpu.matmul %374, %375, %cst_295 {dimension_numbers = #tpu.dot_dimension_numbers<[1], [0], [0], [1], [0, 0, 1, 1], [], []>} : vector<2x256xbf16>, vector<256x128xbf16>, vector<2x128xf32> -> vector<2x128xf32>
    %c0_296 = arith.constant 0 : index
    %c0_297 = arith.constant 0 : index
    %377 = vector.load %arg11[%c0_296, %c0_297] : memref<1x128xf32, #tpu.memory_space<vmem>>, vector<1x128xf32>
    %378 = vector.broadcast %377 : vector<1x128xf32> to vector<2x128xf32>
    %379 = arith.addf %376, %378 : vector<2x128xf32>
    %c0_298 = arith.constant 0 : index
    %c0_299 = arith.constant 0 : index
    %c0_300 = arith.constant 0 : index
    %380 = vector.load %arg12[%c0_298, %c0_299, %c0_300] : memref<1x2x128xf32, #tpu.memory_space<vmem>>, vector<1x2x128xf32>
    %381 = vector.shape_cast %380 : vector<1x2x128xf32> to vector<2x128xf32>
    %382 = vector.shape_cast %379 : vector<2x128xf32> to vector<1x2x128xf32>
    tpu.vector_store %arg12[%c0_298, %c0_299, %c0_300], %382 {strides = array<i32>} : memref<1x2x128xf32, #tpu.memory_space<vmem>>, vector<1x2x128xf32>,
    return
  }
  func.func @transform_0(%arg0: i32) -> (i32, i32, i32) {
    %c0_i32 = arith.constant 0 : i32
    %c0_i32_0 = arith.constant 0 : i32
    %c0_i32_1 = arith.constant 0 : i32
    return %arg0, %c0_i32, %c0_i32_0 : i32, i32, i32
  }
  func.func @transform_1(%arg0: i32) -> (i32, i32) {
    %c0_i32 = arith.constant 0 : i32
    %c0_i32_0 = arith.constant 0 : i32
    %c0_i32_1 = arith.constant 0 : i32
    return %c0_i32, %c0_i32_0 : i32, i32
  }
  func.func @transform_2(%arg0: i32) -> (i32, i32) {
    %c0_i32 = arith.constant 0 : i32
    %c0_i32_0 = arith.constant 0 : i32
    %c0_i32_1 = arith.constant 0 : i32
    return %c0_i32, %c0_i32_0 : i32, i32
  }
  func.func @transform_3(%arg0: i32) -> (i32, i32) {
    %c0_i32 = arith.constant 0 : i32
    %c0_i32_0 = arith.constant 0 : i32
    %c0_i32_1 = arith.constant 0 : i32
    return %c0_i32, %c0_i32_0 : i32, i32
  }
  func.func @transform_4(%arg0: i32) -> (i32, i32) {
    %c0_i32 = arith.constant 0 : i32
    %c0_i32_0 = arith.constant 0 : i32
    %c0_i32_1 = arith.constant 0 : i32
    return %c0_i32, %c0_i32_0 : i32, i32
  }
  func.func @transform_5(%arg0: i32) -> (i32, i32) {
    %c0_i32 = arith.constant 0 : i32
    %c0_i32_0 = arith.constant 0 : i32
    %c0_i32_1 = arith.constant 0 : i32
    return %c0_i32, %c0_i32_0 : i32, i32
  }
  func.func @transform_6(%arg0: i32) -> (i32, i32) {
    %c0_i32 = arith.constant 0 : i32
    %c0_i32_0 = arith.constant 0 : i32
    %c0_i32_1 = arith.constant 0 : i32
    return %c0_i32, %c0_i32_0 : i32, i32
  }
  func.func @transform_7(%arg0: i32) -> (i32, i32) {
    %c0_i32 = arith.constant 0 : i32
    %c0_i32_0 = arith.constant 0 : i32
    %c0_i32_1 = arith.constant 0 : i32
    return %c0_i32, %c0_i32_0 : i32, i32
  }
  func.func @transform_8(%arg0: i32) -> (i32, i32) {
    %c0_i32 = arith.constant 0 : i32
    %c0_i32_0 = arith.constant 0 : i32
    %c0_i32_1 = arith.constant 0 : i32
    return %c0_i32, %c0_i32_0 : i32, i32
  }
  func.func @transform_9(%arg0: i32) -> (i32, i32) {
    %c0_i32 = arith.constant 0 : i32
    %c0_i32_0 = arith.constant 0 : i32
    %c0_i32_1 = arith.constant 0 : i32
    return %c0_i32, %c0_i32_0 : i32, i32
  }
  func.func @transform_10(%arg0: i32) -> (i32, i32) {
    %c0_i32 = arith.constant 0 : i32
    %c0_i32_0 = arith.constant 0 : i32
    %c0_i32_1 = arith.constant 0 : i32
    return %c0_i32, %c0_i32_0 : i32, i32
  }
  func.func @transform_11(%arg0: i32) -> (i32, i32, i32) {
    %c0_i32 = arith.constant 0 : i32
    %c0_i32_0 = arith.constant 0 : i32
    %c0_i32_1 = arith.constant 0 : i32
    return %arg0, %c0_i32, %c0_i32_0 : i32, i32, i32
  }
}

</mosaic_0001>

<bundles_post_ra>
// kernel: tpu_custom_call.1
= control target key start
LH: loop header
LB: loop body
LE: loop exit
PB: predicated region body
PF: predicated region fallthrough
CT: control target
= control target key end

     0   :  { %s9861_s0 = inlined_call_operand.vmem [shape: bf16[4,256,36], index: 0, kind: input, shape index: {}]   ;;  %s9862_s1 = inlined_call_operand.vmem [shape: bf16[36,32], index: 1, kind: input, shape index: {}]   ;;  %s9863_s2 = inlined_call_operand.vmem [shape: f32[1,32], index: 2, kind: input, shape index: {}]   ;;  %s9864_s3 = inlined_call_operand.vmem [shape: f32[1,32], index: 3, kind: input, shape index: {}]   ;;  %s9865_s4 = inlined_call_operand.vmem [shape: bf16[288,64], index: 4, kind: input, shape index: {}]   ;;  %s9866_s5 = inlined_call_operand.vmem [shape: f32[1,64], index: 5, kind: input, shape index: {}]   ;;  %s9867_s6 = inlined_call_operand.vmem [shape: f32[1,64], index: 6, kind: input, shape index: {}]   ;;  %s9868_s7 = inlined_call_operand.hbm [shape: bf16[1024,256], index: 7, kind: input, shape index: {}]   ;;  %s9869_s8 = inlined_call_operand.vmem [shape: f32[1,256], index: 8, kind: input, shape index: {}]   ;;  %s9870_s9 = inlined_call_operand.vmem [shape: bf16[256,128], index: 9, kind: input, shape index: {}]   ;;  %s9871_s10 = inlined_call_operand.vmem [shape: f32[1,128], index: 10, kind: input, shape index: {}]   ;;  %s9872_s11 = inlined_call_operand.hbm [shape: f32[2,2,128], index: 11, kind: output, shape index: {}]  }
   0x1   :  { %9873 = sst [smem:[#allocation13_spill]] %s9861_s0 }
   0x2   :  { %9874 = sst [smem:[#allocation14_spill]] %s9862_s1 }
   0x3   :  { %16 = vsyncpa [#allocation8], 0 }
   0x4   :  { %17 = vsyncpa [#allocation9], 0 }
   0x5   :  { %19 = vsyncpa [#allocation9 + $0x1], 0  ;;  %s8223_s17 = smov 0   ;;  %s8225_s18 = smov 0  }
   0x6   :  { %s8227_s19 = smov 0   ;;  %s8229_s20 = smov 0  }
   0x7 LB: > { %s8244_s21 = sadd.s32 4294967295, %s8152_s20   ;;  %s6443_s22 = sadd.s32 4294967294, %s8152_s20   ;;  %s8152_s20 = sphi %s8229_s20, %s9885_s20   ;;  %s8148_s19 = sphi %s8227_s19, %s9884_s19   ;;  %s8144_s18 = sphi %s8225_s18, %s9883_s18   ;;  %s8140_s17 = sphi %s8223_s17, %s9882_s17  }
   0x8   : > { %s8248_s23 = sadd.s32 1, %s8152_s20   ;;  %s268_s24 = sadd.s32 1, %s8148_s19 }
   0x9   : > { %s265_s25 = ssub.s32 %s8152_s20, %s8248_s23  ;;  %p278_p0 = scmp.ne.s32.totalorder %s8148_s19, %s8144_s18 }
   0xa   : > { %p266_p1 = scmp.eq.s32.totalorder %s265_s25, 0  ;;  %p279_p2 = scmp.eq.s32.totalorder %s8244_s21, 1 }
   0xb   : > { %p284_p3 = scmp.ne.s32.totalorder %s8144_s18, %s8140_s17  ;;  %p285_p4 = scmp.eq.s32.totalorder %s6443_s22, 1 }
   0xc   : > { %s8259_s26 = scalar_select %p266_p1, %s8148_s19, %s268_s24  }
   0xd   : > { %p8261_p5 = por %p279_p2, %p278_p0  ;;  %p8265_p6 = por %p285_p4, %p284_p3 }
   0xe   : > { %p6444_p7 = scmp.ge.s32.totalorder %s8152_s20, 1  ;;  %p292_p8 = scmp.lt.s32.totalorder %s8152_s20, 3 }
   0xf   : > { %s9876_s28 = scalar_select %p8265_p6, 1, 0 }
  0x10   : > { %p7694_p9 = scmp.eq.s32.totalorder %s8244_s21, 0  ;;  %p8272_p10 = pnand %p6444_p7, %p292_p8 }
  0x11   : > { %s8154_s30 = smov [#allocation7]  }
  0x12   : > { %s322_s12 = sshll.u32 %s8154_s30, 4  ;;  %p7686_p11 = pneg %p8272_p10  ;;  %s323_s12 = int_to_ptr.vmem [resolvable:$true] %s322_s12 }
  0x13   : > { %s8073_s13 = scalar_lea.vmem %s323_s12, 16384  ;;  %p8081_p3 = scmp.lt.s32.totalorder %s323_s12, %s323_s12 }
  0x14   : > { %p7687_p12 = pnand %p7694_p9, %p7686_p11  ;;  %p8074_p0 = scmp.ne.s32.totalorder %s323_s12, %s8073_s13 }
  0x15   : > { %p8082_p4 = scmp.lt.s32.totalorder %s8073_s13, %s8073_s13 }
  0x16   : > { %p8064_p13 = pneg %p7687_p12 }
  0x17   : > { %p8083_p6 = por %p8082_p4, %p8081_p3 }
  0x18   : > { %p8076_p1 = pnand %p8074_p0, %p8064_p13 }
  0x1a   : > { %p8077_p2 = pneg %p8076_p1 }
  0x1c   : > { %p8084_p7 = pnand %p8083_p6, %p8077_p2 }
  0x1e   : > { %8087 = shalt.err (!%p8084_p7)
}
  0x1f   : > { %s8155_s14 = smov 128   ;;  %s8156_s15 = smov 8  }
  0x20   : > { %7689 = dma.hbm_to_vmem [thread:$0]  (!%p7687_p12), %s9868_s7, 16384, %s323_s12, [#allocation8], %s8155_s14, %s8155_s14, %s8156_s15  }
  0x21   : > { %357 = sbr.rel (%p8272_p10) target bundleno = 1601 (0x641), region = 64 }
  0x26   : > { %8131 = dma.done.wait (%p7694_p9), [#allocation8], 16384  }
  0x27   : > { %8133 = vsyncadd (%p7694_p9), [#allocation8], 4294950912  ;;  %s6450_s24 = sshll.u32 %s8244_s21, 1  ;;  %vm862_vm0 = vcmask 261120   ;;  %v8157_v0 = vmov 0.0   ;;  %vm587_vm1 = vcmask 1041408  }
  0x28   : > { %p8292_p6 = scmp.lt.s32.totalorder %s6450_s24, 3  ;;  %1388 = vst.msk [vmem:[#allocation3 + $0x30] sm:$0xff] %vm862_vm0, %v8157_v0  ;;  %1382 = vst.msk [vmem:[#allocation3] sm:$0xff] %vm862_vm0, %v8157_v0  ;;  %vm538_vm2 = vcmask 293888   ;;  %s9879_s1 = sld [smem:[#allocation14_spill]]  ;;  %vm1697_vm3 = vcmask 257024  }
  0x29   : > { %1383 = vst.msk [vmem:[#allocation3 + $0x8] sm:$0xff] %vm862_vm0, %v8157_v0  ;;  %1384 = vst.msk [vmem:[#allocation3 + $0x10] sm:$0xff] %vm862_vm0, %v8157_v0  ;;  %s9880_s0 = sld [smem:[#allocation13_spill]]  ;;  %s8158_s16 = smov 96   ;;  %vm1826_vm4 = vcmask 519424   ;;  %vm1955_vm5 = vcmask 781824  }
  0x2a   : > { %1385 = vst.msk [vmem:[#allocation3 + $0x18] sm:$0xff] %vm862_vm0, %v8157_v0  ;;  %1386 = vst.msk [vmem:[#allocation3 + $0x20] sm:$0xff] %vm862_vm0, %v8157_v0  ;;  %s9887_s24 = smov (!%p8292_p6, %s6450_s24), 3  ;;  %s8160_s25 = smov 64   ;;  %vm2084_vm6 = vcmask 1044224   ;;  %vm4661_vm7 = vcmask 523264  }
  0x2b   : > { %1387 = vst.msk [vmem:[#allocation3 + $0x28] sm:$0xff] %vm862_vm0, %v8157_v0  ;;  %1389 = vst.msk [vmem:[#allocation3 + $0x38] sm:$0xff] %vm862_vm0, %v8157_v0  ;;  %s7080_s29 = sshll.u32 %s9887_s24, 7  ;;  %s8159_s24 = smov 32   ;;  %vm4713_vm8 = vcmask 516096   ;;  %vm4753_vm9 = vcmask 1040896  }
  0x2c   : > { %1390 = vst.msk [vmem:[#allocation3 + $0x40] sm:$0xff] %vm862_vm0, %v8157_v0  ;;  %1391 = vst.msk [vmem:[#allocation3 + $0x48] sm:$0xff] %vm862_vm0, %v8157_v0  ;;  %s395_s12 = sand.u32 1, %s8144_s18   ;;  %s7077_s15 = sshll.u32 %s8244_s21, 5 }
  0x2d   : > { %1392 = vst.msk [vmem:[#allocation3 + $0x50] sm:$0xff] %vm862_vm0, %v8157_v0  ;;  %1393 = vst.msk [vmem:[#allocation3 + $0x58] sm:$0xff] %vm862_vm0, %v8157_v0  ;;  %s6449_s13 = sshll.u32 %s395_s12, 1  ;;  %s8162_s21 = smov [#allocation10]  }
  0x2e   : > { %1394 = vst.msk [vmem:[#allocation3 + $0x60] sm:$0xff] %vm862_vm0, %v8157_v0  ;;  %1395 = vst.msk [vmem:[#allocation3 + $0x68] sm:$0xff] %vm862_vm0, %v8157_v0  ;;  %v7737_v1 = vld [vmem:[%s9879_s1 + $0x10] ss:$0 sps:$4 sm:$0x33]   ;;  %v7738_v2 = vld [vmem:[%s9879_s1 + $0x8] sm:$0xff]  }
  0x2f   : > { %1396 = vst.msk [vmem:[#allocation3 + $0x70] sm:$0xff] %vm862_vm0, %v8157_v0  ;;  %1397 = vst.msk [vmem:[#allocation3 + $0x78] sm:$0xff] %vm862_vm0, %v8157_v0  ;;  %s8353_s22 = scalar_lea.vmem %s9880_s0, %s7080_s29  ;;  %7677 = vmatprep.subr.msk.bf16.mxu0 %vm587_vm1, %v7737_v1  ;;  %7678 = vmatprep.subr.msk.bf16.mxu1 %vm587_vm1, %v7737_v1  ;;  %v589_v3 = vsel %vm587_vm1, %v7737_v1, 0  ;;  %v7739_v4 = vld [vmem:[%s9879_s1] sm:$0xff]   ;;  %v7757_v15 = vld [vmem:[%s9879_s1 + $0x8] sm:$0xff]   ;;  %s397_s29 = scalar_lea.vmem [#allocation10], %s6449_s13 }
  0x30   : > { %1398 = vst.msk [vmem:[#allocation3 + $0x80] sm:$0xff] %vm862_vm0, %v8157_v0  ;;  %1399 = vst.msk [vmem:[#allocation3 + $0x88] sm:$0xff] %vm862_vm0, %v8157_v0  ;;  %7560 = vmatpush3.bf16.msra.mxu0 %v589_v3  ;;  %7674 = vmatpush3.bf16.msra.mxu1 %v589_v3  ;;  %v7740_v5 = vld [vmem:[%s8353_s22] sm:$0xff]   ;;  %v7742_v7 = vld [vmem:[%s8353_s22 + $0x8] sm:$0xff]   ;;  %s6359_s0 = scalar_lea.sflag [#allocation9], %s395_s12  ;;  %s8092_s13 = sshll.u32 %s8162_s21, 4  ;;  %s8093_s13 = int_to_ptr.vmem [resolvable:$false] %s8092_s13 }
  0x31   : > { %1400 = vst.msk [vmem:[#allocation3 + $0x90] sm:$0xff] %vm862_vm0, %v8157_v0  ;;  %1401 = vst.msk [vmem:[#allocation3 + $0x98] sm:$0xff] %vm862_vm0, %v8157_v0  ;;  %7561 = vmatprep.subr.bf16.mxu0 %v7738_v2  ;;  %7672 = vmatprep.subr.bf16.mxu1 %v7738_v2  ;;  %v7741_v6 = vld [vmem:[%s8353_s22 + $0x60] sm:$0xff]   ;;  %v7743_v8 = vld [vmem:[%s8353_s22 + $0x68] sm:$0xff]  }
  0x32   : > { %1402 = vst.msk [vmem:[#allocation3 + $0xa0] sm:$0xff] %vm862_vm0, %v8157_v0  ;;  %1403 = vst.msk [vmem:[#allocation3 + $0xa8] sm:$0xff] %vm862_vm0, %v8157_v0  ;;  %7565 = vmatprep.mubr.msk.bf16.mxu0 %vm538_vm2, %v7740_v5  ;;  %7589 = vmatprep.mubr.msk.bf16.mxu1 %vm538_vm2, %v7741_v6  ;;  %v7744_v9 = vld [vmem:[%s8353_s22 + $0x10] sm:$0xff]   ;;  %v7746_v11 = vld [vmem:[%s8353_s22 + $0x18] sm:$0xff]  }
  0x33   : > { %1404 = vst.msk [vmem:[#allocation3 + $0xb0] sm:$0xff] %vm862_vm0, %v8157_v0  ;;  %1405 = vst.msk [vmem:[#allocation3 + $0xb8] sm:$0xff] %vm862_vm0, %v8157_v0  ;;  %v7745_v10 = vld [vmem:[%s8353_s22 + $0x70] sm:$0xff]   ;;  %v7747_v12 = vld [vmem:[%s8353_s22 + $0x78] sm:$0xff]  }
  0x34   : > { %1406 = vst.msk [vmem:[#allocation3 + $0xc0] sm:$0xff] %vm862_vm0, %v8157_v0  ;;  %1407 = vst.msk [vmem:[#allocation3 + $0xc8] sm:$0xff] %vm862_vm0, %v8157_v0  ;;  %7562 = vmatpush3.bf16.msra.mxu0 %v7738_v2  ;;  %7675 = vmatpush3.bf16.msra.mxu1 %v7738_v2  ;;  %v7748_v13 = vld [vmem:[%s8353_s22 + $0x20] sm:$0xff]   ;;  %v7756_v14 = vld [vmem:[%s9879_s1 + $0x10] ss:$0 sps:$4 sm:$0x33]  }
  0x35   : > { %1408 = vst.msk [vmem:[#allocation3 + $0xd0] sm:$0xff] %vm862_vm0, %v8157_v0  ;;  %1409 = vst.msk [vmem:[#allocation3 + $0xd8] sm:$0xff] %vm862_vm0, %v8157_v0  ;;  %7563 = vmatprep.subr.bf16.mxu0 %v7739_v4  ;;  %7673 = vmatprep.subr.bf16.mxu1 %v7739_v4  ;;  %v1077_v16 = vsel %vm587_vm1, %v7756_v14, 0  ;;  %v7759_v17 = vld [vmem:[%s8353_s22 + $0x80] sm:$0xff]   ;;  %v2454_v19 = vld [vmem:[#allocation3 + $0x30] sm:$0xff] }
  0x36   : > { %1410 = vst.msk [vmem:[#allocation3 + $0xe0] sm:$0xff] %vm862_vm0, %v8157_v0  ;;  %1411 = vst.msk [vmem:[#allocation3 + $0xe8] sm:$0xff] %vm862_vm0, %v8157_v0  ;;  %v7758_v18 = vld [vmem:[%s9879_s1] sm:$0xff]   ;;  %v7749_v21 = vld [vmem:[%s8353_s22 + $0x28] sm:$0xff]   ;;  %v7194_v22 = vpack.c.bf16 %v2454_v19, %v2454_v19 }
  0x37   : > { %1412 = vst.msk [vmem:[#allocation3 + $0xf0] sm:$0xff] %vm862_vm0, %v8157_v0  ;;  %1413 = vst.msk [vmem:[#allocation3 + $0xf8] sm:$0xff] %vm862_vm0, %v8157_v0  ;;  %v1717_v20 = vld [vmem:[#allocation3 + $0x20] sm:$0xff]  ;;  %v7750_v23 = vld [vmem:[%s8353_s22 + $0x30] sm:$0xff]  }
  0x38   : > { %1414 = vst.msk [vmem:[#allocation3 + $0x100] sm:$0xff] %vm862_vm0, %v8157_v0  ;;  %1415 = vst.msk [vmem:[#allocation3 + $0x108] sm:$0xff] %vm862_vm0, %v8157_v0  ;;  %7564 = vmatpush3.bf16.msra.mxu0 %v7739_v4  ;;  %7676 = vmatpush3.bf16.msra.mxu1 %v7739_v4  ;;  %v7100_v24 = vpack.c.bf16 %v1717_v20, %v1717_v20  ;;  %v2456_v25 = vld [vmem:[#allocation3 + $0x40] sm:$0xff]  ;;  %v7760_v26 = vld [vmem:[%s8353_s22 + $0x88] sm:$0xff]  }
  0x39   : > { %1416 = vst.msk [vmem:[#allocation3 + $0x110] sm:$0xff] %vm862_vm0, %v8157_v0  ;;  %1417 = vst.msk [vmem:[#allocation3 + $0x118] sm:$0xff] %vm862_vm0, %v8157_v0  ;;  %7679 = vmatprep.subr.msk.bf16.mxu1 %vm587_vm1, %v7756_v14  ;;  %2519 = vrot.lane.b32.xlu1 %v7194_v22, %s8158_s16  ;;  %v7761_v27 = vld [vmem:[%s8353_s22 + $0x90] sm:$0xff]   ;;  %v7196_v28 = vpack.c.bf16 %v2456_v25, %v2456_v25  ;;  %v7751_v29 = vld [vmem:[%s8353_s22 + $0x38] sm:$0xff]  }
  0x3a   : > { %1418 = vst.msk [vmem:[#allocation3 + $0x120] sm:$0xff] %vm862_vm0, %v8157_v0  ;;  %1419 = vst.msk [vmem:[#allocation3 + $0x128] sm:$0xff] %vm862_vm0, %v8157_v0  ;;  %v7752_v30 = vld [vmem:[%s8353_s22 + $0x40] sm:$0xff]   ;;  %v2458_v31 = vld [vmem:[#allocation3 + $0x50] sm:$0xff] }
  0x3b   : > { %1420 = vst.msk [vmem:[#allocation3 + $0x130] sm:$0xff] %vm862_vm0, %v8157_v0  ;;  %1421 = vst.msk [vmem:[#allocation3 + $0x138] sm:$0xff] %vm862_vm0, %v8157_v0  ;;  %7566 = vmatmul.mubr.msk.bf16.vlgmr.msra.gmra.mxu0 %vm538_vm2, %v7742_v7  ;;  %7590 = vmatmul.mubr.msk.bf16.vlgmr.msra.gmra.mxu1 %vm538_vm2, %v7743_v8  ;;  %v7762_v32 = vld [vmem:[%s8353_s22 + $0x98] sm:$0xff]   ;;  %v7763_v33 = vld [vmem:[%s8353_s22 + $0xa0] sm:$0xff]   ;;  %v7198_v35 = vpack.c.bf16 %v2458_v31, %v2458_v31 }
  0x3c   : > { %1422 = vst.msk [vmem:[#allocation3 + $0x140] sm:$0xff] %vm862_vm0, %v8157_v0  ;;  %1423 = vst.msk [vmem:[#allocation3 + $0x148] sm:$0xff] %vm862_vm0, %v8157_v0  ;;  %7569 = vmatprep.mubr.msk.bf16.mxu0 %vm538_vm2, %v7744_v9  ;;  %7593 = vmatprep.mubr.msk.bf16.mxu1 %vm538_vm2, %v7745_v10  ;;  %v7753_v34 = vld [vmem:[%s8353_s22 + $0x48] sm:$0xff]   ;;  %v7754_v36 = vld [vmem:[%s8353_s22 + $0x50] sm:$0xff]  }
  0x3d   : > { %1424 = vst.msk [vmem:[#allocation3 + $0x150] sm:$0xff] %vm862_vm0, %v8157_v0  ;;  %1425 = vst.msk [vmem:[#allocation3 + $0x158] sm:$0xff] %vm862_vm0, %v8157_v0  ;;  %7598 = vmatpush3.bf16.msra.mxu1 %v1077_v16  ;;  %1784 = vrot.lane.b32.xlu1 %v7100_v24, %s8159_s24  ;;  %v2460_v37 = vld [vmem:[#allocation3 + $0x60] sm:$0xff]  ;;  %v7764_v38 = vld [vmem:[%s8353_s22 + $0xa8] sm:$0xff]  }
  0x3e   : > { %7599 = vmatprep.subr.bf16.mxu1 %v7757_v15  ;;  %v7765_v39 = vld [vmem:[%s8353_s22 + $0xb0] sm:$0xff]   ;;  %v7755_v40 = vld [vmem:[%s8353_s22 + $0x58] sm:$0xff]   ;;  %v7200_v41 = vpack.c.bf16 %v2460_v37, %v2460_v37  ;;  %v7767_v44 = vld [vmem:[%s8353_s22 + $0xc0] sm:$0xff]  }
  0x3f   : > { %v2462_v42 = vld [vmem:[#allocation3 + $0x70] sm:$0xff]  ;;  %v7766_v43 = vld [vmem:[%s8353_s22 + $0xb8] sm:$0xff]   ;;  %v2464_v46 = vld [vmem:[#allocation3 + $0x80] sm:$0xff] }
  0x40   : > { %v7202_v45 = vpack.c.bf16 %v2462_v42, %v2462_v42  ;;  %v7768_v47 = vld [vmem:[%s8353_s22 + $0xc8] sm:$0xff]   ;;  %v7204_v48 = vpack.c.bf16 %v2464_v46, %v2464_v46  ;;  %v2466_v49 = vld [vmem:[#allocation3 + $0x90] sm:$0xff]  ;;  %v2340_v52 = vld [vmem:[#allocation3 + $0x9f] sm:$0xff] }
  0x41   : > { %7600 = vmatpush3.bf16.msra.mxu1 %v7757_v15  ;;  %2523 = vrot.lane.b32.xlu1 %v7196_v28, %s8158_s16  ;;  %v7206_v50 = vpack.c.bf16 %v2466_v49, %v2466_v49  ;;  %v2212_v51 = vld [vmem:[#allocation3 + $0x91] sm:$0xff]  ;;  %v2468_v54 = vld [vmem:[#allocation3 + $0xa0] sm:$0xff]  ;;  %v1714_v55 = vld [vmem:[#allocation3 + $0x8] sm:$0xff]  ;;  %v7192_v56 = vpack.c.bf16 %v2340_v52, %v2340_v52 }
  0x42   : > { %7601 = vmatprep.subr.bf16.mxu1 %v7758_v18  ;;  %v7176_v53 = vpack.c.bf16 %v2212_v51, %v2212_v51  ;;  %v7097_v57 = vpack.c.bf16 %v1714_v55, %v1714_v55  ;;  %v2774_v58 = vld [vmem:[#allocation3 + $0xc0] sm:$0xff]  ;;  %v1715_v59 = vld [vmem:[#allocation3 + $0x10] sm:$0xff]  ;;  %v7208_v60 = vpack.c.bf16 %v2468_v54, %v2468_v54  ;;  %v2467_v8 = vld [vmem:[#allocation3 + $0x98] sm:$0xff] }
  0x43   : > { %7570 = vmatmul.mubr.msk.bf16.gmra.mxu0 %vm538_vm2, %v7746_v11  ;;  %7594 = vmatmul.mubr.msk.bf16.gmra.mxu1 %vm538_vm2, %v7747_v12  ;;  %v7098_v61 = vpack.c.bf16 %v1715_v59, %v1715_v59  ;;  %v3510_v62 = vld [vmem:[#allocation3 + $0xe0] sm:$0xff]  ;;  %v7242_v63 = vpack.c.bf16 %v2774_v58, %v2774_v58  ;;  %v1843_v0 = vld [vmem:[#allocation3 + $0x9] sm:$0xff]  ;;  %v2339_v4 = vld [vmem:[#allocation3 + $0x97] sm:$0xff]  ;;  %v7207_v9 = vpack.c.bf16 %v2467_v8, %v2467_v8 }
  0x44   : > { %7573 = vmatprep.mubr.msk.bf16.mxu0 %vm538_vm2, %v7748_v13  ;;  %7603 = vmatprep.mubr.msk.bf16.mxu1 %vm538_vm2, %v7759_v17  ;;  %v7113_v1 = vpack.c.bf16 %v1843_v0, %v1843_v0  ;;  %v7338_v2 = vpack.c.bf16 %v3510_v62, %v3510_v62  ;;  %v2776_v3 = vld [vmem:[#allocation3 + $0xd0] sm:$0xff]  ;;  %v7191_v5 = vpack.c.bf16 %v2339_v4, %v2339_v4  ;;  %v2773_v11 = vld [vmem:[#allocation3 + $0xb8] sm:$0xff]  ;;  %v3514_v13 = vld [vmem:[#allocation3 + $0x100] sm:$0xff] }
  0x45   : > { %7602 = vmatpush3.bf16.msra.mxu1 %v7758_v18  ;;  %1788 = vrot.lane.b32.xlu1 %v7194_v22, %s8159_s24  ;;  %v7244_v6 = vpack.c.bf16 %v2776_v3, %v2776_v3  ;;  %v3512_v7 = vld [vmem:[#allocation3 + $0xf0] sm:$0xff]  ;;  %v7241_v12 = vpack.c.bf16 %v2773_v11, %v2773_v11  ;;  %v2901_v14 = vld [vmem:[#allocation3 + $0xb9] sm:$0xff]  ;;  %v7342_v16 = vpack.c.bf16 %v3514_v13, %v3514_v13  ;;  %v7772_v22 = vld [vmem:[%s8353_s22 + $0xe8] sm:$0xff]  }
  0x46   : > { %1778 = vrot.lane.b32.xlu0 %v7097_v57, %s8159_s24  ;;  %v7340_v10 = vpack.c.bf16 %v3512_v7, %v3512_v7  ;;  %v7257_v15 = vpack.c.bf16 %v2901_v14, %v2901_v14  ;;  %v7769_v17 = vld [vmem:[%s8353_s22 + $0xd0] sm:$0xff]   ;;  %v7770_v18 = vld [vmem:[%s8353_s22 + $0xd8] sm:$0xff]   ;;  %v8513_v54 = vld [vmem:[%s9863_s2] ss:$0 sm:$0xff] }
  0x47   : > { %v3516_v19 = vld [vmem:[#allocation3 + $0x110] sm:$0xff]  ;;  %v8519_v57 = vld [vmem:[%s9864_s3] ss:$0 sm:$0xff] }
  0x48   : > { %v7344_v20 = vpack.c.bf16 %v3516_v19, %v3516_v19  ;;  %v7773_v25 = vld [vmem:[%s8353_s22 + $0xf0] sm:$0xff]  }
  0x49   : > { %2527 = vrot.lane.b32.xlu1 %v7198_v35, %s8158_s16  ;;  %v1618_v52 = vld [vmem:[#allocation3 + $0xf] sm:$0xff] }
  0x4a   : > { %1780 = vrot.lane.b32.xlu0 %v7098_v61, %s8159_s24 }
  0x4b   : > { %7574 = vmatmul.mubr.msk.bf16.gmra.mxu0 %vm538_vm2, %v7749_v21  ;;  %7604 = vmatmul.mubr.msk.bf16.vlgmr.msra.gmra.mxu1 %vm538_vm2, %v7760_v26  ;;  %v7771_v21 = vld [vmem:[%s8353_s22 + $0xe0] sm:$0xff]   ;;  %v7774_v26 = vld [vmem:[%s8353_s22 + $0xf8] sm:$0xff]   ;;  %s8094_s22 = scalar_lea.vmem %s8093_s13, 64 }
  0x4c   : > { %7577 = vmatprep.mubr.msk.bf16.mxu0 %vm538_vm2, %v7750_v23  ;;  %7607 = vmatprep.mubr.msk.bf16.mxu1 %vm538_vm2, %v7761_v27  ;;  %v7775_v27 = vld [vmem:[%s9865_s4 + $0x88] sm:$0xff]  }
  0x4d   : > { %1792 = vrot.lane.b32.xlu1 %v7196_v28, %s8159_s24  ;;  %7635 = vmatprep.subr.bf16.mxu1 %v7775_v27 }
  0x4e   : > { %1907 = vrot.lane.b32.xlu0 %v7113_v1, %s8160_s25  ;;  %7636 = vmatpush3.bf16.msra.mxu1 %v7775_v27 }
  0x51   : > { %2531 = vrot.lane.b32.xlu1 %v7200_v41, %s8158_s16 }
  0x52   : > { %2417 = vrot.lane.b32.xlu0 %v7191_v5, %s8160_s25 }
  0x53   : > { %7578 = vmatmul.mubr.msk.bf16.gmra.mxu0 %vm538_vm2, %v7751_v29  ;;  %7608 = vmatmul.mubr.msk.bf16.gmra.mxu1 %vm538_vm2, %v7762_v32  ;;  %v7776_v29 = vld [vmem:[%s9865_s4 + $0x80] sm:$0xff]  }
  0x54   : > { %7581 = vmatprep.mubr.msk.bf16.mxu0 %vm538_vm2, %v7752_v30  ;;  %7611 = vmatprep.mubr.msk.bf16.mxu1 %vm538_vm2, %v7763_v33 }
  0x55   : > { %1796 = vrot.lane.b32.xlu1 %v7198_v35, %s8159_s24  ;;  %7637 = vmatprep.subr.bf16.mxu1 %v7776_v29 }
  0x56   : > { %2545 = vrot.lane.b32.xlu0 %v7207_v9, %s8158_s16  ;;  %7638 = vmatpush3.bf16.msra.mxu1 %v7776_v29 }
  0x59   : > { %2535 = vrot.lane.b32.xlu1 %v7202_v45, %s8158_s16 }
  0x5a   : > { %2837 = vrot.lane.b32.xlu0 %v7241_v12, %s8159_s24 }
  0x5b   : > { %7582 = vmatmul.mubr.msk.bf16.gmra.mxu0 %vm538_vm2, %v7753_v34  ;;  %7612 = vmatmul.mubr.msk.bf16.gmra.mxu1 %vm538_vm2, %v7764_v38  ;;  %v2594_v34 = vld [vmem:[#allocation3 + $0x91] sm:$0xff] }
  0x5c   : > { %7585 = vmatprep.mubr.msk.bf16.mxu0 %vm538_vm2, %v7754_v36  ;;  %7615 = vmatprep.mubr.msk.bf16.mxu1 %vm538_vm2, %v7765_v39  ;;  %v7222_v36 = vpack.c.bf16 %v2594_v34, %v2594_v34  ;;  %v2116_v39 = vld [vmem:[#allocation3 + $0x90] sm:$0xff] }
  0x5d   : > { %1800 = vrot.lane.b32.xlu1 %v7200_v41, %s8159_s24 }
  0x5e   : > { %2965 = vrot.lane.b32.xlu0 %v7257_v15, %s8160_s25  ;;  %2674 = vst.msk [vmem:[#allocation4 + $0xa4] sm:$0xf] %vm1697_vm3, %v7222_v36 }
  0x61   : > { %2539 = vrot.lane.b32.xlu1 %v7204_v48, %s8158_s16 }
  0x63   : > { %7586 = vmatmul.mubr.msk.bf16.gmra.mxu0 %vm538_vm2, %v7755_v40  ;;  %7616 = vmatmul.mubr.msk.bf16.gmra.mxu1 %vm538_vm2, %v7766_v43  ;;  %v7160_v40 = vpack.c.bf16 %v2116_v39, %v2116_v39 }
  0x64   : > { %7619 = vmatprep.mubr.msk.bf16.mxu1 %vm538_vm2, %v7767_v44  ;;  %v2678_v44 = vld [vmem:[#allocation3 + $0xbf] sm:$0xff] }
  0x65   : > { %1804 = vrot.lane.b32.xlu1 %v7202_v45, %s8159_s24  ;;  %2196 = vst.msk [vmem:[#allocation4 + $0xb8] sm:$0xf] %vm1697_vm3, %v7160_v40  ;;  %v7226_v45 = vpack.c.bf16 %v2678_v44, %v2678_v44 }
  0x67   : > { %2758 = vst.msk [vmem:[#allocation4 + $0xcc] sm:$0xf] %vm1697_vm3, %v7226_v45 }
  0x69   : > { %2543 = vrot.lane.b32.xlu1 %v7206_v50, %s8158_s16 }
  0x6b   : > { %7620 = vmatmul.mubr.msk.bf16.gmra.mxu1 %vm538_vm2, %v7768_v47 }
  0x6c   : > { %7623 = vmatprep.mubr.msk.bf16.mxu1 %vm538_vm2, %v7769_v17 }
  0x6d   : > { %1808 = vrot.lane.b32.xlu1 %v7204_v48, %s8159_s24  ;;  %v1617_v48 = vld [vmem:[#allocation3 + $0x7] sm:$0xff] }
  0x6e   : > { %v7081_v49 = vpack.c.bf16 %v1617_v48, %v1617_v48 }
  0x70   : > { %1698 = vst.msk [vmem:[#allocation4] sm:$0xf] %vm1697_vm3, %v7081_v49 }
  0x71   : > { %2291 = vrot.lane.b32.xlu1 %v7176_v53, %s8159_s24  ;;  %v7082_v53 = vpack.c.bf16 %v1618_v52, %v1618_v52 }
  0x73   : > { %7624 = vmatmul.mubr.msk.bf16.gmra.mxu1 %vm538_vm2, %v7770_v18  ;;  %1699 = vst.msk [vmem:[#allocation4 + $0xc] sm:$0xf] %vm1697_vm3, %v7082_v53 }
  0x74   : > { %7627 = vmatprep.mubr.msk.bf16.mxu1 %vm538_vm2, %v7771_v21 }
  0x75   : > { %2419 = vrot.lane.b32.xlu1 %v7192_v56, %s8160_s25 }
  0x79   : > { %2547 = vrot.lane.b32.xlu1 %v7208_v60, %s8158_s16 }
  0x7b   : > { %7628 = vmatmul.mubr.msk.bf16.gmra.mxu1 %vm538_vm2, %v7772_v22 }
  0x7c   : > { %7631 = vmatprep.mubr.msk.bf16.mxu1 %vm538_vm2, %v7773_v25 }
  0x7d   : > { %2839 = vrot.lane.b32.xlu1 %v7242_v63, %s8159_s24 }
  0x81   : > { %3575 = vrot.lane.b32.xlu1 %v7338_v2, %s8158_s16 }
  0x83   : > { %7632 = vmatmul.mubr.msk.bf16.gmra.mxu1 %vm538_vm2, %v7774_v26 }
  0x85   : > { %2843 = vrot.lane.b32.xlu1 %v7244_v6, %s8159_s24 }
  0x89   : > { %3579 = vrot.lane.b32.xlu1 %v7340_v10, %s8158_s16 }
  0x8d   : > { %2847 = vrot.lane.b32.xlu1 %v7338_v2, %s8159_s24 }
  0x91   : > { %3583 = vrot.lane.b32.xlu1 %v7342_v16, %s8158_s16 }
  0x95   : > { %2851 = vrot.lane.b32.xlu1 %v7340_v10, %s8159_s24 }
  0x99   : > { %3587 = vrot.lane.b32.xlu1 %v7344_v20, %s8158_s16 }
  0x9d   : > { %2855 = vrot.lane.b32.xlu1 %v7342_v16, %s8159_s24 }
  0xab   : > { %v8465_v23 = vpop.permute.xlu1 %2519 }
  0xaf   : > { %v8467_v24 = vpop.permute.xlu1 %1784 }
  0xb3   : > { %v8476_v28 = vpop.permute.xlu1 %2523 }
  0xb7   : > { %v8481_v30 = vpop.permute.xlu1 %1788 }
  0xb8   : > { %v1779_v50 = vpop.permute.xlu0 %1778 }
  0xb9   : > { %1827 = vst.msk [vmem:[#allocation4] sm:$0xf] %vm1826_vm4, %v1779_v50 }
  0xbb   : > { %v8483_v31 = vpop.permute.xlu1 %2527 }
  0xbc   : > { %v1781_v55 = vpop.permute.xlu0 %1780 }
  0xbd   : > { %1828 = vst.msk [vmem:[#allocation4 + $0xc] sm:$0xf] %vm1826_vm4, %v1781_v55 }
  0xbf   : > { %v8485_v32 = vpop.permute.xlu1 %1792 }
  0xc0   : > { %v1908_v11 = vpop.permute.xlu0 %1907 }
  0xc1   : > { %1956 = vst.msk [vmem:[#allocation4] sm:$0xf] %vm1955_vm5, %v1908_v11 }
  0xc3   : > { %v8487_v33 = vpop.permute.xlu1 %2531 }
  0xc4   : > { %v8547_v36 = vpop.permute.xlu0 %2417 }
  0xc7   : > { %v8489_v35 = vpop.permute.xlu1 %1796 }
  0xcb   : > { %v8492_v37 = vpop.permute.xlu1 %2535 }
  0xcf   : > { %v8494_v38 = vpop.permute.xlu1 %1800 }
  0xd3   : > { %v8497_v41 = vpop.permute.xlu1 %2539 }
  0xd7   : > { %v8499_v42 = vpop.permute.xlu1 %1804 }
  0xdb   : > { %v8501_v43 = vpop.permute.xlu1 %2543 }
  0xdf   : > { %v8504_v46 = vpop.permute.xlu1 %1808 }
  0xe3   : > { %v2292_v47 = vpop.permute.xlu1 %2291 }
  0xe4   : > { %2324 = vst.msk [vmem:[#allocation4 + $0xb8] sm:$0xf] %vm1826_vm4, %v2292_v47 }
  0xe7   : > { %v2420_v51 = vpop.permute.xlu1 %2419 }
  0xe8   : > { %2452 = vst.msk [vmem:[#allocation4 + $0xb8] sm:$0xf] %vm1955_vm5, %v2420_v51 }
  0xeb   : > { %v2548_v61 = vpop.permute.xlu1 %2547 }
  0xec   : > { %2580 = vst.msk [vmem:[#allocation4 + $0xb8] sm:$0xf] %vm2084_vm6, %v2548_v61 }
  0xef   : > { %v2840_v10 = vpop.permute.xlu1 %2839 }
  0xf0   : > { %2886 = vst.msk [vmem:[#allocation4 + $0xcc] sm:$0xf] %vm1826_vm4, %v2840_v10 }
  0xfb   : > { %v7567_v56 = vpop.f32.mrf.mxu0  ;;  %v7591_v58 = vpop.f32.mrf.mxu1 }
  0xfc   : > { %v761_v59 = vmul.f32 %v7567_v56, %v8513_v54  ;;  %v785_v60 = vmul.f32 %v7591_v58, %v8513_v54  ;;  %v2677_v56 = vld [vmem:[#allocation3 + $0xb7] sm:$0xff] }
  0xfd   : > { %v625_v62 = vpop.f32.mrf.mxu0  ;;  %v721_v63 = vpop.f32.mrf.mxu1 }
  0xfe   : > { %v800_v0 = vadd.f32 %v8519_v57, %v761_v59  ;;  %v824_v1 = vadd.f32 %v8519_v57, %v785_v60  ;;  %v759_v2 = vmul.f32 %v8513_v54, %v625_v62  ;;  %v783_v3 = vmul.f32 %v8513_v54, %v721_v63  ;;  %v8559_v62 = vpop.permute.xlu0 %2545 }
  0xff   : > { %v7568_v4 = vpop.f32.mrf.mxu0  ;;  %v7592_v5 = vpop.f32.mrf.mxu1 }
 0x100   : > { %v832_v6 = vmax.f32 %v800_v0, 0.0  ;;  %v856_v7 = vmax.f32 %v824_v1, 0.0  ;;  %v798_v8 = vadd.f32 %v8519_v57, %v759_v2  ;;  %v822_v9 = vadd.f32 %v8519_v57, %v783_v3 }
 0x101   : > { %v762_v12 = vmul.f32 %v7568_v4, %v8513_v54  ;;  %v786_v13 = vmul.f32 %v7592_v5, %v8513_v54  ;;  %v628_v14 = vpop.f32.mrf.mxu0  ;;  %v724_v15 = vpop.f32.mrf.mxu1  ;;  %v7225_v3 = vpack.c.bf16 %v2677_v56, %v2677_v56 }
 0x102   : > { %865 = vst.msk [vmem:[#allocation2 + $0x10] sm:$0xff] %vm862_vm0, %v832_v6  ;;  %889 = vst.msk [vmem:[#allocation2 + $0xd0] sm:$0xff] %vm862_vm0, %v856_v7  ;;  %v830_v16 = vmax.f32 %v798_v8, 0.0  ;;  %v854_v17 = vmax.f32 %v822_v9, 0.0  ;;  %v760_v18 = vmul.f32 %v8513_v54, %v628_v14  ;;  %v784_v19 = vmul.f32 %v8513_v54, %v724_v15  ;;  %v2838_v15 = vpop.permute.xlu0 %2837 }
 0x103   : > { %v801_v20 = vadd.f32 %v8519_v57, %v762_v12  ;;  %v825_v21 = vadd.f32 %v8519_v57, %v786_v13  ;;  %v7571_v22 = vpop.f32.mrf.mxu0  ;;  %v7595_v25 = vpop.f32.mrf.mxu1  ;;  %2757 = vst.msk [vmem:[#allocation4 + $0xc0] sm:$0xf] %vm1697_vm3, %v7225_v3 }
 0x104   : > { %863 = vst.msk [vmem:[#allocation2] sm:$0xff] %vm862_vm0, %v830_v16  ;;  %887 = vst.msk [vmem:[#allocation2 + $0xc0] sm:$0xff] %vm862_vm0, %v854_v17  ;;  %v799_v26 = vadd.f32 %v8519_v57, %v760_v18  ;;  %v823_v27 = vadd.f32 %v8519_v57, %v784_v19  ;;  %v765_v29 = vmul.f32 %v7571_v22, %v8513_v54 }
 0x105   : > { %v789_v34 = vmul.f32 %v7595_v25, %v8513_v54  ;;  %v833_v39 = vmax.f32 %v801_v20, 0.0  ;;  %v857_v40 = vmax.f32 %v825_v21, 0.0  ;;  %v641_v44 = vpop.f32.mrf.mxu0  ;;  %v737_v45 = vpop.f32.mrf.mxu1  ;;  %2885 = vst.msk [vmem:[#allocation4 + $0xc0] sm:$0xf] %vm1826_vm4, %v2838_v15 }
 0x106   : > { %v831_v47 = vmax.f32 %v799_v26, 0.0  ;;  %v855_v48 = vmax.f32 %v823_v27, 0.0  ;;  %v804_v49 = vadd.f32 %v8519_v57, %v765_v29  ;;  %v763_v51 = vmul.f32 %v8513_v54, %v641_v44 }
 0x107   : > { %v828_v50 = vadd.f32 %v8519_v57, %v789_v34  ;;  %866 = vst.msk [vmem:[#allocation2 + $0x18] sm:$0xff] %vm862_vm0, %v833_v39  ;;  %890 = vst.msk [vmem:[#allocation2 + $0xd8] sm:$0xff] %vm862_vm0, %v857_v40  ;;  %v787_v52 = vmul.f32 %v8513_v54, %v737_v45  ;;  %v7572_v53 = vpop.f32.mrf.mxu0  ;;  %v7596_v55 = vpop.f32.mrf.mxu1 }
 0x108   : > { %864 = vst.msk [vmem:[#allocation2 + $0x8] sm:$0xff] %vm862_vm0, %v831_v47  ;;  %888 = vst.msk [vmem:[#allocation2 + $0xc8] sm:$0xff] %vm862_vm0, %v855_v48  ;;  %v836_v58 = vmax.f32 %v804_v49, 0.0  ;;  %v766_v60 = vmul.f32 %v7572_v53, %v8513_v54  ;;  %v790_v61 = vmul.f32 %v7596_v55, %v8513_v54  ;;  %v802_v63 = vadd.f32 %v8519_v57, %v763_v51 }
 0x109   : > { %v860_v59 = vmax.f32 %v828_v50, 0.0  ;;  %v826_v0 = vadd.f32 %v8519_v57, %v787_v52  ;;  %v644_v1 = vpop.f32.mrf.mxu0  ;;  %v740_v2 = vpop.f32.mrf.mxu1 }
 0x10a   : > { %869 = vst.msk [vmem:[#allocation2 + $0x30] sm:$0xff] %vm862_vm0, %v836_v58  ;;  %v805_v4 = vadd.f32 %v8519_v57, %v766_v60  ;;  %v829_v5 = vadd.f32 %v8519_v57, %v790_v61  ;;  %v764_v6 = vmul.f32 %v8513_v54, %v644_v1  ;;  %v788_v7 = vmul.f32 %v8513_v54, %v740_v2  ;;  %v2966_v50 = vpop.permute.xlu0 %2965 }
 0x10b   : > { %893 = vst.msk [vmem:[#allocation2 + $0xf0] sm:$0xff] %vm862_vm0, %v860_v59  ;;  %v834_v8 = vmax.f32 %v802_v63, 0.0  ;;  %v858_v9 = vmax.f32 %v826_v0, 0.0  ;;  %v7575_v10 = vpop.f32.mrf.mxu0  ;;  %v7605_v39 = vpop.f32.mrf.mxu1 }
 0x10c   : > { %v837_v11 = vmax.f32 %v805_v4, 0.0  ;;  %v861_v12 = vmax.f32 %v829_v5, 0.0  ;;  %v803_v13 = vadd.f32 %v8519_v57, %v764_v6  ;;  %v827_v14 = vadd.f32 %v8519_v57, %v788_v7  ;;  %3013 = vst.msk [vmem:[#allocation4 + $0xc0] sm:$0xf] %vm1955_vm5, %v2966_v50 }
 0x10d   : > { %867 = vst.msk [vmem:[#allocation2 + $0x20] sm:$0xff] %vm862_vm0, %v834_v8  ;;  %891 = vst.msk [vmem:[#allocation2 + $0xe0] sm:$0xff] %vm862_vm0, %v858_v9  ;;  %v769_v16 = vmul.f32 %v7575_v10, %v8513_v54  ;;  %v657_v17 = vpop.f32.mrf.mxu0  ;;  %v1113_v58 = vpop.f32.mrf.mxu1  ;;  %v1249_v61 = vmul.f32 %v7605_v39, %v8513_v54 }
 0x10e   : > { %v1431_v18 = vld [vmem:[#allocation2 + $0x10] ss:$2 sm:$0xff]  ;;  %v1433_v19 = vld [vmem:[#allocation2 + $0x11] ss:$2 sm:$0xff]  ;;  %870 = vst.msk [vmem:[#allocation2 + $0x38] sm:$0xff] %vm862_vm0, %v837_v11  ;;  %894 = vst.msk [vmem:[#allocation2 + $0xf8] sm:$0xff] %vm862_vm0, %v861_v12  ;;  %v767_v21 = vmul.f32 %v8513_v54, %v657_v17  ;;  %v1247_v63 = vmul.f32 %v8513_v54, %v1113_v58 }
 0x10f   : > { %v1503_v20 = vld [vmem:[#allocation2 + $0xd0] ss:$2 sm:$0xff]  ;;  %v1434_v22 = vmax.f32 %v1431_v18, %v1433_v19  ;;  %v1505_v25 = vld [vmem:[#allocation2 + $0xd1] ss:$2 sm:$0xff]  ;;  %v1426_v26 = vld [vmem:[#allocation2] ss:$2 sm:$0xff]  ;;  %v808_v29 = vadd.f32 %v8519_v57, %v769_v16  ;;  %v7576_v34 = vpop.f32.mrf.mxu0  ;;  %v7606_v4 = vpop.f32.mrf.mxu1  ;;  %v1288_v7 = vadd.f32 %v8519_v57, %v1249_v61 }
 0x110   : > { %v1428_v27 = vld [vmem:[#allocation2 + $0x1] ss:$2 sm:$0xff]  ;;  %v1506_v40 = vmax.f32 %v1503_v20, %v1505_v25  ;;  %v1498_v45 = vld [vmem:[#allocation2 + $0xc0] ss:$2 sm:$0xff]  ;;  %v835_v48 = vmax.f32 %v803_v13, 0.0  ;;  %v859_v49 = vmax.f32 %v827_v14, 0.0  ;;  %v806_v53 = vadd.f32 %v8519_v57, %v767_v21 }
 0x111   : > { %v1429_v44 = vmax.f32 %v1426_v26, %v1428_v27  ;;  %v1500_v47 = vld [vmem:[#allocation2 + $0xc1] ss:$2 sm:$0xff]  ;;  %v840_v52 = vmax.f32 %v808_v29, 0.0  ;;  %v770_v55 = vmul.f32 %v7576_v34, %v8513_v54  ;;  %v660_v56 = vpop.f32.mrf.mxu0  ;;  %v1286_v8 = vadd.f32 %v8519_v57, %v1247_v63  ;;  %v1116_v13 = vpop.f32.mrf.mxu1 }
 0x112   : > { %v1501_v51 = vmax.f32 %v1498_v45, %v1500_v47  ;;  %868 = vst.msk [vmem:[#allocation2 + $0x28] sm:$0xff] %vm862_vm0, %v835_v48  ;;  %892 = vst.msk [vmem:[#allocation2 + $0xe8] sm:$0xff] %vm862_vm0, %v859_v49  ;;  %v768_v60 = vmul.f32 %v8513_v54, %v660_v56  ;;  %v838_v1 = vmax.f32 %v806_v53, 0.0  ;;  %v1250_v12 = vmul.f32 %v7606_v4, %v8513_v54 }
 0x113   : > { %v1435_v59 = vmax.f32 %v1429_v44, %v1434_v22  ;;  %873 = vst.msk [vmem:[#allocation2 + $0x50] sm:$0xff] %vm862_vm0, %v840_v52  ;;  %v809_v2 = vadd.f32 %v8519_v57, %v770_v55  ;;  %v7579_v3 = vpop.f32.mrf.mxu0  ;;  %v1320_v22 = vmax.f32 %v1288_v7, 0.0  ;;  %v1318_v25 = vmax.f32 %v1286_v8, 0.0  ;;  %v7609_v26 = vpop.f32.mrf.mxu1 }
 0x114   : > { %v1507_v0 = vmax.f32 %v1501_v51, %v1506_v40  ;;  %v807_v5 = vadd.f32 %v8519_v57, %v768_v60  ;;  %v773_v6 = vmul.f32 %v7579_v3, %v8513_v54  ;;  %871 = vst.msk [vmem:[#allocation2 + $0x40] sm:$0xff] %vm862_vm0, %v838_v1  ;;  %v1289_v34 = vadd.f32 %v8519_v57, %v1250_v12 }
 0x115   : > { %1436 = vst.msk [vmem:[#allocation3 + $0x18] sm:$0xff] %vm862_vm0, %v1435_v59  ;;  %v1443_v9 = vld [vmem:[#allocation2 + $0x30] ss:$2 sm:$0xff]  ;;  %v1445_v10 = vld [vmem:[#allocation2 + $0x31] ss:$2 sm:$0xff]  ;;  %v673_v11 = vpop.f32.mrf.mxu0  ;;  %v841_v16 = vmax.f32 %v809_v2, 0.0  ;;  %v1248_v39 = vmul.f32 %v8513_v54, %v1116_v13  ;;  %v1253_v50 = vmul.f32 %v7609_v26, %v8513_v54  ;;  %v8609_v51 = vpop.f32.mrf.mxu1 }
 0x116   : > { %1508 = vst.msk [vmem:[#allocation3 + $0x78] sm:$0xff] %vm862_vm0, %v1507_v0  ;;  %v1515_v14 = vld [vmem:[#allocation2 + $0xf0] ss:$2 sm:$0xff]  ;;  %v1517_v15 = vld [vmem:[#allocation2 + $0xf1] ss:$2 sm:$0xff]  ;;  %v839_v17 = vmax.f32 %v807_v5, 0.0  ;;  %v812_v18 = vadd.f32 %v8519_v57, %v773_v6  ;;  %v1446_v19 = vmax.f32 %v1443_v9, %v1445_v10  ;;  %v771_v20 = vmul.f32 %v8513_v54, %v673_v11 }
 0x117   : > { %v7580_v21 = vpop.f32.mrf.mxu0  ;;  %874 = vst.msk [vmem:[#allocation2 + $0x58] sm:$0xff] %vm862_vm0, %v841_v16  ;;  %v1518_v40 = vmax.f32 %v1515_v14, %v1517_v15  ;;  %1352 = vst.msk [vmem:[#allocation2 + $0x110] sm:$0xff] %vm862_vm0, %v1320_v22  ;;  %v1321_v58 = vmax.f32 %v1289_v34, 0.0  ;;  %v8615_v2 = vadd.f32 %v8519_v57, %v1248_v39  ;;  %v8617_v3 = vpop.f32.mrf.mxu1  ;;  %v8626_v15 = vadd.f32 %v8519_v57, %v1253_v50 }
 0x118   : > { %872 = vst.msk [vmem:[#allocation2 + $0x48] sm:$0xff] %vm862_vm0, %v839_v17  ;;  %v844_v27 = vmax.f32 %v812_v18, 0.0  ;;  %v774_v29 = vmul.f32 %v7580_v21, %v8513_v54  ;;  %v810_v48 = vadd.f32 %v8519_v57, %v771_v20  ;;  %1350 = vst.msk [vmem:[#allocation2 + $0x100] sm:$0xff] %vm862_vm0, %v1318_v25 }
 0x119   : > { %v1438_v44 = vld [vmem:[#allocation2 + $0x20] ss:$2 sm:$0xff]  ;;  %v1440_v45 = vld [vmem:[#allocation2 + $0x21] ss:$2 sm:$0xff]  ;;  %v676_v49 = vpop.f32.mrf.mxu0  ;;  %1353 = vst.msk [vmem:[#allocation2 + $0x118] sm:$0xff] %vm862_vm0, %v1321_v58  ;;  %v8628_v16 = vpop.f32.mrf.mxu1 }
 0x11a   : > { %v1510_v47 = vld [vmem:[#allocation2 + $0xe0] ss:$2 sm:$0xff]  ;;  %v1441_v52 = vmax.f32 %v1438_v44, %v1440_v45  ;;  %v1512_v53 = vld [vmem:[#allocation2 + $0xe1] ss:$2 sm:$0xff]  ;;  %877 = vst.msk [vmem:[#allocation2 + $0x70] sm:$0xff] %vm862_vm0, %v844_v27  ;;  %v813_v55 = vadd.f32 %v8519_v57, %v774_v29  ;;  %v772_v56 = vmul.f32 %v8513_v54, %v676_v49  ;;  %v842_v60 = vmax.f32 %v810_v48, 0.0 }
 0x11b   : > { %v1513_v59 = vmax.f32 %v1510_v47, %v1512_v53  ;;  %v7583_v61 = vpop.f32.mrf.mxu0  ;;  %v8640_v45 = vpop.f32.mrf.mxu1 }
 0x11c   : > { %v2197_v63 = vld [vmem:[#allocation3 + $0x19] sm:$0xff]  ;;  %v1844_v1 = vld [vmem:[#allocation3 + $0x11] sm:$0xff]  ;;  %v1447_v4 = vmax.f32 %v1441_v52, %v1446_v19  ;;  %v845_v5 = vmax.f32 %v813_v55, 0.0  ;;  %v811_v6 = vadd.f32 %v8519_v57, %v772_v56  ;;  %v777_v7 = vmul.f32 %v7583_v61, %v8513_v54  ;;  %875 = vst.msk [vmem:[#allocation2 + $0x60] sm:$0xff] %vm862_vm0, %v842_v60 }
 0x11d   : > { %v1972_v0 = vld [vmem:[#allocation3 + $0x17] sm:$0xff]  ;;  %v1973_v9 = vld [vmem:[#allocation3 + $0x1f] sm:$0xff]  ;;  %v1519_v11 = vmax.f32 %v1513_v59, %v1518_v40  ;;  %v689_v12 = vpop.f32.mrf.mxu0  ;;  %v8623_v13 = vpack.c.bf16 %v2197_v63, %v2197_v63  ;;  %v7114_v39 = vpack.c.bf16 %v1844_v1, %v1844_v1  ;;  %v8656_v60 = vpop.f32.mrf.mxu1 }
 0x11e   : > { %v1716_v8 = vld [vmem:[#allocation3 + $0x18] sm:$0xff]  ;;  %v7129_v14 = vpack.c.bf16 %v1972_v0, %v1972_v0  ;;  %1448 = vst.msk [vmem:[#allocation3 + $0x28] sm:$0xff] %vm862_vm0, %v1447_v4  ;;  %878 = vst.msk [vmem:[#allocation2 + $0x78] sm:$0xff] %vm862_vm0, %v845_v5  ;;  %v843_v17 = vmax.f32 %v811_v6, 0.0  ;;  %v816_v18 = vadd.f32 %v8519_v57, %v777_v7  ;;  %v775_v19 = vmul.f32 %v8513_v54, %v689_v12 }
 0x11f   : > { %v2208_v10 = vld [vmem:[#allocation3 + $0x71] sm:$0xff]  ;;  %v7099_v20 = vpack.c.bf16 %v1716_v8, %v1716_v8  ;;  %v2336_v21 = vld [vmem:[#allocation3 + $0x7f] sm:$0xff]  ;;  %1520 = vst.msk [vmem:[#allocation3 + $0x88] sm:$0xff] %vm862_vm0, %v1519_v11  ;;  %2261 = vrot.lane.b32.xlu1 %v8623_v13, %s8159_s24  ;;  %v7584_v34 = vpop.f32.mrf.mxu0  ;;  %v7130_v40 = vpack.c.bf16 %v1973_v9, %v1973_v9  ;;  %v1319_v4 = vmax.f32 %v8615_v2, 0.0  ;;  %v1324_v7 = vmax.f32 %v8626_v15, 0.0  ;;  %v8675_v2 = vpop.f32.mrf.mxu1 }
 0x120   : > { %v2463_v22 = vld [vmem:[#allocation3 + $0x78] sm:$0xff]  ;;  %v1450_v29 = vld [vmem:[#allocation2 + $0x40] ss:$2 sm:$0xff]  ;;  %2036 = vrot.lane.b32.xlu0 %v7129_v14, %s8158_s16  ;;  %v8638_v44 = vpack.c.bf16 %v2208_v10, %v2208_v10  ;;  %1700 = vst.msk [vmem:[#allocation4 + $0x18] sm:$0xf] %vm1697_vm3, %v7129_v14  ;;  %v848_v49 = vmax.f32 %v816_v18, 0.0  ;;  %v814_v50 = vadd.f32 %v8519_v57, %v775_v19  ;;  %v778_v52 = vmul.f32 %v7584_v34, %v8513_v54 }
 0x121   : > { %v2209_v25 = vld [vmem:[#allocation3 + $0x79] sm:$0xff]  ;;  %v1452_v48 = vld [vmem:[#allocation2 + $0x41] ss:$2 sm:$0xff]  ;;  %876 = vst.msk [vmem:[#allocation2 + $0x68] sm:$0xff] %vm862_vm0, %v843_v17  ;;  %v692_v55 = vpop.f32.mrf.mxu0  ;;  %v8648_v56 = vpack.c.bf16 %v2336_v21, %v2336_v21  ;;  %v8650_v58 = vpack.c.bf16 %v2463_v22, %v2463_v22  ;;  %v1251_v8 = vmul.f32 %v8513_v54, %v8609_v51  ;;  %1351 = vst.msk [vmem:[#allocation2 + $0x108] sm:$0xff] %vm862_vm0, %v1319_v4  ;;  %v8693_v19 = vpop.f32.mrf.mxu1 }
 0x122   : > { %v1455_v26 = vld [vmem:[#allocation2 + $0x50] ss:$2 sm:$0xff]  ;;  %v1457_v27 = vld [vmem:[#allocation2 + $0x51] ss:$2 sm:$0xff]  ;;  %2181 = vst.msk [vmem:[#allocation4 + $0x4] sm:$0xf] %vm1697_vm3, %v7099_v20  ;;  %v1453_v53 = vmax.f32 %v1450_v29, %v1452_v48  ;;  %v8652_v59 = vpack.c.bf16 %v2209_v25, %v2209_v25  ;;  %v817_v63 = vadd.f32 %v8519_v57, %v778_v52  ;;  %v776_v0 = vmul.f32 %v8513_v54, %v692_v55 }
 0x123   : > { %v1458_v47 = vmax.f32 %v1455_v26, %v1457_v27  ;;  %1701 = vst.msk [vmem:[#allocation4 + $0x24] sm:$0xf] %vm1697_vm3, %v7130_v40  ;;  %2670 = vst.msk [vmem:[#allocation4 + $0x74] sm:$0xf] %vm1697_vm3, %v8638_v44  ;;  %v846_v61 = vmax.f32 %v814_v50, 0.0  ;;  %v2335_v1 = vld [vmem:[#allocation3 + $0x77] sm:$0xff]  ;;  %1909 = vrot.lane.b32.xlu1 %v7114_v39, %s8160_s25  ;;  %v7587_v6 = vpop.f32.mrf.mxu0  ;;  %v1290_v18 = vadd.f32 %v8519_v57, %v1251_v8  ;;  %v8710_v52 = vpop.f32.mrf.mxu1 }
 0x124   : > { %881 = vst.msk [vmem:[#allocation2 + $0x90] sm:$0xff] %vm862_vm0, %v848_v49  ;;  %1782 = vrot.lane.b32.xlu0 %v7099_v20, %s8159_s24  ;;  %v7784_v9 = vld [vmem:[%s9865_s4 + $0x78] sm:$0xff]   ;;  %v849_v10 = vmax.f32 %v817_v63, 0.0  ;;  %v815_v11 = vadd.f32 %v8519_v57, %v776_v0  ;;  %v781_v12 = vmul.f32 %v7587_v6, %v8513_v54  ;;  %v8689_v15 = vpack.c.bf16 %v2335_v1, %v2335_v1 }
 0x125   : > { %1830 = vst.msk [vmem:[#allocation4 + $0x24] sm:$0xf] %vm1826_vm4, %v8467_v24  ;;  %v1459_v5 = vmax.f32 %v1453_v53, %v1458_v47  ;;  %v1254_v24 = vmul.f32 %v8617_v3, %v8513_v54  ;;  %v1467_v51 = vld [vmem:[#allocation2 + $0x70] ss:$2 sm:$0xff]  ;;  %v1469_v3 = vld [vmem:[#allocation2 + $0x71] ss:$2 sm:$0xff]  ;;  %v705_v14 = vpop.f32.mrf.mxu0  ;;  %7407 = vmatprep.subr.bf16.mxu0 %v7784_v9  ;;  %v1252_v50 = vmul.f32 %v8513_v54, %v8628_v16  ;;  %v8726_v6 = vpop.f32.mrf.mxu1 }
 0x126   : > { %2671 = vst.msk [vmem:[#allocation4 + $0x80] sm:$0xf] %vm1697_vm3, %v8652_v59  ;;  %1713 = vst.msk [vmem:[#allocation4 + $0xb4] sm:$0xf] %vm1697_vm3, %v8648_v56  ;;  %v1622_v17 = vld [vmem:[#allocation3 + $0x2f] sm:$0xff]  ;;  %v1470_v20 = vmax.f32 %v1467_v51, %v1469_v3  ;;  %v847_v21 = vmax.f32 %v815_v11, 0.0  ;;  %v779_v22 = vmul.f32 %v8513_v54, %v705_v14 }
 0x127   : > { %2193 = vst.msk [vmem:[#allocation4 + $0x94] sm:$0xf] %vm1697_vm3, %v8650_v58  ;;  %v8698_v25 = vld [vmem:[#allocation2 + $0x110] ss:$2 sm:$0xff]  ;;  %v8700_v26 = vld [vmem:[#allocation2 + $0x111] ss:$2 sm:$0xff]  ;;  %2038 = vrot.lane.b32.xlu1 %v7130_v40, %s8158_s16  ;;  %v7588_v34 = vpop.f32.mrf.mxu0  ;;  %v8705_v39 = vpack.c.bf16 %v1622_v17, %v1622_v17  ;;  %v1293_v49 = vadd.f32 %v8519_v57, %v1254_v24  ;;  %v8749_v3 = vpop.f32.mrf.mxu1 }
 0x128   : > { %879 = vst.msk [vmem:[#allocation2 + $0x80] sm:$0xff] %vm862_vm0, %v846_v61  ;;  %1460 = vst.msk [vmem:[#allocation3 + $0x38] sm:$0xff] %vm862_vm0, %v1459_v5  ;;  %v1462_v27 = vld [vmem:[#allocation2 + $0x60] ss:$2 sm:$0xff]  ;;  %v1464_v29 = vld [vmem:[#allocation2 + $0x61] ss:$2 sm:$0xff]  ;;  %1911 = vrot.lane.b32.xlu0 %v8623_v13, %s8160_s25  ;;  %v818_v40 = vadd.f32 %v8519_v57, %v779_v22  ;;  %v782_v13 = vmul.f32 %v7588_v34, %v8513_v54  ;;  %v1530_v16 = vmax.f32 %v8698_v25, %v8700_v26 }
 0x129   : > { %1842 = vst.msk [vmem:[#allocation4 + $0xb4] sm:$0xf] %vm1826_vm4, %v8504_v46  ;;  %v820_v46 = vadd.f32 %v8519_v57, %v781_v12  ;;  %v2581_v47 = vld [vmem:[#allocation3 + $0x29] sm:$0xff]  ;;  %v1322_v48 = vmax.f32 %v1290_v18, 0.0  ;;  %v1465_v53 = vmax.f32 %v1462_v27, %v1464_v29  ;;  %v2210_v61 = vld [vmem:[#allocation3 + $0x81] sm:$0xff]  ;;  %v708_v63 = vpop.f32.mrf.mxu0  ;;  %v1257_v5 = vmul.f32 %v8640_v45, %v8513_v54 }
 0x12a   : > { %1356 = vst.msk [vmem:[#allocation2 + $0x130] sm:$0xff] %vm862_vm0, %v1324_v7  ;;  %882 = vst.msk [vmem:[#allocation2 + $0x98] sm:$0xff] %vm862_vm0, %v849_v10  ;;  %v8717_v0 = vpack.c.bf16 %v2581_v47, %v2581_v47  ;;  %v8719_v1 = vpack.c.bf16 %v2210_v61, %v2210_v61  ;;  %v2593_v4 = vld [vmem:[#allocation3 + $0x89] sm:$0xff]  ;;  %v850_v8 = vmax.f32 %v818_v40, 0.0  ;;  %v821_v24 = vadd.f32 %v8519_v57, %v782_v13  ;;  %v7785_v10 = vld [vmem:[%s9865_s4 + $0x38] sm:$0xff]  }
 0x12b   : > { %880 = vst.msk [vmem:[#allocation2 + $0x88] sm:$0xff] %vm862_vm0, %v847_v21  ;;  %v852_v55 = vmax.f32 %v820_v46, 0.0  ;;  %1354 = vst.msk [vmem:[#allocation2 + $0x120] sm:$0xff] %vm862_vm0, %v1322_v48  ;;  %v1471_v7 = vmax.f32 %v1465_v53, %v1470_v20  ;;  %v780_v9 = vmul.f32 %v8513_v54, %v708_v63  ;;  %v7786_v45 = vld [vmem:[%s9865_s4 + $0x70] sm:$0xff]   ;;  %2283 = vrot.lane.b32.xlu1 %v8638_v44, %s8159_s24  ;;  %v1522_v11 = vld [vmem:[#allocation2 + $0x100] ss:$2 sm:$0xff]  ;;  %7408 = vmatpush3.bf16.msra.mxu0 %v7785_v10  ;;  %v1164_v53 = vpop.f32.mrf.mxu1 }
 0x12c   : > { %1703 = vst.msk [vmem:[#allocation4 + $0x3c] sm:$0xf] %vm1697_vm3, %v8705_v39  ;;  %2409 = vrot.lane.b32.xlu0 %v8689_v15, %s8160_s25  ;;  %2661 = vst.msk [vmem:[#allocation4 + $0x8] sm:$0xf] %vm1697_vm3, %v8717_v0  ;;  %v1524_v12 = vld [vmem:[#allocation2 + $0x101] ss:$2 sm:$0xff]  ;;  %v1291_v25 = vadd.f32 %v8519_v57, %v1252_v50  ;;  %v1296_v48 = vadd.f32 %v8519_v57, %v1257_v5  ;;  %7409 = vmatprep.subr.bf16.mxu0 %v7786_v45 }
 0x12d   : > { %885 = vst.msk [vmem:[#allocation2 + $0xb0] sm:$0xff] %vm862_vm0, %v852_v55  ;;  %v1325_v51 = vmax.f32 %v1293_v49, 0.0  ;;  %v7787_v14 = vld [vmem:[%s9865_s4 + $0x30] sm:$0xff]   ;;  %1472 = vst.msk [vmem:[#allocation3 + $0x48] sm:$0xff] %vm862_vm0, %v1471_v7  ;;  %v853_v17 = vmax.f32 %v821_v24, 0.0  ;;  %v819_v18 = vadd.f32 %v8519_v57, %v780_v9  ;;  %v1525_v22 = vmax.f32 %v1522_v11, %v1524_v12  ;;  %v7788_v61 = vld [vmem:[%s9865_s4 + $0x68] sm:$0xff]  }
 0x12e   : > { %1832 = vst.msk [vmem:[#allocation4 + $0x3c] sm:$0xf] %vm1826_vm4, %v8481_v30  ;;  %v8747_v30 = vpack.c.bf16 %v2593_v4, %v2593_v4  ;;  %v2112_v49 = vld [vmem:[#allocation3 + $0x70] sm:$0xff]  ;;  %v1323_v13 = vmax.f32 %v1291_v25, 0.0  ;;  %v2198_v5 = vld [vmem:[#allocation3 + $0x21] sm:$0xff]  ;;  %v1255_v7 = vmul.f32 %v8513_v54, %v8656_v60  ;;  %v1258_v9 = vmul.f32 %v8675_v2, %v8513_v54  ;;  %v2595_v2 = vld [vmem:[#allocation3 + $0x99] sm:$0xff] }
 0x12f   : > { %2672 = vst.msk [vmem:[#allocation4 + $0x8c] sm:$0xf] %vm1697_vm3, %v8719_v1  ;;  %v1624_v20 = vld [vmem:[#allocation3 + $0x3f] sm:$0xff]  ;;  %v2582_v21 = vld [vmem:[#allocation3 + $0x31] sm:$0xff]  ;;  %v851_v55 = vmax.f32 %v819_v18, 0.0  ;;  %v1531_v40 = vmax.f32 %v1525_v22, %v1530_v16  ;;  %2411 = vrot.lane.b32.xlu1 %v8648_v56, %s8160_s25  ;;  %v1328_v16 = vmax.f32 %v1296_v48, 0.0  ;;  %v1256_v10 = vmul.f32 %v8513_v54, %v8693_v19  ;;  %7410 = vmatpush3.bf16.msra.mxu0 %v7787_v14 }
 0x130   : > { %883 = vst.msk [vmem:[#allocation2 + $0xa0] sm:$0xff] %vm862_vm0, %v850_v8  ;;  %v2583_v46 = vld [vmem:[#allocation3 + $0x39] sm:$0xff]  ;;  %v8758_v29 = vpack.c.bf16 %v1624_v20, %v1624_v20  ;;  %v8760_v34 = vpack.c.bf16 %v2582_v21, %v2582_v21  ;;  %1357 = vst.msk [vmem:[#allocation2 + $0x138] sm:$0xff] %vm862_vm0, %v1325_v51  ;;  %2537 = vrot.lane.b32.xlu0 %v8650_v58, %s8158_s16  ;;  %v7621_v8 = vpop.f32.mrf.mxu1  ;;  %v7156_v45 = vpack.c.bf16 %v2112_v49, %v2112_v49  ;;  %v7789_v12 = vld [vmem:[%s9865_s4 + $0x28] sm:$0xff]  }
 0x131   : > { %v1479_v26 = vld [vmem:[#allocation2 + $0x90] ss:$2 sm:$0xff]  ;;  %v1481_v27 = vld [vmem:[#allocation2 + $0x91] ss:$2 sm:$0xff]  ;;  %v8762_v47 = vpack.c.bf16 %v2583_v46, %v2583_v46  ;;  %2673 = vst.msk [vmem:[#allocation4 + $0x98] sm:$0xf] %vm1697_vm3, %v8747_v30  ;;  %v1261_v51 = vmul.f32 %v8710_v52, %v8513_v54  ;;  %7411 = vmatprep.subr.bf16.mxu0 %v7788_v61  ;;  %v8803_v18 = vpack.c.bf16 %v2198_v5, %v2198_v5 }
 0x132   : > { %v1482_v50 = vmax.f32 %v1479_v26, %v1481_v27  ;;  %886 = vst.msk [vmem:[#allocation2 + $0xb8] sm:$0xff] %vm862_vm0, %v853_v17  ;;  %v1474_v63 = vld [vmem:[#allocation2 + $0x80] ss:$2 sm:$0xff]  ;;  %v1476_v4 = vld [vmem:[#allocation2 + $0x81] ss:$2 sm:$0xff]  ;;  %884 = vst.msk [vmem:[#allocation2 + $0xa8] sm:$0xff] %vm862_vm0, %v851_v55  ;;  %v1259_v20 = vmul.f32 %v8513_v54, %v8726_v6  ;;  %v1262_v21 = vmul.f32 %v8749_v3, %v8513_v54  ;;  %v1177_v49 = vpop.f32.mrf.mxu1 }
 0x133   : > { %1705 = vst.msk [vmem:[#allocation4 + $0x54] sm:$0xf] %vm1697_vm3, %v8758_v29  ;;  %2662 = vst.msk [vmem:[#allocation4 + $0x14] sm:$0xf] %vm1697_vm3, %v8760_v34  ;;  %v1477_v24 = vmax.f32 %v1474_v63, %v1476_v4  ;;  %v1631_v60 = vld [vmem:[#allocation3 + $0x77] sm:$0xff]  ;;  %v2102_v11 = vld [vmem:[#allocation3 + $0x20] sm:$0xff]  ;;  %1933 = vrot.lane.b32.xlu1 %v8638_v44, %s8160_s25  ;;  %v1297_v27 = vadd.f32 %v8519_v57, %v1258_v9  ;;  %v1295_v48 = vadd.f32 %v8519_v57, %v1256_v10 }
 0x134   : > { %2663 = vst.msk [vmem:[#allocation4 + $0x20] sm:$0xf] %vm1697_vm3, %v8762_v47  ;;  %v2596_v17 = vld [vmem:[#allocation3 + $0xa1] sm:$0xff]  ;;  %2192 = vst.msk [vmem:[#allocation4 + $0x88] sm:$0xf] %vm1697_vm3, %v7156_v45  ;;  %2285 = vrot.lane.b32.xlu0 %v8652_v59, %s8159_s24  ;;  %v1626_v52 = vld [vmem:[#allocation3 + $0x4f] sm:$0xff]  ;;  %v1260_v6 = vmul.f32 %v8513_v54, %v1164_v53  ;;  %7412 = vmatpush3.bf16.msra.mxu0 %v7789_v12  ;;  %v8831_v53 = vpop.permute.xlu1 %3575  ;;  %v7095_v5 = vpack.c.bf16 %v1631_v60, %v1631_v60  ;;  %v7622_v12 = vpop.f32.mrf.mxu1 }
 0x135   : > { %1834 = vst.msk [vmem:[#allocation4 + $0x54] sm:$0xf] %vm1826_vm4, %v8485_v32  ;;  %v1294_v32 = vadd.f32 %v8519_v57, %v1255_v7  ;;  %v7792_v19 = vld [vmem:[%s9865_s4 + $0x60] sm:$0xff]   ;;  %v1483_v14 = vmax.f32 %v1477_v24, %v1482_v50  ;;  %v8810_v46 = vld [vmem:[#allocation3 + $0x28] sm:$0xff]  ;;  %v8820_v3 = vpack.c.bf16 %v1626_v52, %v1626_v52  ;;  %v7223_v7 = vpack.c.bf16 %v2595_v2, %v2595_v2 }
 0x136   : > { %1532 = vst.msk [vmem:[#allocation3 + $0xc8] sm:$0xff] %vm862_vm0, %v1531_v40  ;;  %1355 = vst.msk [vmem:[#allocation2 + $0x128] sm:$0xff] %vm862_vm0, %v1323_v13  ;;  %v2584_v22 = vld [vmem:[#allocation3 + $0x41] sm:$0xff]  ;;  %v2585_v25 = vld [vmem:[#allocation3 + $0x49] sm:$0xff]  ;;  %v8829_v40 = vadd.f32 %v8519_v57, %v1261_v51  ;;  %v7224_v24 = vpack.c.bf16 %v2596_v17, %v2596_v17  ;;  %7413 = vmatprep.subr.bf16.mxu0 %v7792_v19  ;;  %v8841_v45 = vadd.f32 %v8519_v57, %v1259_v20 }
 0x137   : > { %1360 = vst.msk [vmem:[#allocation2 + $0x150] sm:$0xff] %vm862_vm0, %v1328_v16  ;;  %v1326_v26 = vmax.f32 %v1294_v32, 0.0  ;;  %1484 = vst.msk [vmem:[#allocation3 + $0x58] sm:$0xff] %vm862_vm0, %v1483_v14  ;;  %v8822_v50 = vpack.c.bf16 %v2584_v22, %v2584_v22  ;;  %v8824_v44 = vpack.c.bf16 %v2585_v25, %v2585_v25  ;;  %v8826_v55 = vld [vmem:[#allocation2 + $0x130] ss:$2 sm:$0xff]  ;;  %v1621_v13 = vld [vmem:[#allocation3 + $0x27] sm:$0xff]  ;;  %v7146_v16 = vpack.c.bf16 %v2102_v11, %v2102_v11 }
 0x138   : > { %v1541_v4 = vld [vmem:[#allocation2 + $0x131] ss:$2 sm:$0xff]  ;;  %1707 = vst.msk [vmem:[#allocation4 + $0x6c] sm:$0xf] %vm1697_vm3, %v8820_v3  ;;  %v8844_v60 = vadd.f32 %v8519_v57, %v1262_v21  ;;  %v1265_v11 = vmul.f32 %v7621_v8, %v8513_v54  ;;  %2062 = vrot.lane.b32.xlu1 %v8648_v56, %s8158_s16  ;;  %2060 = vrot.lane.b32.xlu0 %v8689_v15, %s8158_s16  ;;  %1712 = vst.msk [vmem:[#allocation4 + $0xa8] sm:$0xf] %vm1697_vm3, %v7095_v5 }
 0x139   : > { %v1491_v61 = vld [vmem:[#allocation2 + $0xb0] ss:$2 sm:$0xff]  ;;  %v1493_v63 = vld [vmem:[#allocation2 + $0xb1] ss:$2 sm:$0xff]  ;;  %1358 = vst.msk [vmem:[#allocation2 + $0x140] sm:$0xff] %vm862_vm0, %v1326_v26  ;;  %v1542_v2 = vmax.f32 %v8826_v55, %v1541_v4  ;;  %v7147_v56 = vpack.c.bf16 %v8810_v46, %v8810_v46  ;;  %v7085_v8 = vpack.c.bf16 %v1621_v13, %v1621_v13  ;;  %v1329_v14 = vmax.f32 %v1297_v27, 0.0  ;;  %v1180_v13 = vpop.f32.mrf.mxu1 }
 0x13a   : > { %v1494_v9 = vmax.f32 %v1491_v61, %v1493_v63  ;;  %v7777_v10 = vld [vmem:[#allocation4 + $0x8] ss:$12 sps:$4 sm:$0xff]   ;;  %2664 = vst.msk [vmem:[#allocation4 + $0x2c] sm:$0xf] %vm1697_vm3, %v8822_v50  ;;  %2665 = vst.msk [vmem:[#allocation4 + $0x38] sm:$0xf] %vm1697_vm3, %v8824_v44  ;;  %v1263_v21 = vmul.f32 %v8513_v54, %v1177_v49  ;;  %v1266_v55 = vmul.f32 %v7622_v12, %v8513_v54 }
 0x13b   : > { %v1486_v32 = vld [vmem:[#allocation2 + $0xa0] ss:$2 sm:$0xff]  ;;  %v1488_v51 = vld [vmem:[#allocation2 + $0xa1] ss:$2 sm:$0xff]  ;;  %1836 = vst.msk [vmem:[#allocation4 + $0x6c] sm:$0xf] %vm1826_vm4, %v8489_v35  ;;  %7639 = vmatprep.mubr.msk.bf16.mxu1 %vm862_vm0, %v7777_v10  ;;  %v1304_v49 = vadd.f32 %v8519_v57, %v1265_v11 }
 0x13c   : > { %2182 = vst.msk [vmem:[#allocation4 + $0x10] sm:$0xf] %vm1697_vm3, %v7146_v16  ;;  %2675 = vst.msk [vmem:[#allocation4 + $0xb0] sm:$0xf] %vm1697_vm3, %v7223_v7  ;;  %v1489_v19 = vmax.f32 %v1486_v32, %v1488_v51  ;;  %v1327_v20 = vmax.f32 %v1295_v48, 0.0  ;;  %v1332_v26 = vmax.f32 %v8829_v40, 0.0  ;;  %v1299_v48 = vadd.f32 %v8519_v57, %v1260_v6  ;;  %1806 = vrot.lane.b32.xlu0 %v8650_v58, %s8159_s24  ;;  %v2844_v7 = vpop.permute.xlu1 %2843 }
 0x13d   : > { %v1534_v17 = vld [vmem:[#allocation2 + $0x120] ss:$2 sm:$0xff]  ;;  %2676 = vst.msk [vmem:[#allocation4 + $0xbc] sm:$0xf] %vm1697_vm3, %v7224_v24  ;;  %v1536_v15 = vld [vmem:[#allocation2 + $0x121] ss:$2 sm:$0xff]  ;;  %2263 = vrot.lane.b32.xlu1 %v8803_v18, %s8159_s24 }
 0x13e   : > { %v3030_v35 = vld [vmem:[#allocation3 + $0xcf] sm:$0xff]  ;;  %v1537_v52 = vmax.f32 %v1534_v17, %v1536_v15  ;;  %2183 = vst.msk [vmem:[#allocation4 + $0x1c] sm:$0xf] %vm1697_vm3, %v7147_v56  ;;  %1702 = vst.msk [vmem:[#allocation4 + $0x30] sm:$0xf] %vm1697_vm3, %v7085_v8  ;;  %v1495_v46 = vmax.f32 %v1489_v19, %v1494_v9  ;;  %v7793_v40 = vld [vmem:[%s9865_s4 + $0x20] sm:$0xff]   ;;  %v1264_v17 = vmul.f32 %v8513_v54, %v1180_v13 }
 0x13f   : > { %v8862_v22 = vpack.c.bf16 %v3030_v35, %v3030_v35  ;;  %v2775_v25 = vld [vmem:[#allocation3 + $0xc8] sm:$0xff]  ;;  %1361 = vst.msk [vmem:[#allocation2 + $0x158] sm:$0xff] %vm862_vm0, %v1329_v14  ;;  %1359 = vst.msk [vmem:[#allocation2 + $0x148] sm:$0xff] %vm862_vm0, %v1327_v20  ;;  %v1628_v63 = vld [vmem:[#allocation3 + $0x5f] sm:$0xff]  ;;  %v1330_v6 = vmax.f32 %v8841_v45, 0.0  ;;  %v1333_v11 = vmax.f32 %v8844_v60, 0.0  ;;  %7414 = vmatpush3.bf16.msra.mxu0 %v7793_v40  ;;  %v1302_v60 = vadd.f32 %v8519_v57, %v1263_v21 }
 0x140   : > { %v8870_v27 = vpack.c.bf16 %v2775_v25, %v2775_v25  ;;  %v2115_v61 = vld [vmem:[#allocation3 + $0x88] sm:$0xff]  ;;  %v2586_v4 = vld [vmem:[#allocation3 + $0x51] sm:$0xff]  ;;  %v2587_v5 = vld [vmem:[#allocation3 + $0x59] sm:$0xff]  ;;  %v1543_v16 = vmax.f32 %v1537_v52, %v1542_v2  ;;  %1364 = vst.msk [vmem:[#allocation2 + $0x170] sm:$0xff] %vm862_vm0, %v1332_v26  ;;  %v8886_v9 = vpack.c.bf16 %v1628_v63, %v1628_v63  ;;  %v1305_v2 = vadd.f32 %v8519_v57, %v1266_v55  ;;  %v8933_v21 = vpop.permute.xlu1 %3579 }
 0x141   : > { %2760 = vst.msk [vmem:[#allocation4 + $0xe4] sm:$0xf] %vm1697_vm3, %v8862_v22  ;;  %v2325_v24 = vld [vmem:[#allocation3 + $0x27] sm:$0xff]  ;;  %v8888_v58 = vpack.c.bf16 %v2586_v4, %v2586_v4  ;;  %v7215_v10 = vpack.c.bf16 %v2587_v5, %v2587_v5  ;;  %v7794_v12 = vld [vmem:[%s9865_s4 + $0x58] sm:$0xff]   ;;  %v7796_v32 = vld [vmem:[%s9865_s4 + $0x50] sm:$0xff]   ;;  %v7159_v56 = vpack.c.bf16 %v2115_v61, %v2115_v61  ;;  %v1331_v8 = vmax.f32 %v1299_v48, 0.0  ;;  %1935 = vrot.lane.b32.xlu0 %v8652_v59, %s8160_s25 }
 0x142   : > { %1496 = vst.msk [vmem:[#allocation3 + $0x68] sm:$0xff] %vm862_vm0, %v1495_v46  ;;  %v7795_v45 = vld [vmem:[%s9865_s4 + $0x18] sm:$0xff]   ;;  %v7778_v51 = vld [vmem:[#allocation4 + $0x20] ss:$12 sps:$4 sm:$0xff]   ;;  %1544 = vst.msk [vmem:[#allocation3 + $0xd8] sm:$0xff] %vm862_vm0, %v1543_v16  ;;  %v1336_v19 = vmax.f32 %v1304_v49, 0.0  ;;  %7415 = vmatprep.subr.bf16.mxu0 %v7794_v12  ;;  %2391 = vrot.lane.b32.xlu1 %v8705_v39, %s8160_s25  ;;  %v1303_v35 = vadd.f32 %v8519_v57, %v1264_v17  ;;  %v8931_v57 = vpack.c.bf16 %v2325_v24, %v2325_v24 }
 0x143   : > { %2888 = vst.msk [vmem:[#allocation4 + $0xe4] sm:$0xf] %vm1826_vm4, %v2844_v7  ;;  %v1334_v54 = vmax.f32 %v1302_v60, 0.0  ;;  %v1337_v15 = vmax.f32 %v1305_v2, 0.0  ;;  %v2453_v14 = vld [vmem:[#allocation3 + $0x28] sm:$0xff]  ;;  %7640 = vmatmul.mubr.msk.bf16.vlgmr.msra.gmra.mxu1 %vm862_vm0, %v7778_v51  ;;  %7416 = vmatpush3.bf16.msra.mxu0 %v7795_v45  ;;  %v7797_v59 = vld [vmem:[%s9865_s4 + $0x10] sm:$0xff]  }
 0x144   : > { %3237 = vst.msk [vmem:[#allocation4 + $0xc4] sm:$0xf] %vm1697_vm3, %v8870_v27  ;;  %1709 = vst.msk [vmem:[#allocation4 + $0x84] sm:$0xf] %vm1697_vm3, %v8886_v9  ;;  %v2114_v20 = vld [vmem:[#allocation3 + $0x80] sm:$0xff]  ;;  %7417 = vmatprep.subr.bf16.mxu0 %v7796_v32  ;;  %v1335_v49 = vmax.f32 %v1303_v35, 0.0  ;;  %v8953_v45 = vpack.c.bf16 %v2453_v14, %v2453_v14 }
 0x145   : > { %1362 = vst.msk [vmem:[#allocation2 + $0x160] sm:$0xff] %vm862_vm0, %v1330_v6  ;;  %1365 = vst.msk [vmem:[#allocation2 + $0x178] sm:$0xff] %vm862_vm0, %v1333_v11  ;;  %v7158_v55 = vpack.c.bf16 %v2114_v20, %v2114_v20  ;;  %v2105_v40 = vld [vmem:[#allocation3 + $0x38] sm:$0xff]  ;;  %2389 = vrot.lane.b32.xlu0 %v8931_v57, %s8160_s25  ;;  %v7800_v12 = vld [vmem:[%s9865_s4 + $0x40] sm:$0xff]  }
 0x146   : > { %2666 = vst.msk [vmem:[#allocation4 + $0x44] sm:$0xf] %vm1697_vm3, %v8888_v58  ;;  %2667 = vst.msk [vmem:[#allocation4 + $0x50] sm:$0xf] %vm1697_vm3, %v7215_v10  ;;  %v1551_v52 = vld [vmem:[#allocation2 + $0x150] ss:$2 sm:$0xff]  ;;  %1913 = vrot.lane.b32.xlu1 %v8803_v18, %s8160_s25  ;;  %v7149_v16 = vpack.c.bf16 %v2105_v40, %v2105_v40 }
 0x147   : > { %1838 = vst.msk [vmem:[#allocation4 + $0x84] sm:$0xf] %vm1826_vm4, %v8494_v38  ;;  %v7798_v38 = vld [vmem:[%s9865_s4 + $0x48] sm:$0xff]   ;;  %v1553_v25 = vld [vmem:[#allocation2 + $0x151] ss:$2 sm:$0xff]  ;;  %7418 = vmatpush3.bf16.msra.mxu0 %v7797_v59 }
 0x148   : > { %2195 = vst.msk [vmem:[#allocation4 + $0xac] sm:$0xf] %vm1697_vm3, %v7159_v56  ;;  %v1546_v26 = vld [vmem:[#allocation2 + $0x140] ss:$2 sm:$0xff]  ;;  %v1554_v46 = vmax.f32 %v1551_v52, %v1553_v25  ;;  %v1548_v48 = vld [vmem:[#allocation2 + $0x141] ss:$2 sm:$0xff]  ;;  %7419 = vmatprep.subr.bf16.mxu0 %v7798_v38 }
 0x149   : > { %1363 = vst.msk [vmem:[#allocation2 + $0x168] sm:$0xff] %vm862_vm0, %v1331_v8  ;;  %1368 = vst.msk [vmem:[#allocation2 + $0x190] sm:$0xff] %vm862_vm0, %v1336_v19  ;;  %v1623_v13 = vld [vmem:[#allocation3 + $0x37] sm:$0xff]  ;;  %v2588_v61 = vld [vmem:[#allocation3 + $0x61] sm:$0xff]  ;;  %v1549_v5 = vmax.f32 %v1546_v26, %v1548_v48  ;;  %2517 = vrot.lane.b32.xlu0 %v8953_v45, %s8158_s16  ;;  %v2848_v8 = vpop.permute.xlu1 %2847 }
 0x14a   : > { %1366 = vst.msk [vmem:[#allocation2 + $0x180] sm:$0xff] %vm862_vm0, %v1334_v54  ;;  %1369 = vst.msk [vmem:[#allocation2 + $0x198] sm:$0xff] %vm862_vm0, %v1337_v15  ;;  %v2589_v63 = vld [vmem:[#allocation3 + $0x69] sm:$0xff]  ;;  %v7087_v7 = vpack.c.bf16 %v1623_v13, %v1623_v13  ;;  %v8942_v6 = vpack.c.bf16 %v2588_v61, %v2588_v61  ;;  %v2682_v11 = vld [vmem:[#allocation3 + $0xdf] sm:$0xff]  ;;  %2042 = vrot.lane.b32.xlu1 %v8705_v39, %s8158_s16 }
 0x14b   : > { %v1630_v4 = vld [vmem:[#allocation3 + $0x6f] sm:$0xff]  ;;  %2194 = vst.msk [vmem:[#allocation4 + $0xa0] sm:$0xf] %vm1697_vm3, %v7158_v55  ;;  %v7217_v24 = vpack.c.bf16 %v2589_v63, %v2589_v63  ;;  %v8955_v51 = vpack.c.bf16 %v2682_v11, %v2682_v11  ;;  %v1555_v60 = vmax.f32 %v1549_v5, %v1554_v46  ;;  %2185 = vst.msk [vmem:[#allocation4 + $0x34] sm:$0xf] %vm1697_vm3, %v7149_v16  ;;  %v3637_v35 = vld [vmem:[#allocation3 + $0xd9] sm:$0xff] }
 0x14c   : > { %v8944_v10 = vpack.c.bf16 %v1630_v4, %v1630_v4  ;;  %1367 = vst.msk [vmem:[#allocation2 + $0x188] sm:$0xff] %vm862_vm0, %v1335_v49  ;;  %v7799_v18 = vld [vmem:[%s9865_s4 + $0x8] sm:$0xff]   ;;  %v1563_v17 = vld [vmem:[#allocation2 + $0x170] ss:$2 sm:$0xff]  ;;  %v1565_v56 = vld [vmem:[#allocation2 + $0x171] ss:$2 sm:$0xff]  ;;  %v8975_v59 = vpack.c.bf16 %v3637_v35, %v3637_v35 }
 0x14d   : > { %v7779_v32 = vld [vmem:[#allocation4 + $0x38] ss:$12 sps:$4 sm:$0xff]   ;;  %1704 = vst.msk [vmem:[#allocation4 + $0x48] sm:$0xf] %vm1697_vm3, %v7087_v7  ;;  %v2338_v2 = vld [vmem:[#allocation3 + $0x8f] sm:$0xff]  ;;  %v1566_v19 = vmax.f32 %v1563_v17, %v1565_v56  ;;  %7420 = vmatpush3.bf16.msra.mxu0 %v7799_v18  ;;  %2265 = vrot.lane.b32.xlu0 %v8717_v0, %s8159_s24 }
 0x14e   : > { %2668 = vst.msk [vmem:[#allocation4 + $0x5c] sm:$0xf] %vm1697_vm3, %v8942_v6  ;;  %2669 = vst.msk [vmem:[#allocation4 + $0x68] sm:$0xf] %vm1697_vm3, %v7217_v24  ;;  %7643 = vmatprep.mubr.msk.bf16.mxu1 %vm862_vm0, %v7779_v32  ;;  %7421 = vmatprep.subr.bf16.mxu0 %v7800_v12  ;;  %v2459_v20 = vld [vmem:[#allocation3 + $0x58] sm:$0xff]  ;;  %v2679_v52 = vld [vmem:[#allocation3 + $0xc7] sm:$0xff]  ;;  %v7190_v40 = vpack.c.bf16 %v2338_v2, %v2338_v2 }
 0x14f   : > { %1711 = vst.msk [vmem:[#allocation4 + $0x9c] sm:$0xf] %vm1697_vm3, %v8944_v10  ;;  %2762 = vst.msk [vmem:[#allocation4 + $0xfc] sm:$0xf] %vm1697_vm3, %v8955_v51  ;;  %v8982_v55 = vpack.c.bf16 %v2459_v20, %v2459_v20  ;;  %v7227_v46 = vpack.c.bf16 %v2679_v52, %v2679_v52  ;;  %v2107_v48 = vld [vmem:[#allocation3 + $0x48] sm:$0xff]  ;;  %2287 = vrot.lane.b32.xlu1 %v8719_v1, %s8159_s24  ;;  %v3159_v5 = vld [vmem:[#allocation3 + $0xd8] sm:$0xff] }
 0x150   : > { %1840 = vst.msk [vmem:[#allocation4 + $0x9c] sm:$0xf] %vm1826_vm4, %v8499_v42  ;;  %v1558_v54 = vld [vmem:[#allocation2 + $0x160] ss:$2 sm:$0xff]  ;;  %v1560_v15 = vld [vmem:[#allocation2 + $0x161] ss:$2 sm:$0xff]  ;;  %v7151_v63 = vpack.c.bf16 %v2107_v48, %v2107_v48  ;;  %v7291_v7 = vpack.c.bf16 %v3159_v5, %v3159_v5 }
 0x151   : > { %1556 = vst.msk [vmem:[#allocation3 + $0xe8] sm:$0xff] %vm862_vm0, %v1555_v60  ;;  %v1561_v14 = vmax.f32 %v1558_v54, %v1560_v15  ;;  %v1575_v39 = vld [vmem:[#allocation2 + $0x190] ss:$2 sm:$0xff]  ;;  %v1577_v38 = vld [vmem:[#allocation2 + $0x191] ss:$2 sm:$0xff]  ;;  %v7801_v42 = vld [vmem:[%s9865_s4] sm:$0xff]   ;;  %2040 = vrot.lane.b32.xlu0 %v8931_v57, %s8158_s16 }
 0x152   : > { %2890 = vst.msk [vmem:[#allocation4 + $0xfc] sm:$0xf] %vm1826_vm4, %v2848_v8  ;;  %v1578_v26 = vmax.f32 %v1575_v39, %v1577_v38  ;;  %v1625_v49 = vld [vmem:[#allocation3 + $0x47] sm:$0xff]  ;;  %7422 = vmatpush3.bf16.msra.mxu0 %v7801_v42  ;;  %v2681_v24 = vld [vmem:[#allocation3 + $0xd7] sm:$0xff]  ;;  %v9023_v38 = vpop.permute.xlu1 %3583 }
 0x153   : > { %v1567_v25 = vmax.f32 %v1561_v14, %v1566_v19  ;;  %3717 = vst.msk [vmem:[#allocation4 + $0xc8] sm:$0xf] %vm1697_vm3, %v8975_v59  ;;  %v1570_v13 = vld [vmem:[#allocation2 + $0x180] ss:$2 sm:$0xff]  ;;  %v1572_v61 = vld [vmem:[#allocation2 + $0x181] ss:$2 sm:$0xff]  ;;  %v7089_v4 = vpack.c.bf16 %v1625_v49, %v1625_v49  ;;  %v7229_v12 = vpack.c.bf16 %v2681_v24, %v2681_v24  ;;  %2415 = vrot.lane.b32.xlu1 %v7190_v40, %s8160_s25 }
 0x154   : > { %v1573_v16 = vmax.f32 %v1570_v13, %v1572_v61  ;;  %2759 = vst.msk [vmem:[#allocation4 + $0xd8] sm:$0xf] %vm1697_vm3, %v7227_v46  ;;  %2189 = vst.msk [vmem:[#allocation4 + $0x64] sm:$0xf] %vm1697_vm3, %v8982_v55  ;;  %v1627_v11 = vld [vmem:[#allocation3 + $0x57] sm:$0xff]  ;;  %v2337_v14 = vld [vmem:[#allocation3 + $0x87] sm:$0xff] }
 0x155   : > { %1568 = vst.msk [vmem:[#allocation3 + $0xf8] sm:$0xff] %vm862_vm0, %v1567_v25  ;;  %v7780_v18 = vld [vmem:[#allocation4 + $0x50] ss:$12 sps:$4 sm:$0xff]   ;;  %v7091_v32 = vpack.c.bf16 %v1627_v11, %v1627_v11  ;;  %v7781_v60 = vld [vmem:[#allocation4 + $0x68] ss:$12 sps:$4 sm:$0xff]   ;;  %1786 = vrot.lane.b32.xlu0 %v8953_v45, %s8159_s24  ;;  %v7189_v45 = vpack.c.bf16 %v2337_v14, %v2337_v14 }
 0x156   : > { %2187 = vst.msk [vmem:[#allocation4 + $0x4c] sm:$0xf] %vm1697_vm3, %v7151_v63  ;;  %1706 = vst.msk [vmem:[#allocation4 + $0x60] sm:$0xf] %vm1697_vm3, %v7089_v4  ;;  %v1579_v17 = vmax.f32 %v1573_v16, %v1578_v26  ;;  %v2104_v8 = vld [vmem:[#allocation3 + $0x30] sm:$0xff]  ;;  %7644 = vmatmul.mubr.msk.bf16.gmra.mxu1 %vm862_vm0, %v7780_v18  ;;  %v2465_v42 = vld [vmem:[#allocation3 + $0x88] sm:$0xff]  ;;  %v2852_v48 = vpop.permute.xlu1 %2851 }
 0x157   : > { %3239 = vst.msk [vmem:[#allocation4 + $0xdc] sm:$0xf] %vm1697_vm3, %v7291_v7  ;;  %2761 = vst.msk [vmem:[#allocation4 + $0xf0] sm:$0xf] %vm1697_vm3, %v7229_v12  ;;  %v7148_v19 = vpack.c.bf16 %v2104_v8, %v2104_v8  ;;  %7647 = vmatprep.mubr.msk.bf16.mxu1 %vm862_vm0, %v7781_v60  ;;  %1937 = vrot.lane.b32.xlu1 %v8719_v1, %s8160_s25  ;;  %v7783_v15 = vld [vmem:[#allocation4 + $0x98] ss:$12 sps:$4 sm:$0xff]   ;;  %v7205_v25 = vpack.c.bf16 %v2465_v42, %v2465_v42 }
 0x158   : > { %v3256_v2 = vld [vmem:[#allocation3 + $0xe1] sm:$0xff]  ;;  %1708 = vst.msk [vmem:[#allocation4 + $0x78] sm:$0xf] %vm1697_vm3, %v7091_v32  ;;  %v3639_v20 = vld [vmem:[#allocation3 + $0xe9] sm:$0xff]  ;;  %v9044_v61 = vld [vmem:[%s9863_s2] ss:$0 sm:$0xff] }
 0x159   : > { %v8998_v56 = vpack.c.bf16 %v3256_v2, %v3256_v2  ;;  %1580 = vst.msk [vmem:[#allocation3 + $0x108] sm:$0xff] %vm862_vm0, %v1579_v17  ;;  %v7782_v35 = vld [vmem:[#allocation4 + $0x80] ss:$12 sps:$4 sm:$0xff]   ;;  %1915 = vrot.lane.b32.xlu0 %v8717_v0, %s8160_s25  ;;  %v9030_v0 = vpack.c.bf16 %v3639_v20, %v3639_v20  ;;  %v7790_v52 = vld [vmem:[#allocation4 + $0xb0] ss:$12 sps:$4 sm:$0xff]  }
 0x15a   : > { %2184 = vst.msk [vmem:[#allocation4 + $0x28] sm:$0xf] %vm1697_vm3, %v7148_v19  ;;  %v3511_v46 = vld [vmem:[#allocation3 + $0xe8] sm:$0xff]  ;;  %v9056_v7 = vld [vmem:[%s9864_s3] ss:$0 sm:$0xff]  ;;  %v9062_v32 = vpop.permute.xlu1 %3587  ;;  %v2327_v8 = vld [vmem:[#allocation3 + $0x37] sm:$0xff] }
 0x15b   : > { %3718 = vst.msk [vmem:[#allocation4 + $0xd4] sm:$0xf] %vm1697_vm3, %v8998_v56  ;;  %2066 = vrot.lane.b32.xlu1 %v7190_v40, %s8158_s16  ;;  %3719 = vst.msk [vmem:[#allocation4 + $0xe0] sm:$0xf] %vm1697_vm3, %v9030_v0  ;;  %v9037_v49 = vpack.c.bf16 %v3511_v46, %v3511_v46  ;;  %v7625_v40 = vpop.f32.mrf.mxu1  ;;  %v2684_v13 = vld [vmem:[#allocation3 + $0xef] sm:$0xff]  ;;  %v2902_v16 = vld [vmem:[#allocation3 + $0xc1] sm:$0xff] }
 0x15c   : > { %v3258_v57 = vld [vmem:[#allocation3 + $0xf1] sm:$0xff]  ;;  %v1269_v63 = vmul.f32 %v9044_v61, %v7625_v40  ;;  %v7232_v4 = vpack.c.bf16 %v2684_v13, %v2684_v13  ;;  %v7258_v19 = vpack.c.bf16 %v2902_v16, %v2902_v16  ;;  %v2686_v20 = vld [vmem:[#allocation3 + $0xff] sm:$0xff] }
 0x15d   : > { %v9012_v54 = vpack.c.bf16 %v3258_v57, %v3258_v57  ;;  %2413 = vrot.lane.b32.xlu0 %v7189_v45, %s8160_s25  ;;  %3241 = vst.msk [vmem:[#allocation4 + $0xf4] sm:$0xf] %vm1697_vm3, %v9037_v49  ;;  %v1193_v5 = vpop.f32.mrf.mxu1 }
 0x15e   : > { %7648 = vmatmul.mubr.msk.bf16.gmra.mxu1 %vm862_vm0, %v7782_v35  ;;  %v1308_v24 = vadd.f32 %v9056_v7, %v1269_v63  ;;  %v1267_v11 = vmul.f32 %v9044_v61, %v1193_v5  ;;  %2764 = vst.msk [vmem:[#allocation4 + $0x114] sm:$0xf] %vm1697_vm3, %v7232_v4  ;;  %v2856_v46 = vpop.permute.xlu1 %2855 }
 0x15f   : > { %3720 = vst.msk [vmem:[#allocation4 + $0xec] sm:$0xf] %vm1697_vm3, %v9012_v54  ;;  %7651 = vmatprep.mubr.msk.bf16.mxu1 %vm862_vm0, %v7783_v15  ;;  %2267 = vrot.lane.b32.xlu1 %v8760_v34, %s8159_s24  ;;  %v7626_v12 = vpop.f32.mrf.mxu1  ;;  %v2106_v15 = vld [vmem:[#allocation3 + $0x40] sm:$0xff] }
 0x160   : > { %v3260_v39 = vld [vmem:[#allocation3 + $0x101] sm:$0xff]  ;;  %2892 = vst.msk [vmem:[#allocation4 + $0x114] sm:$0xf] %vm1826_vm4, %v2852_v48  ;;  %v1306_v60 = vadd.f32 %v9056_v7, %v1267_v11  ;;  %v1270_v2 = vmul.f32 %v9044_v61, %v7626_v12  ;;  %v7150_v42 = vpack.c.bf16 %v2106_v15, %v2106_v15  ;;  %v3158_v15 = vld [vmem:[#allocation3 + $0xd0] sm:$0xff] }
 0x161   : > { %v9020_v1 = vpack.c.bf16 %v3260_v39, %v3260_v39  ;;  %2541 = vrot.lane.b32.xlu0 %v7205_v25, %s8158_s16  ;;  %v1196_v57 = vpop.f32.mrf.mxu1 }
 0x162   : > { %v7791_v26 = vld [vmem:[#allocation4 + $0xc8] ss:$12 sps:$4 sm:$0xff]   ;;  %v1338_v35 = vmax.f32 %v1306_v60, 0.0  ;;  %v1309_v14 = vadd.f32 %v9056_v7, %v1270_v2  ;;  %v1268_v39 = vmul.f32 %v9044_v61, %v1196_v57  ;;  %2186 = vst.msk [vmem:[#allocation4 + $0x40] sm:$0xf] %vm1697_vm3, %v7150_v42 }
 0x163   : > { %3722 = vst.msk [vmem:[#allocation4 + $0x104] sm:$0xf] %vm1697_vm3, %v9020_v1  ;;  %2395 = vrot.lane.b32.xlu1 %v8758_v29, %s8160_s25  ;;  %v7629_v13 = vpop.f32.mrf.mxu1 }
 0x164   : > { %1370 = vst.msk [vmem:[#allocation2 + $0x1a0] sm:$0xff] %vm862_vm0, %v1338_v35  ;;  %v1307_v25 = vadd.f32 %v9056_v7, %v1268_v39  ;;  %v1273_v63 = vmul.f32 %v9044_v61, %v7629_v13  ;;  %v2461_v35 = vld [vmem:[#allocation3 + $0x68] sm:$0xff] }
 0x165   : > { %2289 = vrot.lane.b32.xlu0 %v8747_v30, %s8159_s24  ;;  %v2683_v30 = vld [vmem:[#allocation3 + $0xe7] sm:$0xff]  ;;  %v1209_v16 = vpop.f32.mrf.mxu1 }
 0x166   : > { %7652 = vmatmul.mubr.msk.bf16.gmra.mxu1 %vm862_vm0, %v7790_v52  ;;  %v7805_v18 = vld [vmem:[#allocation4 + $0xe0] ss:$12 sps:$4 sm:$0xff]   ;;  %v7231_v17 = vpack.c.bf16 %v2683_v30, %v2683_v30  ;;  %v7179_v52 = vpack.c.bf16 %v2327_v8, %v2327_v8  ;;  %v1339_v48 = vmax.f32 %v1307_v25, 0.0  ;;  %v1271_v12 = vmul.f32 %v9044_v61, %v1209_v16 }
 0x167   : > { %7655 = vmatprep.mubr.msk.bf16.mxu1 %vm862_vm0, %v7791_v26  ;;  %1917 = vrot.lane.b32.xlu1 %v8760_v34, %s8160_s25  ;;  %v1340_v34 = vmax.f32 %v1308_v24, 0.0  ;;  %v2455_v26 = vld [vmem:[#allocation3 + $0x38] sm:$0xff]  ;;  %v2333_v24 = vld [vmem:[#allocation3 + $0x67] sm:$0xff]  ;;  %v9105_v25 = vpack.c.bf16 %v2461_v35, %v2461_v35 }
 0x168   : > { %2763 = vst.msk [vmem:[#allocation4 + $0x108] sm:$0xf] %vm1697_vm3, %v7231_v17  ;;  %v7195_v40 = vpack.c.bf16 %v2455_v26, %v2455_v26  ;;  %v9093_v60 = vpack.c.bf16 %v2333_v24, %v2333_v24  ;;  %v1310_v8 = vadd.f32 %v9056_v7, %v1271_v12 }
 0x169   : > { %2064 = vrot.lane.b32.xlu0 %v7189_v45, %s8158_s16  ;;  %1372 = vst.msk [vmem:[#allocation2 + $0x1b0] sm:$0xff] %vm862_vm0, %v1340_v34  ;;  %v1341_v45 = vmax.f32 %v1309_v14, 0.0  ;;  %1371 = vst.msk [vmem:[#allocation2 + $0x1a8] sm:$0xff] %vm862_vm0, %v1339_v48  ;;  %v7630_v34 = vpop.f32.mrf.mxu1  ;;  %v3253_v48 = vld [vmem:[#allocation3 + $0xc9] sm:$0xff] }
 0x16a   : > { %1710 = vst.msk [vmem:[#allocation4 + $0x90] sm:$0xf] %vm1697_vm3, %v9093_v60  ;;  %v1342_v39 = vmax.f32 %v1310_v8, 0.0  ;;  %2191 = vst.msk [vmem:[#allocation4 + $0x7c] sm:$0xf] %vm1697_vm3, %v9105_v25  ;;  %v2108_v8 = vld [vmem:[#allocation3 + $0x50] sm:$0xff] }
 0x16b   : > { %2046 = vrot.lane.b32.xlu1 %v8758_v29, %s8158_s16  ;;  %v7234_v29 = vpack.c.bf16 %v2686_v20, %v2686_v20  ;;  %1373 = vst.msk [vmem:[#allocation2 + $0x1b8] sm:$0xff] %vm862_vm0, %v1341_v45  ;;  %v1212_v57 = vpop.f32.mrf.mxu1  ;;  %v7290_v45 = vpack.c.bf16 %v3158_v15, %v3158_v15 }
 0x16c   : > { %v1272_v20 = vmul.f32 %v9044_v61, %v1212_v57  ;;  %1374 = vst.msk [vmem:[#allocation2 + $0x1c0] sm:$0xff] %vm862_vm0, %v1342_v39  ;;  %v7152_v39 = vpack.c.bf16 %v2108_v8, %v2108_v8 }
 0x16d   : > { %2393 = vrot.lane.b32.xlu0 %v7179_v52, %s8160_s25  ;;  %2766 = vst.msk [vmem:[#allocation4 + $0x12c] sm:$0xf] %vm1697_vm3, %v7234_v29  ;;  %3238 = vst.msk [vmem:[#allocation4 + $0xd0] sm:$0xf] %vm1697_vm3, %v7290_v45  ;;  %v7633_v16 = vpop.f32.mrf.mxu1 }
 0x16e   : > { %7656 = vmatmul.mubr.msk.bf16.gmra.mxu1 %vm862_vm0, %v7805_v18  ;;  %2894 = vst.msk [vmem:[#allocation4 + $0x12c] sm:$0xf] %vm1826_vm4, %v2856_v46  ;;  %v1312_v18 = vadd.f32 %v9056_v7, %v1273_v63  ;;  %v3254_v46 = vld [vmem:[#allocation3 + $0xd1] sm:$0xff]  ;;  %v7305_v63 = vpack.c.bf16 %v3253_v48, %v3253_v48  ;;  %v3518_v48 = vld [vmem:[#allocation3 + $0x120] sm:$0xff] }
 0x16f   : > { %2967 = vrot.lane.b32.xlu1 %v7258_v19, %s8160_s25  ;;  %v1274_v19 = vmul.f32 %v9044_v61, %v7630_v34  ;;  %v7306_v13 = vpack.c.bf16 %v3254_v46, %v3254_v46  ;;  %2188 = vst.msk [vmem:[#allocation4 + $0x58] sm:$0xf] %vm1697_vm3, %v7152_v39 }
 0x170   : > { %v1582_v30 = vld [vmem:[#allocation2 + $0x1a0] ss:$2 sm:$0xff]  ;;  %v1344_v17 = vmax.f32 %v1312_v18, 0.0 }
 0x171   : > { %2521 = vrot.lane.b32.xlu0 %v7195_v40, %s8158_s16  ;;  %v1313_v42 = vadd.f32 %v9056_v7, %v1274_v19 }
 0x172   : > { %v1587_v4 = vld [vmem:[#allocation2 + $0x1b0] ss:$2 sm:$0xff]  ;;  %v1589_v5 = vld [vmem:[#allocation2 + $0x1b1] ss:$2 sm:$0xff]  ;;  %1376 = vst.msk [vmem:[#allocation2 + $0x1d0] sm:$0xff] %vm862_vm0, %v1344_v17 }
 0x173   : > { %3095 = vrot.lane.b32.xlu1 %v8862_v22, %s8158_s16  ;;  %v1590_v11 = vmax.f32 %v1587_v4, %v1589_v5  ;;  %v1584_v22 = vld [vmem:[#allocation2 + $0x1a1] ss:$2 sm:$0xff]  ;;  %v1345_v29 = vmax.f32 %v1313_v42, 0.0 }
 0x174   : > { %v1585_v2 = vmax.f32 %v1582_v30, %v1584_v22  ;;  %v3029_v4 = vld [vmem:[#allocation3 + $0xc7] sm:$0xff]  ;;  %v1225_v30 = vpop.f32.mrf.mxu1 }
 0x175   : > { %2269 = vrot.lane.b32.xlu0 %v8762_v47, %s8159_s24  ;;  %1377 = vst.msk [vmem:[#allocation2 + $0x1d8] sm:$0xff] %vm862_vm0, %v1345_v29 }
 0x176   : > { %v1591_v14 = vmax.f32 %v1585_v2, %v1590_v11  ;;  %v1277_v11 = vmul.f32 %v9044_v61, %v7633_v16  ;;  %v1275_v2 = vmul.f32 %v9044_v61, %v1225_v30  ;;  %v7634_v17 = vpop.f32.mrf.mxu1 }
 0x177   : > { %2271 = vrot.lane.b32.xlu1 %v8822_v50, %s8159_s24 }
 0x178   : > { %1592 = vst.msk [vmem:[#allocation3 + $0x118] sm:$0xff] %vm862_vm0, %v1591_v14  ;;  %v1316_v34 = vadd.f32 %v9056_v7, %v1277_v11  ;;  %v1314_v35 = vadd.f32 %v9056_v7, %v1275_v2  ;;  %v1278_v14 = vmul.f32 %v9044_v61, %v7634_v17 }
 0x179   : > { %2044 = vrot.lane.b32.xlu0 %v7179_v52, %s8158_s16  ;;  %v1311_v52 = vadd.f32 %v9056_v7, %v1272_v20  ;;  %v1228_v20 = vpop.f32.mrf.mxu1 }
 0x17a   : > { %v1348_v15 = vmax.f32 %v1316_v34, 0.0  ;;  %v1346_v45 = vmax.f32 %v1314_v35, 0.0  ;;  %v1317_v29 = vadd.f32 %v9056_v7, %v1278_v14  ;;  %v3160_v35 = vld [vmem:[#allocation3 + $0xe0] sm:$0xff] }
 0x17b   : > { %2399 = vrot.lane.b32.xlu1 %v8820_v3, %s8160_s25  ;;  %v1343_v26 = vmax.f32 %v1311_v52, 0.0  ;;  %v1276_v52 = vmul.f32 %v9044_v61, %v1228_v20  ;;  %v7292_v39 = vpack.c.bf16 %v3160_v35, %v3160_v35 }
 0x17c   : > { %v1601_v5 = vld [vmem:[#allocation2 + $0x1d1] ss:$2 sm:$0xff]  ;;  %1380 = vst.msk [vmem:[#allocation2 + $0x1f0] sm:$0xff] %vm862_vm0, %v1348_v15  ;;  %1378 = vst.msk [vmem:[#allocation2 + $0x1e0] sm:$0xff] %vm862_vm0, %v1346_v45 }
 0x17d   : > { %1790 = vrot.lane.b32.xlu0 %v7195_v40, %s8159_s24  ;;  %1375 = vst.msk [vmem:[#allocation2 + $0x1c8] sm:$0xff] %vm862_vm0, %v1343_v26  ;;  %v1599_v40 = vld [vmem:[#allocation2 + $0x1d0] ss:$2 sm:$0xff]  ;;  %v1349_v26 = vmax.f32 %v1317_v29, 0.0  ;;  %v1315_v46 = vadd.f32 %v9056_v7, %v1276_v52 }
 0x17e   : > { %v1602_v24 = vmax.f32 %v1599_v40, %v1601_v5  ;;  %v9150_v40 = vpack.c.bf16 %v3518_v48, %v3518_v48  ;;  %v2329_v5 = vld [vmem:[#allocation3 + $0x47] sm:$0xff]  ;;  %3240 = vst.msk [vmem:[#allocation4 + $0xe8] sm:$0xf] %vm1697_vm3, %v7292_v39 }
 0x17f   : > { %1921 = vrot.lane.b32.xlu1 %v8822_v50, %s8160_s25  ;;  %v3262_v50 = vld [vmem:[#allocation3 + $0x111] sm:$0xff]  ;;  %v3390_v19 = vld [vmem:[#allocation3 + $0x11f] sm:$0xff]  ;;  %1381 = vst.msk [vmem:[#allocation2 + $0x1f8] sm:$0xff] %vm862_vm0, %v1349_v26  ;;  %v1347_v16 = vmax.f32 %v1315_v46, 0.0  ;;  %v7181_v30 = vpack.c.bf16 %v2329_v5, %v2329_v5  ;;  %v3643_v5 = vld [vmem:[#allocation3 + $0x109] sm:$0xff] }
 0x180   : > { %v9125_v18 = vpack.c.bf16 %v3262_v50, %v3262_v50  ;;  %v9136_v42 = vpack.c.bf16 %v3390_v19, %v3390_v19  ;;  %v2784_v50 = vld [vmem:[#allocation3 + $0x110] sm:$0xff]  ;;  %3248 = vst.msk [vmem:[#allocation4 + $0x148] sm:$0xf] %vm1697_vm3, %v9150_v40 }
 0x181   : > { %1919 = vrot.lane.b32.xlu0 %v8762_v47, %s8160_s25  ;;  %1379 = vst.msk [vmem:[#allocation2 + $0x1e8] sm:$0xff] %vm862_vm0, %v1347_v16  ;;  %v9163_v7 = vpack.c.bf16 %v2784_v50, %v2784_v50  ;;  %v3384_v16 = vld [vmem:[#allocation3 + $0xef] sm:$0xff] }
 0x182   : > { %3724 = vst.msk [vmem:[#allocation4 + $0x11c] sm:$0xf] %vm1697_vm3, %v9125_v18  ;;  %2770 = vst.msk [vmem:[#allocation4 + $0x15c] sm:$0xf] %vm1697_vm3, %v9136_v42 }
 0x183   : > { %2050 = vrot.lane.b32.xlu1 %v8820_v3, %s8158_s16  ;;  %v7273_v3 = vpack.c.bf16 %v3029_v4, %v3029_v4  ;;  %v3385_v4 = vld [vmem:[#allocation3 + $0xf7] sm:$0xff]  ;;  %3246 = vst.msk [vmem:[#allocation4 + $0x130] sm:$0xf] %vm1697_vm3, %v9163_v7 }
 0x184   : > { %v1594_v47 = vld [vmem:[#allocation2 + $0x1c0] ss:$2 sm:$0xff]  ;;  %v1596_v12 = vld [vmem:[#allocation2 + $0x1c1] ss:$2 sm:$0xff]  ;;  %v9152_v61 = vpack.c.bf16 %v3385_v4, %v3385_v4 }
 0x185   : > { %3317 = vrot.lane.b32.xlu0 %v7305_v63, %s8159_s24  ;;  %v1597_v22 = vmax.f32 %v1594_v47, %v1596_v12 }
 0x186   : > { %2765 = vst.msk [vmem:[#allocation4 + $0x120] sm:$0xf] %vm1697_vm3, %v9152_v61  ;;  %v1613_v34 = vld [vmem:[#allocation2 + $0x1f1] ss:$2 sm:$0xff] }
 0x187   : > { %3319 = vrot.lane.b32.xlu1 %v7306_v13, %s8159_s24  ;;  %v1603_v57 = vmax.f32 %v1597_v22, %v1602_v24  ;;  %v3641_v24 = vld [vmem:[#allocation3 + $0xf9] sm:$0xff] }
 0x188   : > { %v1611_v22 = vld [vmem:[#allocation2 + $0x1f0] ss:$2 sm:$0xff]  ;;  %v1608_v15 = vld [vmem:[#allocation2 + $0x1e1] ss:$2 sm:$0xff] }
 0x189   : > { %3093 = vrot.lane.b32.xlu0 %v7273_v3, %s8158_s16  ;;  %1604 = vst.msk [vmem:[#allocation3 + $0x128] sm:$0xff] %vm862_vm0, %v1603_v57  ;;  %v1614_v19 = vmax.f32 %v1611_v22, %v1613_v34  ;;  %v1606_v57 = vld [vmem:[#allocation2 + $0x1e0] ss:$2 sm:$0xff] }
 0x18a   : > { %v1609_v14 = vmax.f32 %v1606_v57, %v1608_v15  ;;  %v2110_v22 = vld [vmem:[#allocation3 + $0x60] sm:$0xff]  ;;  %v3515_v34 = vld [vmem:[#allocation3 + $0x108] sm:$0xff] }
 0x18b   : > { %3447 = vrot.lane.b32.xlu1 %v8955_v51, %s8160_s25 }
 0x18c   : > { %v1615_v52 = vmax.f32 %v1609_v14, %v1614_v19  ;;  %v2688_v19 = vld [vmem:[#allocation3 + $0x10f] sm:$0xff] }
 0x18d   : > { %2841 = vrot.lane.b32.xlu0 %v8870_v27, %s8159_s24  ;;  %v3513_v27 = vld [vmem:[#allocation3 + $0xf8] sm:$0xff]  ;;  %v7236_v14 = vpack.c.bf16 %v2688_v19, %v2688_v19 }
 0x18e   : > { %v9167_v11 = vpack.c.bf16 %v3513_v27, %v3513_v27  ;;  %1616 = vst.msk [vmem:[#allocation3 + $0x138] sm:$0xff] %vm862_vm0, %v1615_v52  ;;  %v3520_v27 = vld [vmem:[#allocation3 + $0x130] sm:$0xff] }
 0x18f   : > { %2971 = vrot.lane.b32.xlu1 %v7306_v13, %s8160_s25  ;;  %v9165_v13 = vpack.c.bf16 %v3641_v24, %v3641_v24  ;;  %2768 = vst.msk [vmem:[#allocation4 + $0x144] sm:$0xf] %vm1697_vm3, %v7236_v14 }
 0x190   : > { %3243 = vst.msk [vmem:[#allocation4 + $0x10c] sm:$0xf] %vm1697_vm3, %v9167_v11  ;;  %v3392_v26 = vld [vmem:[#allocation3 + $0x12f] sm:$0xff] }
 0x191   : > { %2969 = vrot.lane.b32.xlu0 %v7305_v63, %s8160_s25  ;;  %v2262_v47 = vpop.permute.xlu1 %2261  ;;  %3721 = vst.msk [vmem:[#allocation4 + $0xf8] sm:$0xf] %vm1697_vm3, %v9165_v13  ;;  %v3264_v63 = vld [vmem:[#allocation3 + $0x121] sm:$0xff]  ;;  %v9198_v46 = vpack.c.bf16 %v3392_v26, %v3392_v26  ;;  %v3647_v14 = vld [vmem:[#allocation3 + $0x129] sm:$0xff] }
 0x192   : > { %v2037_v12 = vpop.permute.xlu0 %2036  ;;  %2309 = vst.msk [vmem:[#allocation4 + $0x4] sm:$0xf] %vm1826_vm4, %v2262_v47  ;;  %v9180_v3 = vpack.c.bf16 %v3264_v63, %v3264_v63  ;;  %v3387_v47 = vld [vmem:[#allocation3 + $0x107] sm:$0xff] }
 0x193   : > { %3099 = vrot.lane.b32.xlu1 %v8955_v51, %s8158_s16  ;;  %2085 = vst.msk [vmem:[#allocation4] sm:$0xf] %vm2084_vm6, %v2037_v12  ;;  %v2457_v51 = vld [vmem:[#allocation3 + $0x48] sm:$0xff]  ;;  %v9220_v12 = vpack.c.bf16 %v3520_v27, %v3520_v27 }
 0x194   : > { %v7197_v8 = vpack.c.bf16 %v2457_v51, %v2457_v51  ;;  %3726 = vst.msk [vmem:[#allocation4 + $0x134] sm:$0xf] %vm1697_vm3, %v9180_v3  ;;  %2772 = vst.msk [vmem:[#allocation4 + $0x174] sm:$0xf] %vm1697_vm3, %v9198_v46 }
 0x195   : > { %2397 = vrot.lane.b32.xlu0 %v7181_v30, %s8160_s25  ;;  %v1910_v2 = vpop.permute.xlu1 %1909  ;;  %3250 = vst.msk [vmem:[#allocation4 + $0x160] sm:$0xf] %vm1697_vm3, %v9220_v12  ;;  %v3266_v39 = vld [vmem:[#allocation3 + $0x131] sm:$0xff] }
 0x196   : > { %v1783_v17 = vpop.permute.xlu0 %1782  ;;  %1957 = vst.msk [vmem:[#allocation4 + $0xc] sm:$0xf] %vm1955_vm5, %v1910_v2  ;;  %v7154_v2 = vpack.c.bf16 %v2110_v22, %v2110_v22 }
 0x197   : > { %2275 = vrot.lane.b32.xlu1 %v8888_v58, %s8159_s24  ;;  %1829 = vst.msk [vmem:[#allocation4 + $0x18] sm:$0xf] %vm1826_vm4, %v1783_v17  ;;  %v9233_v17 = vpack.c.bf16 %v3515_v34, %v3515_v34  ;;  %v3522_v34 = vld [vmem:[#allocation3 + $0x140] sm:$0xff] }
 0x198   : > { %v7809_v20 = vld [vmem:[#allocation4 + $0xf8] ss:$12 sps:$4 sm:$0xff]   ;;  %2190 = vst.msk [vmem:[#allocation4 + $0x70] sm:$0xf] %vm1697_vm3, %v7154_v2  ;;  %v9285_v2 = vpack.c.bf16 %v3522_v34, %v3522_v34 }
 0x199   : > { %2525 = vrot.lane.b32.xlu0 %v7197_v8, %s8158_s16  ;;  %v2039_v45 = vpop.permute.xlu1 %2038  ;;  %7659 = vmatprep.mubr.msk.bf16.mxu1 %vm862_vm0, %v7809_v20  ;;  %3245 = vst.msk [vmem:[#allocation4 + $0x124] sm:$0xf] %vm1697_vm3, %v9233_v17  ;;  %v9246_v20 = vpack.c.bf16 %v3266_v39, %v3266_v39 }
 0x19a   : > { %v1912_v29 = vpop.permute.xlu0 %1911  ;;  %2086 = vst.msk [vmem:[#allocation4 + $0xc] sm:$0xf] %vm2084_vm6, %v2039_v45 }
 0x19b   : > { %2403 = vrot.lane.b32.xlu1 %v8886_v9, %s8160_s25  ;;  %1958 = vst.msk [vmem:[#allocation4 + $0x18] sm:$0xf] %vm1955_vm5, %v1912_v29 }
 0x19c   : > { %3728 = vst.msk [vmem:[#allocation4 + $0x14c] sm:$0xf] %vm1697_vm3, %v9246_v20  ;;  %3252 = vst.msk [vmem:[#allocation4 + $0x178] sm:$0xf] %vm1697_vm3, %v9285_v2 }
 0x19d   : > { %2273 = vrot.lane.b32.xlu0 %v8824_v44, %s8159_s24  ;;  %v2284_v48 = vpop.permute.xlu1 %2283 }
 0x19e   : > { %v9200_v4 = vpop.permute.xlu0 %2409  ;;  %2320 = vst.msk [vmem:[#allocation4 + $0x88] sm:$0xf] %vm1826_vm4, %v2284_v48  ;;  %v3645_v48 = vld [vmem:[#allocation3 + $0x119] sm:$0xff] }
 0x19f   : > { %1925 = vrot.lane.b32.xlu1 %v8888_v58, %s8160_s25  ;;  %v9208_v58 = vpack.c.bf16 %v3643_v5, %v3643_v5  ;;  %v3389_v5 = vld [vmem:[#allocation3 + $0x117] sm:$0xff] }
 0x1a1   : > { %2048 = vrot.lane.b32.xlu0 %v7181_v30, %s8158_s16  ;;  %v2412_v50 = vpop.permute.xlu1 %2411  ;;  %3723 = vst.msk [vmem:[#allocation4 + $0x110] sm:$0xf] %vm1697_vm3, %v9208_v58  ;;  %v9222_v30 = vpack.c.bf16 %v3387_v47, %v3387_v47 }
 0x1a2   : > { %v9210_v24 = vpop.permute.xlu0 %2537  ;;  %2448 = vst.msk [vmem:[#allocation4 + $0x88] sm:$0xf] %vm1955_vm5, %v2412_v50  ;;  %v9264_v50 = vpack.c.bf16 %v3389_v5, %v3389_v5 }
 0x1a3   : > { %2054 = vrot.lane.b32.xlu1 %v8886_v9, %s8158_s16  ;;  %2576 = vst.msk [vmem:[#allocation4 + $0x88] sm:$0xf] %vm2084_vm6, %v8497_v41  ;;  %v7324_v9 = vpack.c.bf16 %v3384_v16, %v3384_v16  ;;  %v3381_v41 = vld [vmem:[#allocation3 + $0xd7] sm:$0xff]  ;;  %v9262_v16 = vpack.c.bf16 %v3645_v48, %v3645_v48 }
 0x1a4   : > { %2767 = vst.msk [vmem:[#allocation4 + $0x138] sm:$0xf] %vm1697_vm3, %v9222_v30  ;;  %v7321_v35 = vpack.c.bf16 %v3381_v41, %v3381_v41  ;;  %2769 = vst.msk [vmem:[#allocation4 + $0x150] sm:$0xf] %vm1697_vm3, %v9264_v50 }
 0x1a5   : > { %1794 = vrot.lane.b32.xlu0 %v7197_v8, %s8159_s24  ;;  %v1934_v51 = vpop.permute.xlu1 %1933  ;;  %3725 = vst.msk [vmem:[#allocation4 + $0x128] sm:$0xf] %vm1697_vm3, %v9262_v16 }
 0x1a6   : > { %v2286_v63 = vpop.permute.xlu0 %2285  ;;  %1969 = vst.msk [vmem:[#allocation4 + $0x9c] sm:$0xf] %vm1955_vm5, %v1934_v51 }
 0x1a7   : > { %3323 = vrot.lane.b32.xlu1 %v8998_v56, %s8159_s24  ;;  %2321 = vst.msk [vmem:[#allocation4 + $0x94] sm:$0xf] %vm1826_vm4, %v2286_v63 }
 0x1a8   : > { %v7813_v8 = vld [vmem:[#allocation4 + $0x110] ss:$12 sps:$4 sm:$0xff]  }
 0x1a9   : > { %1923 = vrot.lane.b32.xlu0 %v8824_v44, %s8160_s25  ;;  %v3509_v44 = vld [vmem:[#allocation3 + $0xd8] sm:$0xff]  ;;  %7660 = vmatmul.mubr.msk.bf16.gmra.mxu1 %vm862_vm0, %v7813_v8 }
 0x1aa   : > { %v2063_v57 = vpop.permute.xlu1 %2062  ;;  %v9235_v15 = vpop.permute.xlu0 %2060  ;;  %v7337_v52 = vpack.c.bf16 %v3509_v44, %v3509_v44  ;;  %v3386_v44 = vld [vmem:[#allocation3 + $0xff] sm:$0xff] }
 0x1ab   : > { %3451 = vrot.lane.b32.xlu1 %v7324_v9, %s8160_s25  ;;  %2098 = vst.msk [vmem:[#allocation4 + $0x9c] sm:$0xf] %vm2084_vm6, %v2063_v57 }
 0x1ac   : > { %v7814_v8 = vld [vmem:[#allocation4 + $0x128] ss:$12 sps:$4 sm:$0xff]  }
 0x1ad   : > { %3445 = vrot.lane.b32.xlu0 %v7321_v35, %s8160_s25  ;;  %7663 = vmatprep.mubr.msk.bf16.mxu1 %vm862_vm0, %v7814_v8 }
 0x1ae   : > { %v1807_v45 = vpop.permute.xlu0 %1806 }
 0x1af   : > { %2975 = vrot.lane.b32.xlu1 %v8998_v56, %s8160_s25  ;;  %v2264_v29 = vpop.permute.xlu1 %2263  ;;  %1841 = vst.msk [vmem:[#allocation4 + $0xa8] sm:$0xf] %vm1826_vm4, %v1807_v45 }
 0x1b0   : > { %2310 = vst.msk [vmem:[#allocation4 + $0x10] sm:$0xf] %vm1826_vm4, %v2264_v29 }
 0x1b1   : > { %3573 = vrot.lane.b32.xlu0 %v7337_v52, %s8158_s16 }
 0x1b3   : > { %3103 = vrot.lane.b32.xlu1 %v7324_v9, %s8158_s16  ;;  %v1936_v56 = vpop.permute.xlu0 %1935  ;;  %v3517_v9 = vld [vmem:[#allocation3 + $0x118] sm:$0xff] }
 0x1b4   : > { %v2392_v26 = vpop.permute.xlu1 %2391  ;;  %1970 = vst.msk [vmem:[#allocation4 + $0xa8] sm:$0xf] %vm1955_vm5, %v1936_v56  ;;  %v9275_v63 = vpack.c.bf16 %v3517_v9, %v3517_v9 }
 0x1b5   : > { %2438 = vst.msk [vmem:[#allocation4 + $0x10] sm:$0xf] %vm1955_vm5, %v2392_v26  ;;  %3321 = vrot.lane.b32.xlu0 %v8975_v59, %s8159_s24  ;;  %v3268_v26 = vld [vmem:[#allocation3 + $0x141] sm:$0xff] }
 0x1b6   : > { %2566 = vst.msk [vmem:[#allocation4 + $0x10] sm:$0xf] %vm2084_vm6, %v8465_v23  ;;  %v3162_v23 = vld [vmem:[#allocation3 + $0xf0] sm:$0xff] }
 0x1b7   : > { %2279 = vrot.lane.b32.xlu1 %v8942_v6, %s8159_s24  ;;  %v2390_v27 = vpop.permute.xlu0 %2389  ;;  %v7294_v51 = vpack.c.bf16 %v3162_v23, %v3162_v23  ;;  %3247 = vst.msk [vmem:[#allocation4 + $0x13c] sm:$0xf] %vm1697_vm3, %v9275_v63 }
 0x1b8   : > { %v1914_v47 = vpop.permute.xlu1 %1913  ;;  %2437 = vst.msk [vmem:[#allocation4 + $0x4] sm:$0xf] %vm1955_vm5, %v2390_v27  ;;  %v3164_v27 = vld [vmem:[#allocation3 + $0x100] sm:$0xff] }
 0x1b9   : > { %1959 = vst.msk [vmem:[#allocation4 + $0x24] sm:$0xf] %vm1955_vm5, %v1914_v47  ;;  %3097 = vrot.lane.b32.xlu0 %v7321_v35, %s8158_s16  ;;  %v2331_v35 = vld [vmem:[#allocation3 + $0x57] sm:$0xff]  ;;  %v3391_v47 = vld [vmem:[#allocation3 + $0x127] sm:$0xff]  ;;  %v7296_v23 = vpack.c.bf16 %v3164_v27, %v3164_v27 }
 0x1ba   : > { %3242 = vst.msk [vmem:[#allocation4 + $0x100] sm:$0xf] %vm1697_vm3, %v7294_v51  ;;  %v7183_v29 = vpack.c.bf16 %v2331_v35, %v2331_v35  ;;  %v9316_v9 = vpack.c.bf16 %v3391_v47, %v3391_v47 }
 0x1bb   : > { %2407 = vrot.lane.b32.xlu1 %v8944_v10, %s8160_s25  ;;  %v2518_v41 = vpop.permute.xlu0 %2517  ;;  %3244 = vst.msk [vmem:[#allocation4 + $0x118] sm:$0xf] %vm1697_vm3, %v7296_v23 }
 0x1bc   : > { %v2043_v22 = vpop.permute.xlu1 %2042  ;;  %2565 = vst.msk [vmem:[#allocation4 + $0x4] sm:$0xf] %vm2084_vm6, %v2518_v41  ;;  %v3519_v41 = vld [vmem:[#allocation3 + $0x128] sm:$0xff] }
 0x1bd   : > { %2088 = vst.msk [vmem:[#allocation4 + $0x24] sm:$0xf] %vm2084_vm6, %v2043_v22  ;;  %2845 = vrot.lane.b32.xlu0 %v7337_v52, %s8159_s24  ;;  %v7802_v52 = vld [vmem:[#allocation4] ss:$12 sps:$4 sm:$0xff]  }
 0x1be   : > { %2771 = vst.msk [vmem:[#allocation4 + $0x168] sm:$0xf] %vm1697_vm3, %v9316_v9 }
 0x1bf   : > { %1929 = vrot.lane.b32.xlu1 %v8942_v6, %s8160_s25  ;;  %v2266_v19 = vpop.permute.xlu0 %2265  ;;  %v9296_v6 = vpack.c.bf16 %v3647_v14, %v3647_v14  ;;  %v3388_v14 = vld [vmem:[#allocation3 + $0x10f] sm:$0xff] }
 0x1c0   : > { %2311 = vst.msk [vmem:[#allocation4 + $0x1c] sm:$0xf] %vm1826_vm4, %v2266_v19  ;;  %v9319_v19 = vpack.c.bf16 %v3519_v41, %v3519_v41 }
 0x1c1   : > { %v2288_v57 = vpop.permute.xlu1 %2287  ;;  %2973 = vrot.lane.b32.xlu0 %v8975_v59, %s8160_s25  ;;  %3727 = vst.msk [vmem:[#allocation4 + $0x140] sm:$0xf] %vm1697_vm3, %v9296_v6  ;;  %v9307_v59 = vpack.c.bf16 %v3268_v26, %v3268_v26  ;;  %v3649_v26 = vld [vmem:[#allocation3 + $0x139] sm:$0xff] }
 0x1c2   : > { %2322 = vst.msk [vmem:[#allocation4 + $0xa0] sm:$0xf] %vm1826_vm4, %v2288_v57 }
 0x1c3   : > { %2058 = vrot.lane.b32.xlu1 %v8944_v10, %s8158_s16  ;;  %v2041_v39 = vpop.permute.xlu0 %2040  ;;  %v7804_v56 = vld [vmem:[#allocation4 + $0x4] ss:$12 sps:$4 sm:$0xff]   ;;  %v7326_v10 = vpack.c.bf16 %v3386_v44, %v3386_v44  ;;  %3730 = vst.msk [vmem:[#allocation4 + $0x164] sm:$0xf] %vm1697_vm3, %v9307_v59  ;;  %3249 = vst.msk [vmem:[#allocation4 + $0x154] sm:$0xf] %vm1697_vm3, %v9319_v19 }
 0x1c4   : > { %2087 = vst.msk [vmem:[#allocation4 + $0x18] sm:$0xf] %vm2084_vm6, %v2041_v39  ;;  %4261 = vmatprep.mubr.bf16.mxu0 %v7804_v56 }
 0x1c5   : > { %v2416_v45 = vpop.permute.xlu1 %2415  ;;  %2401 = vrot.lane.b32.xlu0 %v7183_v29, %s8160_s25  ;;  %4262 = vmatmul.mubr.bf16.vlgmr.msra.gmra.mxu0 %v7802_v52  ;;  %v3383_v52 = vld [vmem:[#allocation3 + $0xe7] sm:$0xff] }
 0x1c6   : > { %2450 = vst.msk [vmem:[#allocation4 + $0xa0] sm:$0xf] %vm1955_vm5, %v2416_v45  ;;  %v7323_v56 = vpack.c.bf16 %v3383_v52, %v3383_v52 }
 0x1c7   : > { %2578 = vst.msk [vmem:[#allocation4 + $0xa0] sm:$0xf] %vm2084_vm6, %v8501_v43  ;;  %3327 = vrot.lane.b32.xlu1 %v9012_v54, %s8159_s24  ;;  %v1787_v5 = vpop.permute.xlu0 %1786  ;;  %v2205_v43 = vld [vmem:[#allocation3 + $0x59] sm:$0xff] }
 0x1c8   : > { %1831 = vst.msk [vmem:[#allocation4 + $0x30] sm:$0xf] %vm1826_vm4, %v1787_v5  ;;  %v7815_v51 = vld [vmem:[#allocation4 + $0x140] ss:$12 sps:$4 sm:$0xff]   ;;  %v7169_v8 = vpack.c.bf16 %v2205_v43, %v2205_v43 }
 0x1c9   : > { %v1938_v48 = vpop.permute.xlu1 %1937  ;;  %2529 = vrot.lane.b32.xlu0 %v8982_v55, %s8158_s16  ;;  %7664 = vmatmul.mubr.msk.bf16.gmra.mxu1 %vm862_vm0, %v7815_v51 }
 0x1ca   : > { %1971 = vst.msk [vmem:[#allocation4 + $0xb4] sm:$0xf] %vm1955_vm5, %v1938_v48 }
 0x1cb   : > { %3455 = vrot.lane.b32.xlu1 %v7326_v10, %s8160_s25  ;;  %v1916_v34 = vpop.permute.xlu0 %1915 }
 0x1cc   : > { %1960 = vst.msk [vmem:[#allocation4 + $0x30] sm:$0xf] %vm1955_vm5, %v1916_v34  ;;  %v7808_v34 = vld [vmem:[#allocation4 + $0x18] ss:$12 sps:$4 sm:$0xff]  }
 0x1cd   : > { %v2067_v22 = vpop.permute.xlu1 %2066  ;;  %2277 = vrot.lane.b32.xlu0 %v7169_v8, %s8159_s24 }
 0x1ce   : > { %2100 = vst.msk [vmem:[#allocation4 + $0xb4] sm:$0xf] %vm2084_vm6, %v2067_v22 }
 0x1cf   : > { %2979 = vrot.lane.b32.xlu1 %v9012_v54, %s8160_s25  ;;  %v2414_v57 = vpop.permute.xlu0 %2413  ;;  %v7328_v54 = vpack.c.bf16 %v3388_v14, %v3388_v14 }
 0x1d0   : > { %2449 = vst.msk [vmem:[#allocation4 + $0x94] sm:$0xf] %vm1955_vm5, %v2414_v57 }
 0x1d1   : > { %v2268_v35 = vpop.permute.xlu1 %2267  ;;  %2052 = vrot.lane.b32.xlu0 %v7183_v29, %s8158_s16 }
 0x1d2   : > { %2312 = vst.msk [vmem:[#allocation4 + $0x28] sm:$0xf] %vm1826_vm4, %v2268_v35 }
 0x1d3   : > { %3107 = vrot.lane.b32.xlu1 %v7326_v10, %s8158_s16  ;;  %v2542_v44 = vpop.permute.xlu0 %2541 }
 0x1d4   : > { %2577 = vst.msk [vmem:[#allocation4 + $0x94] sm:$0xf] %vm2084_vm6, %v2542_v44 }
 0x1d5   : > { %v2396_v39 = vpop.permute.xlu1 %2395  ;;  %1798 = vrot.lane.b32.xlu0 %v8982_v55, %s8159_s24 }
 0x1d6   : > { %2440 = vst.msk [vmem:[#allocation4 + $0x28] sm:$0xf] %vm1955_vm5, %v2396_v39 }
 0x1d7   : > { %2568 = vst.msk [vmem:[#allocation4 + $0x28] sm:$0xf] %vm2084_vm6, %v8476_v28  ;;  %3331 = vrot.lane.b32.xlu1 %v9020_v1, %s8159_s24  ;;  %v2290_v45 = vpop.permute.xlu0 %2289 }
 0x1d8   : > { %2323 = vst.msk [vmem:[#allocation4 + $0xac] sm:$0xf] %vm1826_vm4, %v2290_v45 }
 0x1d9   : > { %v1918_v29 = vpop.permute.xlu1 %1917  ;;  %2451 = vst.msk [vmem:[#allocation4 + $0xac] sm:$0xf] %vm1955_vm5, %v8547_v36  ;;  %1927 = vrot.lane.b32.xlu0 %v7169_v8, %s8160_s25  ;;  %v9356_v36 = vpack.c.bf16 %v3649_v26, %v3649_v26 }
 0x1da   : > { %1961 = vst.msk [vmem:[#allocation4 + $0x3c] sm:$0xf] %vm1955_vm5, %v1918_v29 }
 0x1db   : > { %3459 = vrot.lane.b32.xlu1 %v7328_v54, %s8160_s25  ;;  %2579 = vst.msk [vmem:[#allocation4 + $0xac] sm:$0xf] %vm2084_vm6, %v8559_v62  ;;  %v2065_v28 = vpop.permute.xlu0 %2064  ;;  %v3521_v62 = vld [vmem:[#allocation3 + $0x138] sm:$0xff] }
 0x1dc   : > { %2099 = vst.msk [vmem:[#allocation4 + $0xa8] sm:$0xf] %vm2084_vm6, %v2065_v28 }
 0x1dd   : > { %v2047_v55 = vpop.permute.xlu1 %2046  ;;  %3449 = vrot.lane.b32.xlu0 %v7323_v56, %s8160_s25  ;;  %3729 = vst.msk [vmem:[#allocation4 + $0x158] sm:$0xf] %vm1697_vm3, %v9356_v36 }
 0x1de   : > { %2090 = vst.msk [vmem:[#allocation4 + $0x3c] sm:$0xf] %vm2084_vm6, %v2047_v55  ;;  %v3394_v55 = vld [vmem:[#allocation3 + $0x13f] sm:$0xff] }
 0x1df   : > { %2983 = vrot.lane.b32.xlu1 %v9020_v1, %s8160_s25  ;;  %v2394_v10 = vpop.permute.xlu0 %2393  ;;  %v9365_v1 = vpack.c.bf16 %v3521_v62, %v3521_v62 }
 0x1e0   : > { %2439 = vst.msk [vmem:[#allocation4 + $0x1c] sm:$0xf] %vm1955_vm5, %v2394_v10 }
 0x1e1   : > { %v2968_v48 = vpop.permute.xlu1 %2967  ;;  %3577 = vrot.lane.b32.xlu0 %v9037_v49, %s8158_s16  ;;  %3251 = vst.msk [vmem:[#allocation4 + $0x16c] sm:$0xf] %vm1697_vm3, %v9365_v1 }
 0x1e2   : > { %3014 = vst.msk [vmem:[#allocation4 + $0xcc] sm:$0xf] %vm1955_vm5, %v2968_v48 }
 0x1e3   : > { %3111 = vrot.lane.b32.xlu1 %v7328_v54, %s8158_s16  ;;  %v2522_v5 = vpop.permute.xlu0 %2521 }
 0x1e4   : > { %2567 = vst.msk [vmem:[#allocation4 + $0x1c] sm:$0xf] %vm2084_vm6, %v2522_v5  ;;  %v7819_v27 = vld [vmem:[#allocation4 + $0x158] ss:$12 sps:$4 sm:$0xff]  }
 0x1e5   : > { %v3096_v43 = vpop.permute.xlu1 %3095  ;;  %3325 = vrot.lane.b32.xlu0 %v9030_v0, %s8159_s24  ;;  %7667 = vmatprep.mubr.msk.bf16.mxu1 %vm862_vm0, %v7819_v27  ;;  %v3396_v27 = vld [vmem:[#allocation3 + $0x14f] sm:$0xff] }
 0x1e6   : > { %3142 = vst.msk [vmem:[#allocation4 + $0xcc] sm:$0xf] %vm2084_vm6, %v3096_v43 }
 0x1e7   : > { %3335 = vrot.lane.b32.xlu1 %v9125_v18, %s8159_s24  ;;  %v2270_v47 = vpop.permute.xlu0 %2269 }
 0x1e8   : > { %2313 = vst.msk [vmem:[#allocation4 + $0x34] sm:$0xf] %vm1826_vm4, %v2270_v47 }
 0x1e9   : > { %v2272_v23 = vpop.permute.xlu1 %2271  ;;  %3101 = vrot.lane.b32.xlu0 %v7323_v56, %s8158_s16 }
 0x1ea   : > { %2314 = vst.msk [vmem:[#allocation4 + $0x40] sm:$0xf] %vm1826_vm4, %v2272_v23 }
 0x1eb   : > { %3463 = vrot.lane.b32.xlu1 %v9136_v42, %s8160_s25  ;;  %v2045_v51 = vpop.permute.xlu0 %2044  ;;  %v7806_v22 = vld [vmem:[#allocation4 + $0x1c] ss:$12 sps:$4 sm:$0xff]  }
 0x1ec   : > { %2089 = vst.msk [vmem:[#allocation4 + $0x30] sm:$0xf] %vm2084_vm6, %v2045_v51  ;;  %4269 = vmatprep.mubr.bf16.mxu0 %v7806_v22  ;;  %v3524_v51 = vld [vmem:[#allocation3 + $0x150] sm:$0xff] }
 0x1ed   : > { %v2400_v41 = vpop.permute.xlu1 %2399  ;;  %2849 = vrot.lane.b32.xlu0 %v9037_v49, %s8159_s24  ;;  %4270 = vmatmul.mubr.bf16.gmra.mxu0 %v7808_v34 }
 0x1ee   : > { %2442 = vst.msk [vmem:[#allocation4 + $0x40] sm:$0xf] %vm1955_vm5, %v2400_v41 }
 0x1ef   : > { %2570 = vst.msk [vmem:[#allocation4 + $0x40] sm:$0xf] %vm2084_vm6, %v8483_v31  ;;  %3591 = vrot.lane.b32.xlu1 %v9150_v40, %s8158_s16  ;;  %v1791_v8 = vpop.permute.xlu0 %1790 }
 0x1f0   : > { %1833 = vst.msk [vmem:[#allocation4 + $0x48] sm:$0xf] %vm1826_vm4, %v1791_v8 }
 0x1f1   : > { %v1922_v57 = vpop.permute.xlu1 %1921  ;;  %2977 = vrot.lane.b32.xlu0 %v9030_v0, %s8160_s25  ;;  %v2207_v0 = vld [vmem:[#allocation3 + $0x69] sm:$0xff] }
 0x1f2   : > { %1963 = vst.msk [vmem:[#allocation4 + $0x54] sm:$0xf] %vm1955_vm5, %v1922_v57  ;;  %v7171_v39 = vpack.c.bf16 %v2207_v0, %v2207_v0 }
 0x1f3   : > { %2859 = vrot.lane.b32.xlu1 %v9163_v7, %s8159_s24  ;;  %v1920_v31 = vpop.permute.xlu0 %1919  ;;  %v7812_v10 = vld [vmem:[#allocation4 + $0x30] ss:$12 sps:$4 sm:$0xff]  }
 0x1f4   : > { %1962 = vst.msk [vmem:[#allocation4 + $0x48] sm:$0xf] %vm1955_vm5, %v1920_v31 }
 0x1f5   : > { %v2051_v35 = vpop.permute.xlu1 %2050  ;;  %2405 = vrot.lane.b32.xlu0 %v9093_v60, %s8160_s25 }
 0x1f6   : > { %2092 = vst.msk [vmem:[#allocation4 + $0x54] sm:$0xf] %vm2084_vm6, %v2051_v35 }
 0x1f7   : > { %3339 = vrot.lane.b32.xlu1 %v9180_v3, %s8159_s24  ;;  %v3318_v49 = vpop.permute.xlu0 %3317 }
 0x1f8   : > { %3365 = vst.msk [vmem:[#allocation4 + $0xc4] sm:$0xf] %vm1826_vm4, %v3318_v49 }
 0x1f9   : > { %v3320_v14 = vpop.permute.xlu1 %3319  ;;  %2533 = vrot.lane.b32.xlu0 %v9105_v25, %s8158_s16 }
 0x1fa   : > { %3366 = vst.msk [vmem:[#allocation4 + $0xd0] sm:$0xf] %vm1826_vm4, %v3320_v14 }
 0x1fb   : > { %2987 = vrot.lane.b32.xlu1 %v9125_v18, %s8160_s25  ;;  %v3094_v7 = vpop.permute.xlu0 %3093 }
 0x1fc   : > { %3141 = vst.msk [vmem:[#allocation4 + $0xc0] sm:$0xf] %vm2084_vm6, %v3094_v7 }
 0x1fd   : > { %v3448_v44 = vpop.permute.xlu1 %3447  ;;  %2281 = vrot.lane.b32.xlu0 %v7171_v39, %s8159_s24 }
 0x1fe   : > { %3494 = vst.msk [vmem:[#allocation4 + $0xd0] sm:$0xf] %vm1955_vm5, %v3448_v44 }
 0x1ff   : > { %3622 = vst.msk [vmem:[#allocation4 + $0xd0] sm:$0xf] %vm2084_vm6, %v8831_v53  ;;  %3467 = vrot.lane.b32.xlu1 %v9198_v46, %s8160_s25  ;;  %v2842_v54 = vpop.permute.xlu0 %2841 }
 0x200   : > { %2887 = vst.msk [vmem:[#allocation4 + $0xd8] sm:$0xf] %vm1826_vm4, %v2842_v54 }
 0x201   : > { %v2972_v45 = vpop.permute.xlu1 %2971  ;;  %2056 = vrot.lane.b32.xlu0 %v9093_v60, %s8158_s16 }
 0x202   : > { %3016 = vst.msk [vmem:[#allocation4 + $0xe4] sm:$0xf] %vm1955_vm5, %v2972_v45 }
 0x203   : > { %3115 = vrot.lane.b32.xlu1 %v9136_v42, %s8158_s16  ;;  %v2970_v18 = vpop.permute.xlu0 %2969 }
 0x204   : > { %3015 = vst.msk [vmem:[#allocation4 + $0xd8] sm:$0xf] %vm1955_vm5, %v2970_v18 }
 0x205   : > { %v3100_v29 = vpop.permute.xlu1 %3099  ;;  %1802 = vrot.lane.b32.xlu0 %v9105_v25, %s8159_s24 }
 0x206   : > { %3144 = vst.msk [vmem:[#allocation4 + $0xe4] sm:$0xf] %vm2084_vm6, %v3100_v29 }
 0x207   : > { %3595 = vrot.lane.b32.xlu1 %v9220_v12, %s8158_s16  ;;  %v2398_v53 = vpop.permute.xlu0 %2397 }
 0x208   : > { %2441 = vst.msk [vmem:[#allocation4 + $0x34] sm:$0xf] %vm1955_vm5, %v2398_v53  ;;  %v3393_v53 = vld [vmem:[#allocation3 + $0x137] sm:$0xff] }
 0x209   : > { %v2276_v52 = vpop.permute.xlu1 %2275  ;;  %1931 = vrot.lane.b32.xlu0 %v7171_v39, %s8160_s25 }
 0x20a   : > { %2316 = vst.msk [vmem:[#allocation4 + $0x58] sm:$0xf] %vm1826_vm4, %v2276_v52  ;;  %v7333_v52 = vpack.c.bf16 %v3393_v53, %v3393_v53 }
 0x20b   : > { %2863 = vrot.lane.b32.xlu1 %v9150_v40, %s8159_s24  ;;  %v2526_v60 = vpop.permute.xlu0 %2525 }
 0x20c   : > { %2569 = vst.msk [vmem:[#allocation4 + $0x34] sm:$0xf] %vm2084_vm6, %v2526_v60 }
 0x20d   : > { %v2404_v42 = vpop.permute.xlu1 %2403  ;;  %3453 = vrot.lane.b32.xlu0 %v9152_v61, %s8160_s25 }
 0x20e   : > { %2444 = vst.msk [vmem:[#allocation4 + $0x58] sm:$0xf] %vm1955_vm5, %v2404_v42 }
 0x20f   : > { %2572 = vst.msk [vmem:[#allocation4 + $0x58] sm:$0xf] %vm2084_vm6, %v8487_v33  ;;  %3343 = vrot.lane.b32.xlu1 %v9246_v20, %s8159_s24  ;;  %v2274_v25 = vpop.permute.xlu0 %2273  ;;  %v7334_v33 = vpack.c.bf16 %v3394_v55, %v3394_v55  ;;  %v3651_v55 = vld [vmem:[#allocation3 + $0x149] sm:$0xff] }
 0x210   : > { %2315 = vst.msk [vmem:[#allocation4 + $0x4c] sm:$0xf] %vm1826_vm4, %v2274_v25 }
 0x211   : > { %v1926_v28 = vpop.permute.xlu1 %1925  ;;  %3581 = vrot.lane.b32.xlu0 %v9167_v11, %s8158_s16 }
 0x212   : > { %1965 = vst.msk [vmem:[#allocation4 + $0x6c] sm:$0xf] %vm1955_vm5, %v1926_v28 }
 0x213   : > { %2991 = vrot.lane.b32.xlu1 %v9180_v3, %s8160_s25  ;;  %v2049_v40 = vpop.permute.xlu0 %2048  ;;  %v7810_v26 = vld [vmem:[#allocation4 + $0x34] ss:$12 sps:$4 sm:$0xff]  }
 0x214   : > { %2091 = vst.msk [vmem:[#allocation4 + $0x48] sm:$0xf] %vm2084_vm6, %v2049_v40  ;;  %4277 = vmatprep.mubr.bf16.mxu0 %v7810_v26  ;;  %v7367_v40 = vpack.c.bf16 %v3651_v55, %v3651_v55 }
 0x215   : > { %v2055_v56 = vpop.permute.xlu1 %2054  ;;  %3329 = vrot.lane.b32.xlu0 %v9165_v13, %s8159_s24  ;;  %4278 = vmatmul.mubr.bf16.gmra.mxu0 %v7812_v10 }
 0x216   : > { %2094 = vst.msk [vmem:[#allocation4 + $0x6c] sm:$0xf] %vm2084_vm6, %v2055_v56 }
 0x217   : > { %3471 = vrot.lane.b32.xlu1 %v7334_v33, %s8160_s25  ;;  %v1795_v48 = vpop.permute.xlu0 %1794  ;;  %3731 = vst.msk [vmem:[#allocation4 + $0x170] sm:$0xf] %vm1697_vm3, %v7367_v40 }
 0x218   : > { %1835 = vst.msk [vmem:[#allocation4 + $0x60] sm:$0xf] %vm1826_vm4, %v1795_v48  ;;  %v3395_v48 = vld [vmem:[#allocation3 + $0x147] sm:$0xff] }
 0x219   : > { %v3324_v62 = vpop.permute.xlu1 %3323  ;;  %3105 = vrot.lane.b32.xlu0 %v9152_v61, %s8158_s16 }
 0x21a   : > { %3368 = vst.msk [vmem:[#allocation4 + $0xe8] sm:$0xf] %vm1826_vm4, %v3324_v62 }
 0x21b   : > { %3119 = vrot.lane.b32.xlu1 %v9198_v46, %s8158_s16  ;;  %v1924_v3 = vpop.permute.xlu0 %1923  ;;  %v7818_v0 = vld [vmem:[#allocation4 + $0x48] ss:$12 sps:$4 sm:$0xff]  }
 0x21c   : > { %1964 = vst.msk [vmem:[#allocation4 + $0x60] sm:$0xf] %vm1955_vm5, %v1924_v3 }
 0x21d   : > { %v3452_v5 = vpop.permute.xlu1 %3451  ;;  %2853 = vrot.lane.b32.xlu0 %v9167_v11, %s8159_s24 }
 0x21e   : > { %3496 = vst.msk [vmem:[#allocation4 + $0xe8] sm:$0xf] %vm1955_vm5, %v3452_v5 }
 0x21f   : > { %3624 = vst.msk [vmem:[#allocation4 + $0xe8] sm:$0xf] %vm2084_vm6, %v8933_v21  ;;  %3599 = vrot.lane.b32.xlu1 %v9285_v2, %s8158_s16  ;;  %v3446_v43 = vpop.permute.xlu0 %3445 }
 0x220   : > { %3493 = vst.msk [vmem:[#allocation4 + $0xc4] sm:$0xf] %vm1955_vm5, %v3446_v43 }
 0x221   : > { %v2976_v61 = vpop.permute.xlu1 %2975  ;;  %2981 = vrot.lane.b32.xlu0 %v9165_v13, %s8160_s25  ;;  %v7336_v13 = vpack.c.bf16 %v3396_v27, %v3396_v27 }
 0x222   : > { %3018 = vst.msk [vmem:[#allocation4 + $0xfc] sm:$0xf] %vm1955_vm5, %v2976_v61  ;;  %v3523_v61 = vld [vmem:[#allocation3 + $0x148] sm:$0xff] }
 0x223   : > { %2867 = vrot.lane.b32.xlu1 %v9220_v12, %s8159_s24  ;;  %v3574_v46 = vpop.permute.xlu0 %3573 }
 0x224   : > { %3621 = vst.msk [vmem:[#allocation4 + $0xc4] sm:$0xf] %vm2084_vm6, %v3574_v46 }
 0x225   : > { %v3104_v21 = vpop.permute.xlu1 %3103  ;;  %3457 = vrot.lane.b32.xlu0 %v9222_v30, %s8160_s25 }
 0x226   : > { %3146 = vst.msk [vmem:[#allocation4 + $0xfc] sm:$0xf] %vm2084_vm6, %v3104_v21 }
 0x227   : > { %3347 = vrot.lane.b32.xlu1 %v9307_v59, %s8159_s24  ;;  %v3322_v11 = vpop.permute.xlu0 %3321 }
 0x228   : > { %3367 = vst.msk [vmem:[#allocation4 + $0xdc] sm:$0xf] %vm1826_vm4, %v3322_v11 }
 0x229   : > { %v2280_v2 = vpop.permute.xlu1 %2279  ;;  %3585 = vrot.lane.b32.xlu0 %v9233_v17, %s8158_s16 }
 0x22a   : > { %2318 = vst.msk [vmem:[#allocation4 + $0x70] sm:$0xf] %vm1826_vm4, %v2280_v2  ;;  %v7351_v2 = vpack.c.bf16 %v3523_v61, %v3523_v61 }
 0x22b   : > { %2995 = vrot.lane.b32.xlu1 %v9246_v20, %s8160_s25  ;;  %v3098_v12 = vpop.permute.xlu0 %3097  ;;  %v7352_v20 = vpack.c.bf16 %v3524_v51, %v3524_v51 }
 0x22c   : > { %3143 = vst.msk [vmem:[#allocation4 + $0xd8] sm:$0xf] %vm2084_vm6, %v3098_v12  ;;  %v9584_v12 = vpop.f32.mrf.mxu1 }
 0x22d   : > { %v2408_v47 = vpop.permute.xlu1 %2407  ;;  %3333 = vrot.lane.b32.xlu0 %v9208_v58, %s8159_s24 }
 0x22e   : > { %2446 = vst.msk [vmem:[#allocation4 + $0x70] sm:$0xf] %vm1955_vm5, %v2408_v47  ;;  %v4424_v51 = vpop.f32.mrf.mxu1 }
 0x22f   : > { %2574 = vst.msk [vmem:[#allocation4 + $0x70] sm:$0xf] %vm2084_vm6, %v8492_v37  ;;  %3475 = vrot.lane.b32.xlu1 %v7336_v13, %s8160_s25  ;;  %v2846_v59 = vpop.permute.xlu0 %2845 }
 0x230   : > { %2889 = vst.msk [vmem:[#allocation4 + $0xf0] sm:$0xf] %vm1826_vm4, %v2846_v59 }
 0x231   : > { %v1930_v23 = vpop.permute.xlu1 %1929  ;;  %3109 = vrot.lane.b32.xlu0 %v9222_v30, %s8158_s16 }
 0x232   : > { %1967 = vst.msk [vmem:[#allocation4 + $0x84] sm:$0xf] %vm1955_vm5, %v1930_v23 }
 0x233   : > { %3123 = vrot.lane.b32.xlu1 %v7334_v33, %s8158_s16  ;;  %v2974_v41 = vpop.permute.xlu0 %2973  ;;  %v3652_v33 = vld [vmem:[#allocation3 + $0x151] sm:$0xff] }
 0x234   : > { %3017 = vst.msk [vmem:[#allocation4 + $0xf0] sm:$0xf] %vm1955_vm5, %v2974_v41  ;;  %v7368_v56 = vpack.c.bf16 %v3652_v33, %v3652_v33  ;;  %v3771_v33 = vld [vmem:[#allocation4 + $0xe4] sm:$0xff] }
 0x235   : > { %v2059_v37 = vpop.permute.xlu1 %2058  ;;  %3461 = vrot.lane.b32.xlu0 %v9264_v50, %s8160_s25 }
 0x236   : > { %2096 = vst.msk [vmem:[#allocation4 + $0x84] sm:$0xf] %vm2084_vm6, %v2059_v37 }
 0x237   : > { %3603 = vrot.lane.b32.xlu1 %v7352_v20, %s8158_s16  ;;  %v2402_v22 = vpop.permute.xlu0 %2401  ;;  %3732 = vst.msk [vmem:[#allocation4 + $0x17c] sm:$0xf] %vm1697_vm3, %v7368_v56  ;;  %v7829_v20 = vld [vmem:[#allocation4 + $0xac] ss:$12 sps:$4 sm:$0xff]  }
 0x238   : > { %2443 = vst.msk [vmem:[#allocation4 + $0x4c] sm:$0xf] %vm1955_vm5, %v2402_v22 }
 0x239   : > { %v3328_v34 = vpop.permute.xlu1 %3327  ;;  %3589 = vrot.lane.b32.xlu0 %v9275_v63, %s8158_s16 }
 0x23a   : > { %3370 = vst.msk [vmem:[#allocation4 + $0x100] sm:$0xf] %vm1826_vm4, %v3328_v34 }
 0x23b   : > { %v2530_v30 = vpop.permute.xlu0 %2529 }
 0x23c   : > { %2571 = vst.msk [vmem:[#allocation4 + $0x4c] sm:$0xf] %vm2084_vm6, %v2530_v30  ;;  %v7642_v30 = vpop.f32.mrf.mxu1 }
 0x23d   : > { %v3456_v8 = vpop.permute.xlu1 %3455  ;;  %2857 = vrot.lane.b32.xlu0 %v9233_v17, %s8159_s24 }
 0x23e   : > { %3498 = vst.msk [vmem:[#allocation4 + $0x100] sm:$0xf] %vm1955_vm5, %v3456_v8  ;;  %v7845_v62 = vld [vmem:[#allocation4 + $0x170] ss:$12 sps:$4 sm:$0xff]  }
 0x23f   : > { %3626 = vst.msk [vmem:[#allocation4 + $0x100] sm:$0xf] %vm2084_vm6, %v9023_v38  ;;  %v2278_v57 = vpop.permute.xlu0 %2277  ;;  %7668 = vmatmul.mubr.msk.bf16.gmra.mxu1 %vm862_vm0, %v7845_v62 }
 0x240   : > { %2317 = vst.msk [vmem:[#allocation4 + $0x64] sm:$0xf] %vm1826_vm4, %v2278_v57  ;;  %v3761_v57 = vld [vmem:[#allocation4 + $0xa8] sm:$0xff] }
 0x241   : > { %v2980_v31 = vpop.permute.xlu1 %2979  ;;  %3337 = vrot.lane.b32.xlu0 %v9262_v16, %s8159_s24 }
 0x242   : > { %3020 = vst.msk [vmem:[#allocation4 + $0x114] sm:$0xf] %vm1955_vm5, %v2980_v31  ;;  %v9593_v31 = vld [vmem:[%s9866_s5] ss:$0 sm:$0xff] }
 0x243   : > { %v2053_v35 = vpop.permute.xlu0 %2052  ;;  %v7816_v14 = vld [vmem:[#allocation4 + $0x4c] ss:$12 sps:$4 sm:$0xff]  }
 0x244   : > { %2093 = vst.msk [vmem:[#allocation4 + $0x60] sm:$0xf] %vm2084_vm6, %v2053_v35  ;;  %4285 = vmatprep.mubr.bf16.mxu0 %v7816_v14 }
 0x245   : > { %v3108_v49 = vpop.permute.xlu1 %3107  ;;  %2985 = vrot.lane.b32.xlu0 %v9208_v58, %s8160_s25  ;;  %4286 = vmatmul.mubr.bf16.gmra.mxu0 %v7818_v0  ;;  %v3763_v0 = vld [vmem:[#allocation4 + $0xb4] sm:$0xff] }
 0x246   : > { %3148 = vst.msk [vmem:[#allocation4 + $0x114] sm:$0xf] %vm2084_vm6, %v3108_v49  ;;  %v3775_v62 = vld [vmem:[#allocation4 + $0xfc] sm:$0xff] }
 0x247   : > { %v1799_v38 = vpop.permute.xlu0 %1798 }
 0x248   : > { %1837 = vst.msk [vmem:[#allocation4 + $0x78] sm:$0xf] %vm1826_vm4, %v1799_v38 }
 0x249   : > { %v3332_v17 = vpop.permute.xlu1 %3331  ;;  %3465 = vrot.lane.b32.xlu0 %v9316_v9, %s8160_s25 }
 0x24a   : > { %3372 = vst.msk [vmem:[#allocation4 + $0x118] sm:$0xf] %vm1826_vm4, %v3332_v17  ;;  %v9599_v17 = vld [vmem:[%s9867_s6] ss:$0 sm:$0xff] }
 0x24b   : > { %v1928_v7 = vpop.permute.xlu0 %1927  ;;  %v7822_v5 = vld [vmem:[#allocation4 + $0x60] ss:$12 sps:$4 sm:$0xff]  }
 0x24c   : > { %1966 = vst.msk [vmem:[#allocation4 + $0x78] sm:$0xf] %vm1955_vm5, %v1928_v7 }
 0x24d   : > { %v3460_v44 = vpop.permute.xlu1 %3459  ;;  %3113 = vrot.lane.b32.xlu0 %v9264_v50, %s8158_s16 }
 0x24e   : > { %3500 = vst.msk [vmem:[#allocation4 + $0x118] sm:$0xf] %vm1955_vm5, %v3460_v44  ;;  %v6868_v44 = vcombine.low %v3761_v57, %v3763_v0 }
 0x24f   : > { %3628 = vst.msk [vmem:[#allocation4 + $0x118] sm:$0xf] %vm2084_vm6, %v9062_v32  ;;  %v3450_v58 = vpop.permute.xlu0 %3449 }
 0x250   : > { %3495 = vst.msk [vmem:[#allocation4 + $0xdc] sm:$0xf] %vm1955_vm5, %v3450_v58 }
 0x251   : > { %v2984_v39 = vpop.permute.xlu1 %2983  ;;  %3593 = vrot.lane.b32.xlu0 %v9319_v19, %s8158_s16 }
 0x252   : > { %3022 = vst.msk [vmem:[#allocation4 + $0x12c] sm:$0xf] %vm1955_vm5, %v2984_v39  ;;  %v7831_v39 = vld [vmem:[#allocation4 + $0xc4] ss:$12 sps:$4 sm:$0xff]  }
 0x253   : > { %v3578_v54 = vpop.permute.xlu0 %3577 }
 0x254   : > { %3623 = vst.msk [vmem:[#allocation4 + $0xdc] sm:$0xf] %vm2084_vm6, %v3578_v54  ;;  %v4427_v54 = vpop.f32.mrf.mxu1 }
 0x255   : > { %v3112_v45 = vpop.permute.xlu1 %3111  ;;  %2861 = vrot.lane.b32.xlu0 %v9275_v63, %s8159_s24 }
 0x256   : > { %3150 = vst.msk [vmem:[#allocation4 + $0x12c] sm:$0xf] %vm2084_vm6, %v3112_v45  ;;  %v3779_v61 = vld [vmem:[#allocation4 + $0x114] sm:$0xff] }
 0x257   : > { %v3326_v32 = vpop.permute.xlu0 %3325 }
 0x258   : > { %3369 = vst.msk [vmem:[#allocation4 + $0xf4] sm:$0xf] %vm1826_vm4, %v3326_v32 }
 0x259   : > { %v3336_v50 = vpop.permute.xlu1 %3335  ;;  %3341 = vrot.lane.b32.xlu0 %v9296_v6, %s8159_s24 }
 0x25a   : > { %3374 = vst.msk [vmem:[#allocation4 + $0x130] sm:$0xf] %vm1826_vm4, %v3336_v50 }
 0x25b   : > { %v3102_v18 = vpop.permute.xlu0 %3101 }
 0x25c   : > { %3145 = vst.msk [vmem:[#allocation4 + $0xf0] sm:$0xf] %vm2084_vm6, %v3102_v18 }
 0x25d   : > { %v3464_v29 = vpop.permute.xlu1 %3463  ;;  %2989 = vrot.lane.b32.xlu0 %v9262_v16, %s8160_s25 }
 0x25e   : > { %3502 = vst.msk [vmem:[#allocation4 + $0x130] sm:$0xf] %vm1955_vm5, %v3464_v29  ;;  %v3765_v29 = vld [vmem:[#allocation4 + $0xc0] sm:$0xff] }
 0x25f   : > { %v2850_v63 = vpop.permute.xlu0 %2849 }
 0x260   : > { %2891 = vst.msk [vmem:[#allocation4 + $0x108] sm:$0xf] %vm1826_vm4, %v2850_v63  ;;  %v3767_v63 = vld [vmem:[#allocation4 + $0xcc] sm:$0xff] }
 0x261   : > { %v3592_v60 = vpop.permute.xlu1 %3591  ;;  %3469 = vrot.lane.b32.xlu0 %v7333_v52, %s8160_s25 }
 0x262   : > { %3630 = vst.msk [vmem:[#allocation4 + $0x130] sm:$0xf] %vm2084_vm6, %v3592_v60  ;;  %v6871_v60 = vcombine.low %v3765_v29, %v3767_v63 }
 0x263   : > { %v2978_v42 = vpop.permute.xlu0 %2977 }
 0x264   : > { %3019 = vst.msk [vmem:[#allocation4 + $0x108] sm:$0xf] %vm1955_vm5, %v2978_v42  ;;  %v7833_v42 = vld [vmem:[#allocation4 + $0xdc] ss:$12 sps:$4 sm:$0xff]  }
 0x265   : > { %v2860_v25 = vpop.permute.xlu1 %2859  ;;  %3117 = vrot.lane.b32.xlu0 %v9316_v9, %s8158_s16 }
 0x266   : > { %2896 = vst.msk [vmem:[#allocation4 + $0x144] sm:$0xf] %vm1826_vm4, %v2860_v25 }
 0x267   : > { %v2406_v28 = vpop.permute.xlu0 %2405 }
 0x268   : > { %2445 = vst.msk [vmem:[#allocation4 + $0x64] sm:$0xf] %vm1955_vm5, %v2406_v28 }
 0x269   : > { %v3340_v16 = vpop.permute.xlu1 %3339  ;;  %3597 = vrot.lane.b32.xlu0 %v9365_v1, %s8158_s16 }
 0x26a   : > { %3376 = vst.msk [vmem:[#allocation4 + $0x148] sm:$0xf] %vm1826_vm4, %v3340_v16  ;;  %v3769_v16 = vld [vmem:[#allocation4 + $0xd8] sm:$0xff] }
 0x26b   : > { %v2534_v26 = vpop.permute.xlu0 %2533  ;;  %v6874_v56 = vcombine.low %v3769_v16, %v3771_v33 }
 0x26c   : > { %2573 = vst.msk [vmem:[#allocation4 + $0x64] sm:$0xf] %vm2084_vm6, %v2534_v26 }
 0x26d   : > { %v2988_v9 = vpop.permute.xlu1 %2987  ;;  %2865 = vrot.lane.b32.xlu0 %v9319_v19, %s8159_s24 }
 0x26e   : > { %3024 = vst.msk [vmem:[#allocation4 + $0x144] sm:$0xf] %vm1955_vm5, %v2988_v9 }
 0x26f   : > { %v2282_v10 = vpop.permute.xlu0 %2281 }
 0x270   : > { %2319 = vst.msk [vmem:[#allocation4 + $0x7c] sm:$0xf] %vm1826_vm4, %v2282_v10 }
 0x271   : > { %v3468_v1 = vpop.permute.xlu1 %3467  ;;  %2447 = vst.msk [vmem:[#allocation4 + $0x7c] sm:$0xf] %vm1955_vm5, %v9200_v4  ;;  %3345 = vrot.lane.b32.xlu0 %v9356_v36, %s8159_s24  ;;  %v7335_v4 = vpack.c.bf16 %v3395_v48, %v3395_v48  ;;  %s9826_s24 = scalar_lea.hbm %s9872_s11, %s7077_s15 }
 0x272   : > { %3504 = vst.msk [vmem:[#allocation4 + $0x148] sm:$0xf] %vm1955_vm5, %v3468_v1 }
 0x273   : > { %2575 = vst.msk [vmem:[#allocation4 + $0x7c] sm:$0xf] %vm2084_vm6, %v9210_v24  ;;  %v2057_v19 = vpop.permute.xlu0 %2056  ;;  %v7820_v3 = vld [vmem:[#allocation4 + $0x64] ss:$12 sps:$4 sm:$0xff]  }
 0x274   : > { %2095 = vst.msk [vmem:[#allocation4 + $0x78] sm:$0xf] %vm2084_vm6, %v2057_v19  ;;  %4293 = vmatprep.mubr.bf16.mxu0 %v7820_v3 }
 0x275   : > { %v3116_v43 = vpop.permute.xlu1 %3115  ;;  %2993 = vrot.lane.b32.xlu0 %v9296_v6, %s8160_s25  ;;  %4294 = vmatmul.mubr.bf16.gmra.mxu0 %v7822_v5 }
 0x276   : > { %3152 = vst.msk [vmem:[#allocation4 + $0x144] sm:$0xf] %vm2084_vm6, %v3116_v43 }
 0x277   : > { %v1803_v36 = vpop.permute.xlu0 %1802 }
 0x278   : > { %1839 = vst.msk [vmem:[#allocation4 + $0x90] sm:$0xf] %vm1826_vm4, %v1803_v36 }
 0x279   : > { %v3596_v24 = vpop.permute.xlu1 %3595  ;;  %3473 = vrot.lane.b32.xlu0 %v7335_v4, %s8160_s25 }
 0x27a   : > { %3632 = vst.msk [vmem:[#allocation4 + $0x148] sm:$0xf] %vm2084_vm6, %v3596_v24  ;;  %v7823_v21 = vld [vmem:[#allocation4 + $0x7c] ss:$12 sps:$4 sm:$0xff]  }
 0x27b   : > { %v1932_v46 = vpop.permute.xlu0 %1931  ;;  %v7825_v11 = vld [vmem:[#allocation4 + $0x78] ss:$12 sps:$4 sm:$0xff]   ;;  %4301 = vmatprep.mubr.bf16.mxu0 %v7823_v21 }
 0x27c   : > { %1968 = vst.msk [vmem:[#allocation4 + $0x90] sm:$0xf] %vm1955_vm5, %v1932_v46 }
 0x27d   : > { %v2864_v6 = vpop.permute.xlu1 %2863  ;;  %2097 = vst.msk [vmem:[#allocation4 + $0x90] sm:$0xf] %vm2084_vm6, %v9235_v15  ;;  %3121 = vrot.lane.b32.xlu0 %v7333_v52, %s8158_s16  ;;  %4302 = vmatmul.mubr.bf16.gmra.mxu0 %v7825_v11  ;;  %v7826_v15 = vld [vmem:[#allocation4 + $0x94] ss:$12 sps:$4 sm:$0xff]  }
 0x27e   : > { %2898 = vst.msk [vmem:[#allocation4 + $0x15c] sm:$0xf] %vm1826_vm4, %v2864_v6  ;;  %4309 = vmatprep.mubr.bf16.mxu0 %v7826_v15 }
 0x27f   : > { %v3454_v27 = vpop.permute.xlu0 %3453 }
 0x280   : > { %3497 = vst.msk [vmem:[#allocation4 + $0xf4] sm:$0xf] %vm1955_vm5, %v3454_v27 }
 0x281   : > { %v3344_v13 = vpop.permute.xlu1 %3343  ;;  %3601 = vrot.lane.b32.xlu0 %v7351_v2, %s8158_s16 }
 0x282   : > { %3378 = vst.msk [vmem:[#allocation4 + $0x160] sm:$0xf] %vm1826_vm4, %v3344_v13 }
 0x283   : > { %v3582_v47 = vpop.permute.xlu0 %3581 }
 0x284   : > { %3625 = vst.msk [vmem:[#allocation4 + $0xf4] sm:$0xf] %vm2084_vm6, %v3582_v47  ;;  %v7828_v59 = vld [vmem:[#allocation4 + $0x90] ss:$12 sps:$4 sm:$0xff]  }
 0x285   : > { %v2992_v23 = vpop.permute.xlu1 %2991  ;;  %v7423_v41 = vpop.f32.mrf.mxu0  ;;  %4310 = vmatmul.mubr.bf16.gmra.mxu0 %v7828_v59  ;;  %v3783_v59 = vld [vmem:[#allocation4 + $0x12c] sm:$0xff] }
 0x286   : > { %3026 = vst.msk [vmem:[#allocation4 + $0x15c] sm:$0xf] %vm1955_vm5, %v2992_v23  ;;  %4317 = vmatprep.mubr.bf16.mxu0 %v7829_v20 }
 0x287   : > { %v3330_v37 = vpop.permute.xlu0 %3329  ;;  %v7424_v34 = vpop.f32.mrf.mxu0 }
 0x288   : > { %3371 = vst.msk [vmem:[#allocation4 + $0x10c] sm:$0xf] %vm1826_vm4, %v3330_v37  ;;  %v7425_v8 = vadd.f32 %v7424_v34, %v7423_v41 }
 0x289   : > { %v3472_v22 = vpop.permute.xlu1 %3471  ;;  %v7426_v35 = vpop.f32.mrf.mxu0 }
 0x28a   : > { %3506 = vst.msk [vmem:[#allocation4 + $0x160] sm:$0xf] %vm1955_vm5, %v3472_v22  ;;  %v4425_v14 = vadd.f32 %v7425_v8, %v4424_v51 }
 0x28b   : > { %v3106_v49 = vpop.permute.xlu0 %3105  ;;  %v7427_v7 = vpop.f32.mrf.mxu0  ;;  %v7835_v26 = vld [vmem:[#allocation4 + $0xf4] ss:$12 sps:$4 sm:$0xff]  }
 0x28c   : > { %3147 = vst.msk [vmem:[#allocation4 + $0x108] sm:$0xf] %vm2084_vm6, %v3106_v49  ;;  %v4558_v58 = vmul.f32 %v9593_v31, %v4425_v14  ;;  %v3773_v1 = vld [vmem:[#allocation4 + $0xf0] sm:$0xff]  ;;  %v3787_v14 = vld [vmem:[#allocation4 + $0x144] sm:$0xff] }
 0x28d   : > { %v3120_v38 = vpop.permute.xlu1 %3119  ;;  %4318 = vmatmul.mubr.bf16.gmra.mxu0 %v6868_v44  ;;  %v6877_v3 = vcombine.low %v3773_v1, %v3775_v62  ;;  %v7645_v44 = vpop.f32.mrf.mxu1 }
 0x28e   : > { %3154 = vst.msk [vmem:[#allocation4 + $0x15c] sm:$0xf] %vm2084_vm6, %v3120_v38  ;;  %v4597_v32 = vadd.f32 %v9599_v17, %v4558_v58  ;;  %4325 = vmatprep.mubr.bf16.mxu0 %v7831_v39 }
 0x28f   : > { %v2854_v45 = vpop.permute.xlu0 %2853  ;;  %v4440_v39 = vpop.f32.mrf.mxu1 }
 0x290   : > { %2893 = vst.msk [vmem:[#allocation4 + $0x120] sm:$0xf] %vm1826_vm4, %v2854_v45  ;;  %v4629_v18 = vmax.f32 %v4597_v32, 0.0 }
 0x291   : > { %v3600_v50 = vpop.permute.xlu1 %3599 }
 0x292   : > { %3634 = vst.msk [vmem:[#allocation4 + $0x160] sm:$0xf] %vm2084_vm6, %v3600_v50 }
 0x293   : > { %v2982_v53 = vpop.permute.xlu0 %2981  ;;  %4662 = vst.msk [vmem:[#allocation5] sm:$0xff] %vm4661_vm7, %v4629_v18  ;;  %v7646_v18 = vpop.f32.mrf.mxu1 }
 0x294   : > { %3021 = vst.msk [vmem:[#allocation4 + $0x120] sm:$0xf] %vm1955_vm5, %v2982_v53 }
 0x295   : > { %v2868_v52 = vpop.permute.xlu1 %2867  ;;  %4326 = vmatmul.mubr.bf16.gmra.mxu0 %v6871_v60 }
 0x296   : > { %2900 = vst.msk [vmem:[#allocation4 + $0x174] sm:$0xf] %vm1826_vm4, %v2868_v52  ;;  %4333 = vmatprep.mubr.bf16.mxu0 %v7833_v42  ;;  %v4443_v42 = vpop.f32.mrf.mxu1 }
 0x297   : > { %v3458_v25 = vpop.permute.xlu0 %3457 }
 0x298   : > { %3499 = vst.msk [vmem:[#allocation4 + $0x10c] sm:$0xf] %vm1955_vm5, %v3458_v25 }
 0x299   : > { %v3348_v28 = vpop.permute.xlu1 %3347 }
 0x29a   : > { %3380 = vst.msk [vmem:[#allocation4 + $0x178] sm:$0xf] %vm1826_vm4, %v3348_v28 }
 0x29b   : > { %v3586_v55 = vpop.permute.xlu0 %3585 }
 0x29c   : > { %3627 = vst.msk [vmem:[#allocation4 + $0x10c] sm:$0xf] %vm2084_vm6, %v3586_v55 }
 0x29d   : > { %v2996_v40 = vpop.permute.xlu1 %2995  ;;  %4334 = vmatmul.mubr.bf16.gmra.mxu0 %v6874_v56 }
 0x29e   : > { %3028 = vst.msk [vmem:[#allocation4 + $0x174] sm:$0xf] %vm1955_vm5, %v2996_v40  ;;  %4341 = vmatprep.mubr.bf16.mxu0 %v7835_v26  ;;  %v3791_v40 = vld [vmem:[#allocation4 + $0x15c] sm:$0xff] }
 0x29f   : > { %v3334_v9 = vpop.permute.xlu0 %3333 }
 0x2a0   : > { %3373 = vst.msk [vmem:[#allocation4 + $0x124] sm:$0xf] %vm1826_vm4, %v3334_v9 }
 0x2a1   : > { %v3476_v10 = vpop.permute.xlu1 %3475 }
 0x2a2   : > { %3508 = vst.msk [vmem:[#allocation4 + $0x178] sm:$0xf] %vm1955_vm5, %v3476_v10 }
 0x2a3   : > { %v3110_v48 = vpop.permute.xlu0 %3109  ;;  %v7837_v5 = vld [vmem:[#allocation4 + $0x10c] ss:$12 sps:$4 sm:$0xff]  }
 0x2a4   : > { %3149 = vst.msk [vmem:[#allocation4 + $0x120] sm:$0xf] %vm2084_vm6, %v3110_v48  ;;  %v3777_v36 = vld [vmem:[#allocation4 + $0x108] sm:$0xff] }
 0x2a5   : > { %v3124_v19 = vpop.permute.xlu1 %3123  ;;  %4342 = vmatmul.mubr.bf16.gmra.mxu0 %v6877_v3  ;;  %v6880_v46 = vcombine.low %v3777_v36, %v3779_v61 }
 0x2a6   : > { %3156 = vst.msk [vmem:[#allocation4 + $0x174] sm:$0xf] %vm2084_vm6, %v3124_v19  ;;  %4349 = vmatprep.mubr.bf16.mxu0 %v7837_v5 }
 0x2a7   : > { %v3462_v43 = vpop.permute.xlu0 %3461 }
 0x2a8   : > { %3501 = vst.msk [vmem:[#allocation4 + $0x124] sm:$0xf] %vm1955_vm5, %v3462_v43 }
 0x2a9   : > { %v3604_v4 = vpop.permute.xlu1 %3603 }
 0x2aa   : > { %3636 = vst.msk [vmem:[#allocation4 + $0x178] sm:$0xf] %vm2084_vm6, %v3604_v4 }
 0x2ab   : > { %v3590_v24 = vpop.permute.xlu0 %3589 }
 0x2ac   : > { %3629 = vst.msk [vmem:[#allocation4 + $0x124] sm:$0xf] %vm2084_vm6, %v3590_v24 }
 0x2ad   : > { %v7429_v21 = vpop.f32.mrf.mxu0  ;;  %4350 = vmatmul.mubr.bf16.gmra.mxu0 %v6880_v46 }
 0x2af   : > { %v2858_v11 = vpop.permute.xlu0 %2857  ;;  %v7430_v6 = vpop.f32.mrf.mxu0 }
 0x2b0   : > { %2895 = vst.msk [vmem:[#allocation4 + $0x138] sm:$0xf] %vm1826_vm4, %v2858_v11  ;;  %v7431_v2 = vadd.f32 %v7430_v6, %v7429_v21  ;;  %v7649_v11 = vpop.f32.mrf.mxu1 }
 0x2b1   : > { %v7432_v27 = vpop.f32.mrf.mxu0 }
 0x2b2   : > { %v4433_v13 = vadd.f32 %v9584_v12, %v7431_v2  ;;  %v4456_v6 = vpop.f32.mrf.mxu1 }
 0x2b3   : > { %v3338_v47 = vpop.permute.xlu0 %3337  ;;  %v3781_v15 = vld [vmem:[#allocation4 + $0x120] sm:$0xff]  ;;  %v7433_v51 = vpop.f32.mrf.mxu0 }
 0x2b4   : > { %v7839_v23 = vld [vmem:[#allocation4 + $0x124] ss:$12 sps:$4 sm:$0xff]   ;;  %3375 = vst.msk [vmem:[#allocation4 + $0x13c] sm:$0xf] %vm1826_vm4, %v3338_v47  ;;  %v6883_v20 = vcombine.low %v3781_v15, %v3783_v59  ;;  %v4560_v41 = vmul.f32 %v9593_v31, %v4433_v13  ;;  %v7650_v47 = vpop.f32.mrf.mxu1 }
 0x2b5   : > { %4357 = vmatprep.mubr.bf16.mxu0 %v7839_v23  ;;  %v7857_v47 = vld [vmem:[#allocation7 + $0x154] ss:$8 sps:$4 sm:$0xff]  }
 0x2b6   : > { %v4599_v37 = vadd.f32 %v9599_v17, %v4560_v41  ;;  %4358 = vmatmul.mubr.bf16.gmra.mxu0 %v6883_v20  ;;  %v4459_v20 = vpop.f32.mrf.mxu1 }
 0x2b7   : > { %v2986_v22 = vpop.permute.xlu0 %2985  ;;  %v7855_v20 = vld [vmem:[#allocation7 + $0x150] ss:$8 sps:$4 sm:$0xff]  }
 0x2b8   : > { %3023 = vst.msk [vmem:[#allocation4 + $0x138] sm:$0xf] %vm1955_vm5, %v2986_v22  ;;  %v4631_v34 = vmax.f32 %v4599_v37, 0.0 }
 0x2ba   : > { %4664 = vst.msk [vmem:[#allocation5 + $0x10] sm:$0xff] %vm4661_vm7, %v4631_v34 }
 0x2bb   : > { %v3466_v12 = vpop.permute.xlu0 %3465 }
 0x2bc   : > { %3503 = vst.msk [vmem:[#allocation4 + $0x13c] sm:$0xf] %vm1955_vm5, %v3466_v12 }
 0x2bf   : > { %v3114_v30 = vpop.permute.xlu0 %3113 }
 0x2c0   : > { %3151 = vst.msk [vmem:[#allocation4 + $0x138] sm:$0xf] %vm2084_vm6, %v3114_v30 }
 0x2c3   : > { %v3594_v8 = vpop.permute.xlu0 %3593 }
 0x2c4   : > { %3631 = vst.msk [vmem:[#allocation4 + $0x13c] sm:$0xf] %vm2084_vm6, %v3594_v8  ;;  %v7653_v8 = vpop.f32.mrf.mxu1 }
 0x2c7   : > { %v2862_v57 = vpop.permute.xlu0 %2861 }
 0x2c8   : > { %2897 = vst.msk [vmem:[#allocation4 + $0x150] sm:$0xf] %vm1826_vm4, %v2862_v57 }
 0x2cb   : > { %v3342_v35 = vpop.permute.xlu0 %3341  ;;  %v3785_v49 = vld [vmem:[#allocation4 + $0x138] sm:$0xff] }
 0x2cc   : > { %v7841_v0 = vld [vmem:[#allocation4 + $0x13c] ss:$12 sps:$4 sm:$0xff]   ;;  %3377 = vst.msk [vmem:[#allocation4 + $0x154] sm:$0xf] %vm1826_vm4, %v3342_v35  ;;  %v6886_v38 = vcombine.low %v3785_v49, %v3787_v14  ;;  %v4472_v14 = vpop.f32.mrf.mxu1 }
 0x2cd   : > { %4365 = vmatprep.mubr.bf16.mxu0 %v7841_v0 }
 0x2ce   : > { %4366 = vmatmul.mubr.bf16.gmra.mxu0 %v6886_v38 }
 0x2cf   : > { %v2990_v7 = vpop.permute.xlu0 %2989 }
 0x2d0   : > { %3025 = vst.msk [vmem:[#allocation4 + $0x150] sm:$0xf] %vm1955_vm5, %v2990_v7 }
 0x2d3   : > { %v3470_v58 = vpop.permute.xlu0 %3469 }
 0x2d4   : > { %3505 = vst.msk [vmem:[#allocation4 + $0x154] sm:$0xf] %vm1955_vm5, %v3470_v58 }
 0x2d5   : > { %v7435_v54 = vpop.f32.mrf.mxu0 }
 0x2d7   : > { %v3118_v45 = vpop.permute.xlu0 %3117  ;;  %v7436_v32 = vpop.f32.mrf.mxu0 }
 0x2d8   : > { %3153 = vst.msk [vmem:[#allocation4 + $0x150] sm:$0xf] %vm2084_vm6, %v3118_v45  ;;  %v7437_v50 = vadd.f32 %v7436_v32, %v7435_v54 }
 0x2d9   : > { %v7438_v29 = vpop.f32.mrf.mxu0 }
 0x2da   : > { %v4441_v53 = vadd.f32 %v7437_v50, %v4440_v39  ;;  %v7654_v39 = vpop.f32.mrf.mxu1 }
 0x2db   : > { %v3598_v63 = vpop.permute.xlu0 %3597  ;;  %v7439_v52 = vpop.f32.mrf.mxu0 }
 0x2dc   : > { %3633 = vst.msk [vmem:[#allocation4 + $0x154] sm:$0xf] %vm2084_vm6, %v3598_v63  ;;  %v4562_v60 = vmul.f32 %v9593_v31, %v4441_v53  ;;  %v4475_v18 = vpop.f32.mrf.mxu1 }
 0x2dd   : > { %v4720_v18 = vld [vmem:[#allocation5 + $0x3] ss:$128 sm:$0x1] }
 0x2de   : > { %v4601_v25 = vadd.f32 %v9599_v17, %v4562_v60  ;;  %v7657_v42 = vpop.f32.mrf.mxu1 }
 0x2df   : > { %v2866_v28 = vpop.permute.xlu0 %2865 }
 0x2e0   : > { %2899 = vst.msk [vmem:[#allocation4 + $0x168] sm:$0xf] %vm1826_vm4, %v2866_v28  ;;  %v4633_v16 = vmax.f32 %v4601_v25, 0.0 }
 0x2e2   : > { %4666 = vst.msk [vmem:[#allocation5 + $0x20] sm:$0xff] %vm4661_vm7, %v4633_v16 }
 0x2e3   : > { %v3346_v55 = vpop.permute.xlu0 %3345  ;;  %v3789_v33 = vld [vmem:[#allocation4 + $0x150] sm:$0xff] }
 0x2e4   : > { %v7843_v56 = vld [vmem:[#allocation4 + $0x154] ss:$12 sps:$4 sm:$0xff]   ;;  %3379 = vst.msk [vmem:[#allocation4 + $0x16c] sm:$0xf] %vm1826_vm4, %v3346_v55  ;;  %v6889_v26 = vcombine.low %v3789_v33, %v3791_v40  ;;  %v4488_v33 = vpop.f32.mrf.mxu1 }
 0x2e5   : > { %4373 = vmatprep.mubr.bf16.mxu0 %v7843_v56 }
 0x2e6   : > { %4374 = vmatmul.mubr.bf16.gmra.mxu0 %v6889_v26 }
 0x2e7   : > { %v2994_v9 = vpop.permute.xlu0 %2993 }
 0x2e8   : > { %3027 = vst.msk [vmem:[#allocation4 + $0x168] sm:$0xf] %vm1955_vm5, %v2994_v9 }
 0x2eb   : > { %v3474_v10 = vpop.permute.xlu0 %3473 }
 0x2ec   : > { %3507 = vst.msk [vmem:[#allocation4 + $0x16c] sm:$0xf] %vm1955_vm5, %v3474_v10 }
 0x2ef   : > { %v3122_v1 = vpop.permute.xlu0 %3121 }
 0x2f0   : > { %3155 = vst.msk [vmem:[#allocation4 + $0x168] sm:$0xf] %vm2084_vm6, %v3122_v1  ;;  %v7658_v1 = vpop.f32.mrf.mxu1 }
 0x2f1   : > { %v4729_v1 = vld [vmem:[#allocation5 + $0x13] ss:$128 sm:$0x1] }
 0x2f3   : > { %v3602_v48 = vpop.permute.xlu0 %3601 }
 0x2f4   : > { %3635 = vst.msk [vmem:[#allocation4 + $0x16c] sm:$0xf] %vm2084_vm6, %v3602_v48 }
 0x2f7   : > { %v7848_v19 = vld [vmem:[#allocation4 + $0x168] ss:$12 sps:$4 sm:$0xff]  }
 0x2fb   : > { %v7846_v62 = vld [vmem:[#allocation4 + $0x16c] ss:$12 sps:$4 sm:$0xff]  }
 0x2fc   : > { %4381 = vmatprep.mubr.bf16.mxu0 %v7846_v62 }
 0x2fd   : > { %4382 = vmatmul.mubr.bf16.gmra.mxu0 %v7848_v19 }
 0x305   : > { %v7441_v3 = vpop.f32.mrf.mxu0 }
 0x307   : > { %v7442_v5 = vpop.f32.mrf.mxu0 }
 0x308   : > { %v7443_v43 = vadd.f32 %v7442_v5, %v7441_v3  ;;  %v4491_v5 = vpop.f32.mrf.mxu1 }
 0x309   : > { %v7444_v4 = vpop.f32.mrf.mxu0 }
 0x30a   : > { %v4449_v36 = vadd.f32 %v7645_v44, %v7443_v43 }
 0x30b   : > { %v7445_v24 = vpop.f32.mrf.mxu0 }
 0x30c   : > { %v4564_v61 = vmul.f32 %v9593_v31, %v4449_v36  ;;  %v7849_v36 = vld [vmem:[#allocation7 + $0x170] ss:$8 sps:$4 sm:$0xff]   ;;  %v7851_v24 = vld [vmem:[#allocation7 + $0x174] ss:$8 sps:$4 sm:$0xff]  }
 0x30d   : > { %6055 = vmatprep.subr.bf16.mxu0 %v7851_v24 }
 0x30e   : > { %v4603_v46 = vadd.f32 %v9599_v17, %v4564_v61  ;;  %6056 = vmatpush1.bf16.msra.mxu0 %v7849_v36 }
 0x310   : > { %v4635_v21 = vmax.f32 %v4603_v46, 0.0  ;;  %v7854_v46 = vld [vmem:[#allocation7 + $0x164] ss:$8 sps:$4 sm:$0xff]  }
 0x311   : > { %6057 = vmatprep.subr.bf16.mxu0 %v7854_v46 }
 0x312   : > { %4668 = vst.msk [vmem:[#allocation5 + $0x30] sm:$0xff] %vm4661_vm7, %v4635_v21 }
 0x335   : > { %v7447_v2 = vpop.f32.mrf.mxu0 }
 0x337   : > { %v7448_v27 = vpop.f32.mrf.mxu0 }
 0x338   : > { %v7449_v13 = vadd.f32 %v7448_v27, %v7447_v2  ;;  %v7852_v27 = vld [vmem:[#allocation7 + $0x160] ss:$8 sps:$4 sm:$0xff]  }
 0x339   : > { %v7450_v15 = vpop.f32.mrf.mxu0  ;;  %6058 = vmatpush1.bf16.msra.mxu0 %v7852_v27 }
 0x33a   : > { %v4457_v59 = vadd.f32 %v7449_v13, %v4456_v6  ;;  %v9662_v6 = vpop.f32.mrf.mxu1  ;;  %6059 = vmatprep.subr.bf16.mxu0 %v7857_v47  ;;  %v4765_v47 = vld [vmem:[#allocation5 + $0x14] ss:$128 sm:$0x1] }
 0x33b   : > { %v7451_v23 = vpop.f32.mrf.mxu0 }
 0x33c   : > { %v4566_v51 = vmul.f32 %v9593_v31, %v4457_v59  ;;  %v4504_v23 = vpop.f32.mrf.mxu1 }
 0x33d   : > { %v7453_v41 = vpop.f32.mrf.mxu0  ;;  %6060 = vmatpush1.bf16.msra.mxu0 %v7855_v20 }
 0x33e   : > { %v4605_v37 = vadd.f32 %v9599_v17, %v4566_v51 }
 0x33f   : > { %v7454_v22 = vpop.f32.mrf.mxu0 }
 0x340   : > { %v4637_v34 = vmax.f32 %v4605_v37, 0.0  ;;  %v7455_v12 = vadd.f32 %v7454_v22, %v7453_v41  ;;  %v8161_v22 = vmov 1966171168  }
 0x341   : > { %v7456_v30 = vpop.f32.mrf.mxu0 }
 0x342   : > { %4670 = vst.msk [vmem:[#allocation5 + $0x40] sm:$0xff] %vm4661_vm7, %v4637_v34  ;;  %v4465_v57 = vadd.f32 %v7649_v11, %v7455_v12  ;;  %v4737_v34 = vunpack.c.l.s4 %v8161_v22 }
 0x343   : > { %v7457_v35 = vpop.f32.mrf.mxu0 }
 0x344   : > { %v4568_v49 = vmul.f32 %v9593_v31, %v4465_v57  ;;  %v7662_v57 = vpop.f32.mrf.mxu1  ;;  %v4738_v39 = vunpack.c.0.s8 %v4737_v34 }
 0x345   : > { %v7459_v38 = vpop.f32.mrf.mxu0 }
 0x346   : > { %v4607_v0 = vadd.f32 %v9599_v17, %v4568_v49 }
 0x347   : > { %v7460_v44 = vpop.f32.mrf.mxu0 }
 0x348   : > { %v4639_v7 = vmax.f32 %v4607_v0, 0.0  ;;  %v7461_v58 = vadd.f32 %v7460_v44, %v7459_v38  ;;  %v4777_v38 = vld [vmem:[#allocation5 + $0x6] ss:$128 sm:$0x1] }
 0x349   : > { %v7462_v54 = vpop.f32.mrf.mxu0 }
 0x34a   : > { %4672 = vst.msk [vmem:[#allocation5 + $0x50] sm:$0xff] %vm4661_vm7, %v4639_v7  ;;  %v4473_v45 = vadd.f32 %v7461_v58, %v4472_v14  ;;  %v4781_v54 = vld [vmem:[#allocation5 + $0x7] ss:$128 sm:$0x1] }
 0x34b   : > { %v7463_v32 = vpop.f32.mrf.mxu0 }
 0x34c   : > { %v4570_v50 = vmul.f32 %v9593_v31, %v4473_v45  ;;  %v4716_v45 = vld [vmem:[#allocation5 + $0x2] ss:$128 sm:$0x1] }
 0x34d   : > { %v7465_v29 = vpop.f32.mrf.mxu0 }
 0x34e   : > { %v4609_v53 = vadd.f32 %v9599_v17, %v4570_v50 }
 0x34f   : > { %v7466_v63 = vpop.f32.mrf.mxu0 }
 0x350   : > { %v4641_v52 = vmax.f32 %v4609_v53, 0.0  ;;  %v7467_v60 = vadd.f32 %v7466_v63, %v7465_v29  ;;  %v4507_v29 = vpop.f32.mrf.mxu1 }
 0x351   : > { %v7468_v25 = vpop.f32.mrf.mxu0  ;;  %v7863_v29 = vld [vmem:[#allocation7 + $0x134] ss:$8 sps:$4 sm:$0xff]  }
 0x352   : > { %4674 = vst.msk [vmem:[#allocation5 + $0x60] sm:$0xff] %vm4661_vm7, %v4641_v52  ;;  %v4481_v28 = vadd.f32 %v7653_v8, %v7467_v60  ;;  %v4739_v8 = vlaneseq }
 0x353   : > { %v7469_v16 = vpop.f32.mrf.mxu0 }
 0x354   : > { %v4572_v55 = vmul.f32 %v9593_v31, %v4481_v28  ;;  %v9669_v50 = vshrl.u32 %v4739_v8, 7  ;;  %v4756_v28 = vld [vmem:[#allocation5 + $0x4] ss:$128 sm:$0x1] }
 0x355   : > { %v7471_v40 = vpop.f32.mrf.mxu0 }
 0x356   : > { %v4611_v56 = vadd.f32 %v9599_v17, %v4572_v55 }
 0x357   : > { %v7472_v26 = vpop.f32.mrf.mxu0 }
 0x358   : > { %v4643_v9 = vmax.f32 %v4611_v56, 0.0  ;;  %v7473_v10 = vadd.f32 %v7472_v26, %v7471_v40  ;;  %v4790_v40 = vld [vmem:[#allocation5 + $0x17] ss:$128 sm:$0x1] }
 0x359   : > { %v7474_v48 = vpop.f32.mrf.mxu0 }
 0x35a   : > { %4676 = vst.msk [vmem:[#allocation5 + $0x70] sm:$0xff] %vm4661_vm7, %v4643_v9  ;;  %v4489_v62 = vadd.f32 %v7473_v10, %v4488_v33  ;;  %v4786_v33 = vld [vmem:[#allocation5 + $0x16] ss:$128 sm:$0x1] }
 0x35b   : > { %v7475_v19 = vpop.f32.mrf.mxu0  ;;  %v4725_v10 = vld [vmem:[#allocation5 + $0x12] ss:$128 sm:$0x1]  ;;  %v4760_v48 = vld [vmem:[#allocation5 + $0x5] ss:$128 sm:$0x1] }
 0x35c   : > { %v4574_v3 = vmul.f32 %v9593_v31, %v4489_v62  ;;  %v9672_v62 = vld [vmem:[#allocation5] ss:$128 sm:$0x1] }
 0x35d   : > { %v7477_v43 = vpop.f32.mrf.mxu0 }
 0x35e   : > { %v4613_v4 = vadd.f32 %v9599_v17, %v4574_v3  ;;  %v9676_v3 = vpop.f32.mrf.mxu1 }
 0x35f   : > { %v7478_v61 = vpop.f32.mrf.mxu0 }
 0x360   : > { %v4645_v21 = vmax.f32 %v4613_v4, 0.0  ;;  %v7479_v11 = vadd.f32 %v7478_v61, %v7477_v43  ;;  %v9679_v43 = vsub.s32 %v4738_v39, %v9669_v50  ;;  %v7860_v39 = vld [vmem:[#allocation7 + $0x144] ss:$8 sps:$4 sm:$0xff]  }
 0x361   : > { %v7480_v2 = vpop.f32.mrf.mxu0  ;;  %6061 = vmatprep.subr.bf16.mxu0 %v7860_v39 }
 0x362   : > { %4678 = vst.msk [vmem:[#allocation5 + $0x80] sm:$0xff] %vm4661_vm7, %v4645_v21  ;;  %v4497_v13 = vadd.f32 %v7657_v42, %v7479_v11 }
 0x363   : > { %v7481_v15 = vpop.f32.mrf.mxu0 }
 0x364   : > { %v4576_v59 = vmul.f32 %v9593_v31, %v4497_v13  ;;  %v4769_v15 = vld [vmem:[#allocation5 + $0x15] ss:$128 sm:$0x1] }
 0x365   : > { %v7483_v51 = vpop.f32.mrf.mxu0 }
 0x366   : > { %v4615_v41 = vadd.f32 %v9599_v17, %v4576_v59  ;;  %v4703_v59 = vld [vmem:[#allocation5 + $0x10] ss:$128 sm:$0x1] }
 0x367   : > { %v7484_v37 = vpop.f32.mrf.mxu0 }
 0x368   : > { %v4647_v12 = vmax.f32 %v4615_v41, 0.0  ;;  %v7485_v30 = vadd.f32 %v7484_v37, %v7483_v51 }
 0x369   : > { %v7486_v35 = vpop.f32.mrf.mxu0  ;;  %v4778_v49 = vld [vmem:[#allocation5 + $0x6] ss:$128 sm:$0x2]  ;;  %v4782_v14 = vld [vmem:[#allocation5 + $0x7] ss:$128 sm:$0x2] }
 0x36a   : > { %4680 = vst.msk [vmem:[#allocation5 + $0x90] sm:$0xff] %vm4661_vm7, %v4647_v12  ;;  %v4505_v0 = vadd.f32 %v7485_v30, %v4504_v23  ;;  %v4717_v7 = vld [vmem:[#allocation5 + $0x2] ss:$128 sm:$0x2]  ;;  %v4779_v63 = vor.u32 %v4778_v49, %v4777_v38  ;;  %v4783_v52 = vor.u32 %v4782_v14, %v4781_v54  ;;  %v7858_v35 = vld [vmem:[#allocation7 + $0x140] ss:$8 sps:$4 sm:$0xff]   ;;  %v4520_v49 = vpop.f32.mrf.mxu1 }
 0x36b   : > { %v4721_v44 = vld [vmem:[#allocation5 + $0x3] ss:$128 sm:$0x2]  ;;  %v7487_v58 = vpop.f32.mrf.mxu0  ;;  %v4718_v60 = vor.u32 %v4717_v7, %v4716_v45  ;;  %v4757_v16 = vld [vmem:[#allocation5 + $0x4] ss:$128 sm:$0x2]  ;;  %6062 = vmatpush1.bf16.msra.mxu0 %v7858_v35 }
 0x36c   : > { %v4578_v32 = vmul.f32 %v9593_v31, %v4505_v0  ;;  %v4722_v42 = vor.u32 %v4721_v44, %v4720_v18  ;;  %v4761_v56 = vld [vmem:[#allocation5 + $0x5] ss:$128 sm:$0x2]  ;;  %v9674_v19 = vld [vmem:[#allocation5] ss:$128 sm:$0x2]  ;;  %v4784_v4 = vmax.f32 %v4779_v63, %v4783_v52  ;;  %v4758_v46 = vor.u32 %v4757_v16, %v4756_v28  ;;  %6063 = vmatprep.subr.bf16.mxu0 %v7863_v29 }
 0x36d   : > { %v7489_v53 = vpop.f32.mrf.mxu0  ;;  %v4699_v23 = vld [vmem:[#allocation5 + $0x1] ss:$128 sm:$0x2]  ;;  %v4762_v34 = vor.u32 %v4761_v56, %v4760_v48  ;;  %v4707_v12 = vld [vmem:[#allocation5 + $0x11] ss:$128 sm:$0x1]  ;;  %v4696_v30 = vor.u32 %v9674_v19, %v9672_v62 }
 0x36e   : > { %v4617_v25 = vadd.f32 %v9599_v17, %v4578_v32  ;;  %v4723_v61 = vmax.f32 %v4718_v60, %v4722_v42  ;;  %v4698_v32 = vld [vmem:[#allocation5 + $0x1] ss:$128 sm:$0x1]  ;;  %v4816_v29 = vld [vmem:[#allocation5 + $0x20] ss:$128 sm:$0x1] }
 0x36f   : > { %v7490_v55 = vpop.f32.mrf.mxu0  ;;  %v4763_v60 = vmax.f32 %v4758_v46, %v4762_v34  ;;  %v4700_v42 = vor.u32 %v4699_v23, %v4698_v32  ;;  %v4897_v46 = vld [vmem:[#allocation5 + $0x26] ss:$128 sm:$0x1] }
 0x370   : > { %v4649_v26 = vmax.f32 %v4617_v25, 0.0  ;;  %v7491_v9 = vadd.f32 %v7490_v55, %v7489_v53  ;;  %v7861_v55 = vld [vmem:[#allocation7 + $0x130] ss:$8 sps:$4 sm:$0xff]  }
 0x371   : > { %v7492_v5 = vpop.f32.mrf.mxu0  ;;  %v4787_v36 = vld [vmem:[#allocation5 + $0x16] ss:$128 sm:$0x2]  ;;  %v4791_v24 = vld [vmem:[#allocation5 + $0x17] ss:$128 sm:$0x2]  ;;  %6064 = vmatpush1.bf16.msra.mxu0 %v7861_v55 }
 0x372   : > { %4682 = vst.msk [vmem:[#allocation5 + $0xa0] sm:$0xff] %vm4661_vm7, %v4649_v26  ;;  %v4513_v21 = vadd.f32 %v9662_v6, %v7491_v9  ;;  %v4788_v11 = vor.u32 %v4787_v36, %v4786_v33  ;;  %v4792_v2 = vor.u32 %v4791_v24, %v4790_v40  ;;  %v4726_v27 = vld [vmem:[#allocation5 + $0x12] ss:$128 sm:$0x2]  ;;  %v7666_v33 = vpop.f32.mrf.mxu1  ;;  %v4701_v36 = vmax.f32 %v4696_v30, %v4700_v42 }
 0x373   : > { %v4730_v13 = vld [vmem:[#allocation5 + $0x13] ss:$128 sm:$0x2]  ;;  %v7493_v51 = vpop.f32.mrf.mxu0  ;;  %v4727_v20 = vor.u32 %v4726_v27, %v4725_v10  ;;  %v4766_v37 = vld [vmem:[#allocation5 + $0x14] ss:$128 sm:$0x2] }
 0x374   : > { %v4731_v41 = vor.u32 %v4730_v13, %v4729_v1  ;;  %v4770_v22 = vld [vmem:[#allocation5 + $0x15] ss:$128 sm:$0x2]  ;;  %v4580_v6 = vmul.f32 %v9593_v31, %v4513_v21  ;;  %v4793_v8 = vmax.f32 %v4788_v11, %v4792_v2  ;;  %v4704_v57 = vld [vmem:[#allocation5 + $0x10] ss:$128 sm:$0x2]  ;;  %v4767_v38 = vor.u32 %v4766_v37, %v4765_v47  ;;  %v4523_v2 = vpop.f32.mrf.mxu1 }
 0x375   : > { %v4771_v7 = vor.u32 %v4770_v22, %v4769_v15  ;;  %v4705_v44 = vor.u32 %v4704_v57, %v4703_v59  ;;  %v4708_v58 = vld [vmem:[#allocation5 + $0x11] ss:$128 sm:$0x2]  ;;  %v4901_v21 = vld [vmem:[#allocation5 + $0x27] ss:$128 sm:$0x1] }
 0x376   : > { %v7495_v14 = vpop.f32.mrf.mxu0  ;;  %v4732_v0 = vmax.f32 %v4727_v20, %v4731_v41  ;;  %v4619_v54 = vadd.f32 %v9599_v17, %v4580_v6  ;;  %v4794_v45 = vmax.f32 %v4784_v4, %v4793_v8  ;;  %v4709_v18 = vor.u32 %v4708_v58, %v4707_v12  ;;  %v4837_v13 = vld [vmem:[#allocation5 + $0x22] ss:$128 sm:$0x1]  ;;  %v4841_v47 = vld [vmem:[#allocation5 + $0x23] ss:$128 sm:$0x1] }
 0x377   : > { %v4772_v52 = vmax.f32 %v4767_v38, %v4771_v7  ;;  %v4876_v51 = vld [vmem:[#allocation5 + $0x24] ss:$128 sm:$0x1]  ;;  %v4906_v37 = vld [vmem:[#allocation5 + $0x36] ss:$128 sm:$0x1] }
 0x378   : > { %v7496_v53 = vpop.f32.mrf.mxu0  ;;  %v4733_v63 = vmax.f32 %v4723_v61, %v4732_v0  ;;  %v4651_v25 = vmax.f32 %v4619_v54, 0.0  ;;  %v4795_v16 = vpack.c.bf16 %v4794_v45, %v4794_v45  ;;  %v4710_v48 = vmax.f32 %v4705_v44, %v4709_v18  ;;  %v4910_v22 = vld [vmem:[#allocation5 + $0x37] ss:$128 sm:$0x1]  ;;  %v7875_v2 = vld [vmem:[#allocation7 + $0x74] ss:$8 sps:$4 sm:$0xff]  }
 0x379   : > { %v7497_v28 = vadd.f32 %v7496_v53, %v7495_v14  ;;  %v4773_v26 = vmax.f32 %v4763_v60, %v4772_v52  ;;  %v4898_v1 = vld [vmem:[#allocation5 + $0x26] ss:$128 sm:$0x2]  ;;  %v4902_v5 = vld [vmem:[#allocation5 + $0x27] ss:$128 sm:$0x2]  ;;  %6014 = vmatprep.subr.bf16.mxu1 %v7875_v2 }
 0x37a   : > { %v7498_v40 = vpop.f32.mrf.mxu0  ;;  %v4734_v56 = vpack.c.bf16 %v4733_v63, %v4733_v63  ;;  %4684 = vst.msk [vmem:[#allocation5 + $0xb0] sm:$0xff] %vm4661_vm7, %v4651_v25  ;;  %v4803_v10 = vrot.slane %v4795_v16, %v9679_v43  ;;  %v4838_v4 = vld [vmem:[#allocation5 + $0x22] ss:$128 sm:$0x2]  ;;  %v4711_v23 = vmax.f32 %v4701_v36, %v4710_v48  ;;  %v4903_v41 = vor.u32 %v4902_v5, %v4901_v21  ;;  %v7866_v5 = vld [vmem:[#allocation7 + $0x124] ss:$8 sps:$4 sm:$0xff]  }
 0x37b   : > { %v4521_v9 = vadd.f32 %v7497_v28, %v4520_v49  ;;  %v4842_v11 = vld [vmem:[#allocation5 + $0x23] ss:$128 sm:$0x2]  ;;  %v4774_v15 = vpack.c.bf16 %v4773_v26, %v4773_v26  ;;  %v4877_v20 = vld [vmem:[#allocation5 + $0x24] ss:$128 sm:$0x2]  ;;  %v4839_v34 = vor.u32 %v4838_v4, %v4837_v13  ;;  %6065 = vmatprep.subr.bf16.mxu0 %v7866_v5 }
 0x37c   : > { %v7499_v62 = vpop.f32.mrf.mxu0  ;;  %v4742_v19 = vrot.slane %v4734_v56, %v9679_v43  ;;  %v4810_v61 = vrot.slane %v4803_v10, %v9679_v43  ;;  %v4843_v12 = vor.u32 %v4842_v11, %v4841_v47  ;;  %v4880_v30 = vld [vmem:[#allocation5 + $0x25] ss:$128 sm:$0x1]  ;;  %v4846_v57 = vld [vmem:[#allocation5 + $0x32] ss:$128 sm:$0x1]  ;;  %v4712_v35 = vpack.c.bf16 %v4711_v23, %v4711_v23 }
 0x37d   : > { %v4582_v24 = vmul.f32 %v9593_v31, %v4521_v9  ;;  %v4899_v31 = vor.u32 %v4898_v1, %v4897_v46  ;;  %4775 = vst.msk [vmem:[#allocation6 + $0x1] sm:$0x1] %vm4713_vm8, %v4774_v15  ;;  %v4881_v6 = vld [vmem:[#allocation5 + $0x25] ss:$128 sm:$0x2]  ;;  %v4878_v7 = vor.u32 %v4877_v20, %v4876_v51 }
 0x37e   : > { %v4749_v27 = vrot.slane %v4742_v19, %v9679_v43  ;;  %4811 = vrot.lane.b32.xlu1 %v4810_v61, %s8160_s25  ;;  %v4817_v49 = vld [vmem:[#allocation5 + $0x20] ss:$128 sm:$0x2]  ;;  %v4821_v14 = vld [vmem:[#allocation5 + $0x21] ss:$128 sm:$0x2]  ;;  %v4882_v18 = vor.u32 %v4881_v6, %v4880_v30  ;;  %v4844_v60 = vmax.f32 %v4839_v34, %v4843_v12 }
 0x37f   : > { %v4621_v59 = vadd.f32 %v9599_v17, %v4582_v24  ;;  %v4850_v17 = vld [vmem:[#allocation5 + $0x33] ss:$128 sm:$0x1]  ;;  %v4885_v44 = vld [vmem:[#allocation5 + $0x34] ss:$128 sm:$0x1]  ;;  %v4904_v52 = vmax.f32 %v4899_v31, %v4903_v41  ;;  %v4818_v1 = vor.u32 %v4817_v49, %v4816_v29 }
 0x380   : > { %4750 = vrot.lane.b32.xlu0 %v4749_v27, %s8160_s25  ;;  %v4889_v58 = vld [vmem:[#allocation5 + $0x35] ss:$128 sm:$0x1]  ;;  %4714 = vst.msk [vmem:[#allocation6] sm:$0x1] %vm4713_vm8, %v4712_v35  ;;  %v4883_v36 = vmax.f32 %v4878_v7, %v4882_v18 }
 0x381   : > { %v4653_v8 = vmax.f32 %v4621_v59, 0.0  ;;  %v4907_v0 = vld [vmem:[#allocation5 + $0x36] ss:$128 sm:$0x2]  ;;  %v7864_v9 = vld [vmem:[#allocation7 + $0x120] ss:$8 sps:$4 sm:$0xff]  }
 0x382   : > { %v4911_v38 = vld [vmem:[#allocation5 + $0x37] ss:$128 sm:$0x2]  ;;  %v4908_v39 = vor.u32 %v4907_v0, %v4906_v37  ;;  %v4847_v45 = vld [vmem:[#allocation5 + $0x32] ss:$128 sm:$0x2]  ;;  %6066 = vmatpush1.bf16.msra.mxu0 %v7864_v9 }
 0x383   : > { %4686 = vst.msk [vmem:[#allocation5 + $0xc0] sm:$0xff] %vm4661_vm7, %v4653_v8  ;;  %v4912_v54 = vor.u32 %v4911_v38, %v4910_v22  ;;  %v4851_v32 = vld [vmem:[#allocation5 + $0x33] ss:$128 sm:$0x2]  ;;  %v4848_v42 = vor.u32 %v4847_v45, %v4846_v57  ;;  %v7869_v46 = vld [vmem:[#allocation7 + $0x114] ss:$8 sps:$4 sm:$0xff]  }
 0x384   : > { %v4820_v53 = vld [vmem:[#allocation5 + $0x21] ss:$128 sm:$0x1]  ;;  %v4825_v63 = vld [vmem:[#allocation5 + $0x30] ss:$128 sm:$0x1]  ;;  %v4852_v25 = vor.u32 %v4851_v32, %v4850_v17  ;;  %6067 = vmatprep.subr.bf16.mxu0 %v7869_v46 }
 0x385   : > { %v4886_v28 = vld [vmem:[#allocation5 + $0x34] ss:$128 sm:$0x2]  ;;  %v4890_v16 = vld [vmem:[#allocation5 + $0x35] ss:$128 sm:$0x2]  ;;  %v4913_v33 = vmax.f32 %v4908_v39, %v4912_v54  ;;  %v4822_v48 = vor.u32 %v4821_v14, %v4820_v53  ;;  %v9721_v53 = vpop.f32.mrf.mxu1 }
 0x386   : > { %v4829_v55 = vld [vmem:[#allocation5 + $0x31] ss:$128 sm:$0x1]  ;;  %v4887_v40 = vor.u32 %v4886_v28, %v4885_v44  ;;  %v4891_v56 = vor.u32 %v4890_v16, %v4889_v58  ;;  %v4826_v26 = vld [vmem:[#allocation5 + $0x30] ss:$128 sm:$0x2]  ;;  %v4853_v10 = vmax.f32 %v4848_v42, %v4852_v25 }
 0x387   : > { %v4827_v62 = vor.u32 %v4826_v26, %v4825_v63  ;;  %v4830_v19 = vld [vmem:[#allocation5 + $0x31] ss:$128 sm:$0x2]  ;;  %v4914_v4 = vmax.f32 %v4904_v52, %v4913_v33  ;;  %v7873_v11 = vld [vmem:[#allocation7 + $0x70] ss:$8 sps:$4 sm:$0xff]   ;;  %v4823_v23 = vmax.f32 %v4818_v1, %v4822_v48 }
 0x388   : > { %v4892_v24 = vmax.f32 %v4887_v40, %v4891_v56  ;;  %v4831_v61 = vor.u32 %v4830_v19, %v4829_v55  ;;  %v4854_v21 = vmax.f32 %v4844_v60, %v4853_v10  ;;  %v7867_v15 = vld [vmem:[#allocation7 + $0x110] ss:$8 sps:$4 sm:$0xff]   ;;  %v7872_v51 = vld [vmem:[#allocation7 + $0x104] ss:$8 sps:$4 sm:$0xff]   ;;  %6015 = vmatpush1.bf16.msra.mxu1 %v7873_v11  ;;  %v7870_v12 = vld [vmem:[#allocation7 + $0x100] ss:$8 sps:$4 sm:$0xff]  }
 0x389   : > { %v4915_v27 = vpack.c.bf16 %v4914_v4, %v4914_v4  ;;  %6068 = vmatpush1.bf16.msra.mxu0 %v7867_v15  ;;  %v9711_v14 = vld [vmem:[%s9866_s5] ss:$0 sm:$0xff]  ;;  %v5017_v58 = vld [vmem:[#allocation5 + $0x46] ss:$128 sm:$0x1] }
 0x38a   : > { %v4893_v13 = vmax.f32 %v4883_v36, %v4892_v24  ;;  %v4832_v47 = vmax.f32 %v4827_v62, %v4831_v61  ;;  %v4855_v59 = vpack.c.bf16 %v4854_v21, %v4854_v21  ;;  %6069 = vmatprep.subr.bf16.mxu0 %v7872_v51  ;;  %v9717_v38 = vld [vmem:[%s9867_s6] ss:$0 sm:$0xff]  ;;  %v5021_v39 = vld [vmem:[#allocation5 + $0x47] ss:$128 sm:$0x1] }
 0x38b   : > { %v4923_v20 = vrot.slane %v4915_v27, %v9679_v43  ;;  %v5022_v54 = vld [vmem:[#allocation5 + $0x47] ss:$128 sm:$0x2]  ;;  %v4957_v45 = vld [vmem:[#allocation5 + $0x42] ss:$128 sm:$0x1] }
 0x38c   : > { %v4894_v31 = vpack.c.bf16 %v4893_v13, %v4893_v13  ;;  %v4863_v41 = vrot.slane %v4855_v59, %v9679_v43  ;;  %v4833_v37 = vmax.f32 %v4823_v23, %v4832_v47  ;;  %v4958_v32 = vld [vmem:[#allocation5 + $0x42] ss:$128 sm:$0x2]  ;;  %v4961_v18 = vld [vmem:[#allocation5 + $0x43] ss:$128 sm:$0x1]  ;;  %v5023_v55 = vor.u32 %v5022_v54, %v5021_v39  ;;  %v4536_v13 = vpop.f32.mrf.mxu1 }
 0x38d   : > { %v4930_v34 = vrot.slane %v4923_v20, %v9679_v43  ;;  %6070 = vmatpush1.bf16.msra.mxu0 %v7870_v12  ;;  %v4962_v29 = vld [vmem:[#allocation5 + $0x43] ss:$128 sm:$0x2]  ;;  %v5026_v63 = vld [vmem:[#allocation5 + $0x56] ss:$128 sm:$0x1]  ;;  %v4959_v62 = vor.u32 %v4958_v32, %v4957_v45 }
 0x38e   : > { %v7501_v22 = vpop.f32.mrf.mxu0  ;;  %4895 = vst.msk [vmem:[#allocation6 + $0x3] sm:$0x1] %vm4713_vm8, %v4894_v31  ;;  %v4870_v30 = vrot.slane %v4863_v41, %v9679_v43  ;;  %v4834_v6 = vpack.c.bf16 %v4833_v37, %v4833_v37  ;;  %v5030_v52 = vld [vmem:[#allocation5 + $0x57] ss:$128 sm:$0x1]  ;;  %v4963_v19 = vor.u32 %v4962_v29, %v4961_v18  ;;  %v7670_v45 = vpop.f32.mrf.mxu1 }
 0x38f   : > { %4931 = vrot.lane.b32.xlu1 %v4930_v34, %s8160_s25  ;;  %v4996_v60 = vld [vmem:[#allocation5 + $0x44] ss:$128 sm:$0x1]  ;;  %v5000_v25 = vld [vmem:[#allocation5 + $0x45] ss:$128 sm:$0x1] }
 0x390   : > { %v7502_v8 = vpop.f32.mrf.mxu0  ;;  %4871 = vrot.lane.b32.xlu0 %v4870_v30, %s8160_s25  ;;  %4835 = vst.msk [vmem:[#allocation6 + $0x2] sm:$0x1] %vm4713_vm8, %v4834_v6  ;;  %v4997_v42 = vld [vmem:[#allocation5 + $0x44] ss:$128 sm:$0x2]  ;;  %v4964_v6 = vmax.f32 %v4959_v62, %v4963_v19 }
 0x391   : > { %v7503_v57 = vadd.f32 %v7502_v8, %v7501_v22  ;;  %v5001_v28 = vld [vmem:[#allocation5 + $0x45] ss:$128 sm:$0x2]  ;;  %v4966_v33 = vld [vmem:[#allocation5 + $0x52] ss:$128 sm:$0x1]  ;;  %v4998_v21 = vor.u32 %v4997_v42, %v4996_v60 }
 0x392   : > { %v7504_v17 = vpop.f32.mrf.mxu0  ;;  %v4970_v40 = vld [vmem:[#allocation5 + $0x53] ss:$128 sm:$0x1]  ;;  %v4936_v56 = vld [vmem:[#allocation5 + $0x40] ss:$128 sm:$0x1]  ;;  %v5002_v11 = vor.u32 %v5001_v28, %v5000_v25 }
 0x393   : > { %v4529_v35 = vadd.f32 %v9676_v3, %v7503_v57  ;;  %v5018_v3 = vld [vmem:[#allocation5 + $0x46] ss:$128 sm:$0x2]  ;;  %v4937_v26 = vld [vmem:[#allocation5 + $0x40] ss:$128 sm:$0x2] }
 0x394   : > { %v7505_v49 = vpop.f32.mrf.mxu0  ;;  %v5019_v16 = vor.u32 %v5018_v3, %v5017_v58  ;;  %v4940_v9 = vld [vmem:[#allocation5 + $0x41] ss:$128 sm:$0x1]  ;;  %v5005_v5 = vld [vmem:[#allocation5 + $0x54] ss:$128 sm:$0x1]  ;;  %v4938_v51 = vor.u32 %v4937_v26, %v4936_v56 }
 0x395   : > { %v4584_v0 = vmul.f32 %v9711_v14, %v4529_v35  ;;  %v4941_v10 = vld [vmem:[#allocation5 + $0x41] ss:$128 sm:$0x2]  ;;  %v5009_v4 = vld [vmem:[#allocation5 + $0x55] ss:$128 sm:$0x1] }
 0x396   : > { %v4945_v2 = vld [vmem:[#allocation5 + $0x50] ss:$128 sm:$0x1]  ;;  %v4949_v27 = vld [vmem:[#allocation5 + $0x51] ss:$128 sm:$0x1]  ;;  %v4942_v20 = vor.u32 %v4941_v10, %v4940_v9  ;;  %v5024_v31 = vmax.f32 %v5019_v16, %v5023_v55 }
 0x397   : > { %v4623_v7 = vadd.f32 %v9717_v38, %v4584_v0  ;;  %v7876_v35 = vld [vmem:[#allocation7 + $0x1f0] ss:$8 sps:$4 sm:$0xff]   ;;  %v7878_v49 = vld [vmem:[#allocation7 + $0x1f4] ss:$8 sps:$4 sm:$0xff]   ;;  %v7879_v0 = vld [vmem:[#allocation7 + $0x60] ss:$8 sps:$4 sm:$0xff]  }
 0x398   : > { %v7881_v3 = vld [vmem:[#allocation7 + $0x64] ss:$8 sps:$4 sm:$0xff]   ;;  %v7884_v39 = vld [vmem:[#allocation7 + $0x54] ss:$8 sps:$4 sm:$0xff]   ;;  %v4943_v18 = vmax.f32 %v4938_v51, %v4942_v20  ;;  %6071 = vmatprep.subr.bf16.mxu0 %v7878_v49  ;;  %v7885_v25 = vld [vmem:[#allocation7 + $0x1e0] ss:$8 sps:$4 sm:$0xff]  }
 0x399   : > { %v4655_v44 = vmax.f32 %v4623_v7, 0.0  ;;  %6072 = vmatpush2.bf16.msra.mxu0 %v7876_v35  ;;  %6016 = vmatprep.subr.bf16.mxu1 %v7881_v3  ;;  %v7890_v10 = vld [vmem:[#allocation7 + $0x44] ss:$8 sps:$4 sm:$0xff]   ;;  %v7902_v20 = vld [vmem:[#allocation7 + $0x14] ss:$8 sps:$4 sm:$0xff]  }
 0x39a   : > { %6017 = vmatpush1.bf16.msra.mxu1 %v7879_v0  ;;  %v7923_v51 = vld [vmem:[#allocation7 + $0x1a4] ss:$8 sps:$4 sm:$0xff]   ;;  %v7924_v45 = vld [vmem:[#allocation7 + $0xc0] ss:$8 sps:$4 sm:$0xff]  }
 0x39b   : > { %4688 = vst.msk [vmem:[#allocation5 + $0xd0] sm:$0xff] %vm4661_vm7, %v4655_v44  ;;  %v5003_v44 = vmax.f32 %v4998_v21, %v5002_v11  ;;  %6018 = vmatprep.subr.bf16.mxu1 %v7884_v39  ;;  %v7893_v11 = vld [vmem:[#allocation7 + $0x34] ss:$8 sps:$4 sm:$0xff]   ;;  %v7917_v35 = vld [vmem:[#allocation7 + $0xe4] ss:$8 sps:$4 sm:$0xff]  }
 0x39c   : > { %v7918_v39 = vld [vmem:[#allocation7 + $0xd0] ss:$8 sps:$4 sm:$0xff]  }
 0x3a2   : > { %v5027_v1 = vld [vmem:[#allocation5 + $0x56] ss:$128 sm:$0x2]  ;;  %v5031_v48 = vld [vmem:[#allocation5 + $0x57] ss:$128 sm:$0x2] }
 0x3a3   : > { %v5028_v36 = vor.u32 %v5027_v1, %v5026_v63  ;;  %v5032_v24 = vor.u32 %v5031_v48, %v5030_v52  ;;  %v4967_v61 = vld [vmem:[#allocation5 + $0x52] ss:$128 sm:$0x2]  ;;  %v4971_v46 = vld [vmem:[#allocation5 + $0x53] ss:$128 sm:$0x2]  ;;  %v4539_v48 = vpop.f32.mrf.mxu1 }
 0x3a4   : > { %v4968_v47 = vor.u32 %v4967_v61, %v4966_v33  ;;  %v4972_v15 = vor.u32 %v4971_v46, %v4970_v40  ;;  %v5006_v59 = vld [vmem:[#allocation5 + $0x54] ss:$128 sm:$0x2]  ;;  %v5010_v23 = vld [vmem:[#allocation5 + $0x55] ss:$128 sm:$0x2] }
 0x3a5   : > { %v5033_v41 = vmax.f32 %v5028_v36, %v5032_v24  ;;  %v5007_v37 = vor.u32 %v5006_v59, %v5005_v5  ;;  %v5011_v22 = vor.u32 %v5010_v23, %v5009_v4  ;;  %v4946_v34 = vld [vmem:[#allocation5 + $0x50] ss:$128 sm:$0x2]  ;;  %v4950_v12 = vld [vmem:[#allocation5 + $0x51] ss:$128 sm:$0x2] }
 0x3a6   : > { %v7507_v30 = vpop.f32.mrf.mxu0  ;;  %v4973_v8 = vmax.f32 %v4968_v47, %v4972_v15  ;;  %v4947_v57 = vor.u32 %v4946_v34, %v4945_v2  ;;  %v4951_v17 = vor.u32 %v4950_v12, %v4949_v27  ;;  %v7887_v63 = vld [vmem:[#allocation7 + $0x1e4] ss:$8 sps:$4 sm:$0xff]   ;;  %v7882_v33 = vld [vmem:[#allocation7 + $0x50] ss:$8 sps:$4 sm:$0xff]   ;;  %v7896_v40 = vld [vmem:[#allocation7 + $0x1d4] ss:$8 sps:$4 sm:$0xff]  }
 0x3a7   : > { %v5034_v7 = vmax.f32 %v5024_v31, %v5033_v41  ;;  %v5012_v58 = vmax.f32 %v5007_v37, %v5011_v22  ;;  %6073 = vmatprep.subr.bf16.mxu0 %v7887_v63  ;;  %v7894_v36 = vld [vmem:[#allocation7 + $0x1d0] ss:$8 sps:$4 sm:$0xff]   ;;  %6019 = vmatpush1.bf16.msra.mxu1 %v7882_v33  ;;  %v7888_v61 = vld [vmem:[#allocation7 + $0x40] ss:$8 sps:$4 sm:$0xff]   ;;  %v7905_v46 = vld [vmem:[#allocation7 + $0x1c4] ss:$8 sps:$4 sm:$0xff]  }
 0x3a8   : > { %v7508_v54 = vpop.f32.mrf.mxu0  ;;  %v4974_v32 = vmax.f32 %v4964_v6, %v4973_v8  ;;  %v4952_v29 = vmax.f32 %v4947_v57, %v4951_v17  ;;  %6074 = vmatpush2.bf16.msra.mxu0 %v7885_v25  ;;  %6020 = vmatprep.subr.bf16.mxu1 %v7890_v10  ;;  %v7903_v27 = vld [vmem:[#allocation7 + $0x1c0] ss:$8 sps:$4 sm:$0xff]   ;;  %v7914_v47 = vld [vmem:[#allocation7 + $0x1b4] ss:$8 sps:$4 sm:$0xff]   ;;  %v7899_v15 = vld [vmem:[#allocation7 + $0x24] ss:$8 sps:$4 sm:$0xff]  }
 0x3a9   : > { %v7509_v52 = vadd.f32 %v7508_v54, %v7507_v30  ;;  %v5035_v60 = vpack.c.bf16 %v5034_v7, %v5034_v7  ;;  %v5013_v42 = vmax.f32 %v5003_v44, %v5012_v58  ;;  %6075 = vmatprep.subr.bf16.mxu0 %v7896_v40  ;;  %v7912_v59 = vld [vmem:[#allocation7 + $0x1b0] ss:$8 sps:$4 sm:$0xff]   ;;  %v7897_v23 = vld [vmem:[#allocation7 + $0x20] ss:$8 sps:$4 sm:$0xff]   ;;  %v7908_v37 = vld [vmem:[#allocation7 + $0x4] ss:$8 sps:$4 sm:$0xff]  }
 0x3aa   : > { %v7510_v28 = vpop.f32.mrf.mxu0  ;;  %v4975_v16 = vpack.c.bf16 %v4974_v32, %v4974_v32  ;;  %v4953_v55 = vmax.f32 %v4943_v18, %v4952_v29  ;;  %v7921_v31 = vld [vmem:[#allocation7 + $0x1a0] ss:$8 sps:$4 sm:$0xff]   ;;  %v7900_v41 = vld [vmem:[#allocation7 + $0x10] ss:$8 sps:$4 sm:$0xff]   ;;  %v7911_v12 = vld [vmem:[#allocation7 + $0xf4] ss:$8 sps:$4 sm:$0xff]  }
 0x3ab   : > { %v4537_v56 = vadd.f32 %v7509_v52, %v4536_v13  ;;  %v5043_v26 = vrot.slane %v5035_v60, %v9679_v43  ;;  %v5014_v9 = vpack.c.bf16 %v5013_v42, %v5013_v42  ;;  %6021 = vmatpush1.bf16.msra.mxu1 %v7888_v61  ;;  %v7891_v13 = vld [vmem:[#allocation7 + $0x30] ss:$8 sps:$4 sm:$0xff]   ;;  %v7906_v34 = vld [vmem:[#allocation7] ss:$8 sps:$4 sm:$0xff]   ;;  %v7920_v58 = vld [vmem:[#allocation7 + $0xd4] ss:$8 sps:$4 sm:$0xff]  }
 0x3ac   : > { %v7511_v1 = vpop.f32.mrf.mxu0  ;;  %v4983_v62 = vrot.slane %v4975_v16, %v9679_v43  ;;  %v4954_v19 = vpack.c.bf16 %v4953_v55, %v4953_v55  ;;  %6076 = vmatpush2.bf16.msra.mxu0 %v7894_v36  ;;  %6022 = vmatprep.subr.bf16.mxu1 %v7893_v11  ;;  %v7909_v57 = vld [vmem:[#allocation7 + $0xf0] ss:$8 sps:$4 sm:$0xff]   ;;  %v7915_v7 = vld [vmem:[#allocation7 + $0xe0] ss:$8 sps:$4 sm:$0xff]   ;;  %v7926_v54 = vld [vmem:[#allocation7 + $0xc4] ss:$8 sps:$4 sm:$0xff]  }
 0x3ad   : > { %v4586_v5 = vmul.f32 %v9711_v14, %v4537_v56  ;;  %v5050_v4 = vrot.slane %v5043_v26, %v9679_v43  ;;  %5015 = vst.msk [vmem:[#allocation6 + $0x5] sm:$0x1] %vm4713_vm8, %v5014_v9  ;;  %6077 = vmatprep.subr.bf16.mxu0 %v7905_v46  ;;  %v5137_v32 = vld [vmem:[#allocation5 + $0x66] ss:$128 sm:$0x1] }
 0x3ae   : > { %v4990_v24 = vrot.slane %v4983_v62, %v9679_v43  ;;  %4955 = vst.msk [vmem:[#allocation6 + $0x4] sm:$0x1] %vm4713_vm8, %v4954_v19  ;;  %v5141_v29 = vld [vmem:[#allocation5 + $0x67] ss:$128 sm:$0x1] }
 0x3af   : > { %v4625_v21 = vadd.f32 %v9717_v38, %v4586_v5  ;;  %5051 = vrot.lane.b32.xlu1 %v5050_v4, %s8160_s25  ;;  %6023 = vmatpush1.bf16.msra.mxu1 %v7891_v13  ;;  %v5081_v60 = vld [vmem:[#allocation5 + $0x63] ss:$128 sm:$0x1]  ;;  %v5146_v42 = vld [vmem:[#allocation5 + $0x76] ss:$128 sm:$0x1] }
 0x3b0   : > { %4991 = vrot.lane.b32.xlu0 %v4990_v24, %s8160_s25  ;;  %6078 = vmatpush2.bf16.msra.mxu0 %v7903_v27  ;;  %v5150_v25 = vld [vmem:[#allocation5 + $0x77] ss:$128 sm:$0x1]  ;;  %v7927_v28 = vld [vmem:[#allocation7 + $0xb0] ss:$8 sps:$4 sm:$0xff]  }
 0x3b1   : > { %v4657_v2 = vmax.f32 %v4625_v21, 0.0  ;;  %6079 = vmatprep.subr.bf16.mxu0 %v7914_v47  ;;  %6024 = vmatprep.subr.bf16.mxu1 %v7899_v15  ;;  %v5116_v33 = vld [vmem:[#allocation5 + $0x64] ss:$128 sm:$0x1] }
 0x3b2   : > { %v5120_v40 = vld [vmem:[#allocation5 + $0x65] ss:$128 sm:$0x1]  ;;  %v5086_v9 = vld [vmem:[#allocation5 + $0x72] ss:$128 sm:$0x1] }
 0x3b3   : > { %4690 = vst.msk [vmem:[#allocation5 + $0xe0] sm:$0xff] %vm4661_vm7, %v4657_v2  ;;  %6025 = vmatpush1.bf16.msra.mxu1 %v7897_v23  ;;  %v5090_v10 = vld [vmem:[#allocation5 + $0x73] ss:$128 sm:$0x1] }
 0x3b4   : > { %6080 = vmatpush2.bf16.msra.mxu0 %v7912_v59  ;;  %6026 = vmatprep.subr.bf16.mxu1 %v7902_v20  ;;  %v5056_v62 = vld [vmem:[#allocation5 + $0x60] ss:$128 sm:$0x1]  ;;  %v5060_v19 = vld [vmem:[#allocation5 + $0x61] ss:$128 sm:$0x1] }
 0x3b5   : > { %6081 = vmatprep.subr.bf16.mxu0 %v7923_v51  ;;  %v5125_v61 = vld [vmem:[#allocation5 + $0x74] ss:$128 sm:$0x1]  ;;  %v5129_v46 = vld [vmem:[#allocation5 + $0x75] ss:$128 sm:$0x1] }
 0x3b6   : > { %v5065_v15 = vld [vmem:[#allocation5 + $0x70] ss:$128 sm:$0x1]  ;;  %v5069_v59 = vld [vmem:[#allocation5 + $0x71] ss:$128 sm:$0x1] }
 0x3b7   : > { %6027 = vmatpush1.bf16.msra.mxu1 %v7900_v41 }
 0x3b8   : > { %6082 = vmatpush2.bf16.msra.mxu0 %v7921_v31  ;;  %6028 = vmatprep.subr.bf16.mxu1 %v7908_v37 }
 0x3ba   : > { %v5138_v18 = vld [vmem:[#allocation5 + $0x66] ss:$128 sm:$0x2]  ;;  %v5142_v63 = vld [vmem:[#allocation5 + $0x67] ss:$128 sm:$0x2] }
 0x3bb   : > { %6029 = vmatpush1.bf16.msra.mxu1 %v7906_v34  ;;  %v5078_v52 = vld [vmem:[#allocation5 + $0x62] ss:$128 sm:$0x2]  ;;  %v5117_v16 = vld [vmem:[#allocation5 + $0x64] ss:$128 sm:$0x2]  ;;  %v5139_v56 = vor.u32 %v5138_v18, %v5137_v32  ;;  %v5143_v26 = vor.u32 %v5142_v63, %v5141_v29 }
 0x3bc   : > { %6030 = vmatprep.subr.bf16.mxu1 %v7911_v12  ;;  %v5121_v55 = vld [vmem:[#allocation5 + $0x65] ss:$128 sm:$0x2]  ;;  %v5057_v1 = vld [vmem:[#allocation5 + $0x60] ss:$128 sm:$0x2]  ;;  %v5118_v13 = vor.u32 %v5117_v16, %v5116_v33 }
 0x3bd   : > { %v7513_v22 = vpop.f32.mrf.mxu0  ;;  %v5061_v48 = vld [vmem:[#allocation5 + $0x61] ss:$128 sm:$0x2]  ;;  %v5122_v47 = vor.u32 %v5121_v55, %v5120_v40  ;;  %v5058_v41 = vor.u32 %v5057_v1, %v5056_v62  ;;  %v7941_v29 = vld [vmem:[#allocation7 + $0x184] ss:$8 sps:$4 sm:$0xff]  }
 0x3be   : > { %v5062_v37 = vor.u32 %v5061_v48, %v5060_v19  ;;  %v7944_v16 = vld [vmem:[#allocation7 + $0x84] ss:$8 sps:$4 sm:$0xff]  }
 0x3bf   : > { %v7514_v30 = vpop.f32.mrf.mxu0  ;;  %6031 = vmatpush2.bf16.msra.mxu1 %v7909_v57 }
 0x3c0   : > { %v7515_v6 = vadd.f32 %v7514_v30, %v7513_v22  ;;  %6032 = vmatprep.subr.bf16.mxu1 %v7917_v35  ;;  %v5144_v22 = vmax.f32 %v5139_v56, %v5143_v26  ;;  %v5063_v18 = vmax.f32 %v5058_v41, %v5062_v37  ;;  %v7942_v26 = vld [vmem:[#allocation7 + $0x80] ss:$8 sps:$4 sm:$0xff]   ;;  %v7957_v41 = vld [vmem:[#allocation7 + $0x364] ss:$8 sps:$4 sm:$0xff]  }
 0x3c1   : > { %v7516_v8 = vpop.f32.mrf.mxu0  ;;  %v7952_v37 = vld [vmem:[#allocation7 + $0x260] ss:$8 sps:$4 sm:$0xff]  }
 0x3c2   : > { %v4545_v17 = vadd.f32 %v9721_v53, %v7515_v6  ;;  %v7929_v53 = vld [vmem:[#allocation7 + $0xb4] ss:$8 sps:$4 sm:$0xff]  }
 0x3c3   : > { %v7517_v49 = vpop.f32.mrf.mxu0  ;;  %6033 = vmatpush2.bf16.msra.mxu1 %v7915_v7  ;;  %v7932_v7 = vld [vmem:[#allocation7 + $0x194] ss:$8 sps:$4 sm:$0xff]  }
 0x3c4   : > { %v4588_v0 = vmul.f32 %v9711_v14, %v4545_v17  ;;  %6034 = vmatprep.subr.bf16.mxu1 %v7920_v58  ;;  %v5077_v14 = vld [vmem:[#allocation5 + $0x62] ss:$128 sm:$0x1]  ;;  %6083 = vmatprep.subr.bf16.mxu0 %v7932_v7  ;;  %v7975_v7 = vld [vmem:[#allocation7 + $0x334] ss:$8 sps:$4 sm:$0xff]  }
 0x3c5   : > { %v5079_v36 = vor.u32 %v5078_v52, %v5077_v14  ;;  %v7939_v52 = vld [vmem:[#allocation7 + $0x180] ss:$8 sps:$4 sm:$0xff]  }
 0x3c6   : > { %v4627_v44 = vadd.f32 %v9717_v38, %v4588_v0  ;;  %v5082_v38 = vld [vmem:[#allocation5 + $0x63] ss:$128 sm:$0x2] }
 0x3c7   : > { %6035 = vmatpush2.bf16.msra.mxu1 %v7918_v39  ;;  %v5083_v24 = vor.u32 %v5082_v38, %v5081_v60  ;;  %v7930_v0 = vld [vmem:[#allocation7 + $0x190] ss:$8 sps:$4 sm:$0xff]   ;;  %v5123_v39 = vmax.f32 %v5118_v13, %v5122_v47 }
 0x3c8   : > { %v4659_v3 = vmax.f32 %v4627_v44, 0.0  ;;  %6036 = vmatprep.subr.bf16.mxu1 %v7926_v54  ;;  %v7933_v44 = vld [vmem:[#allocation7 + $0xa0] ss:$8 sps:$4 sm:$0xff]   ;;  %v7935_v54 = vld [vmem:[#allocation7 + $0xa4] ss:$8 sps:$4 sm:$0xff]   ;;  %6084 = vmatpush2.bf16.msra.mxu0 %v7930_v0 }
 0x3c9   : > { %v5084_v57 = vmax.f32 %v5079_v36, %v5083_v24  ;;  %6085 = vmatprep.subr.bf16.mxu0 %v7941_v29  ;;  %v7945_v47 = vld [vmem:[#allocation7 + $0x270] ss:$8 sps:$4 sm:$0xff]   ;;  %v7967_v0 = vld [vmem:[#allocation7 + $0x340] ss:$8 sps:$4 sm:$0xff]   ;;  %v7990_v29 = vld [vmem:[#allocation7 + $0x204] ss:$8 sps:$4 sm:$0xff]  }
 0x3ca   : > { %4692 = vst.msk [vmem:[#allocation5 + $0xf0] sm:$0xff] %vm4661_vm7, %v4659_v3 }
 0x3cb   : > { %6037 = vmatpush2.bf16.msra.mxu1 %v7924_v45  ;;  %v7938_v45 = vld [vmem:[#allocation7 + $0x94] ss:$8 sps:$4 sm:$0xff]  }
 0x3cc   : > { %6038 = vmatprep.subr.bf16.mxu1 %v7929_v53  ;;  %6086 = vmatpush2.bf16.msra.mxu0 %v7939_v52  ;;  %v7988_v52 = vld [vmem:[#allocation7 + $0x200] ss:$8 sps:$4 sm:$0xff]  }
 0x3cf   : > { %6039 = vmatpush2.bf16.msra.mxu1 %v7927_v28 }
 0x3d0   : > { %6040 = vmatprep.subr.bf16.mxu1 %v7935_v54  ;;  %v7976_v54 = vld [vmem:[#allocation7 + $0x220] ss:$8 sps:$4 sm:$0xff]  }
 0x3d1   : > { %v5147_v5 = vld [vmem:[#allocation5 + $0x76] ss:$128 sm:$0x2]  ;;  %v5151_v4 = vld [vmem:[#allocation5 + $0x77] ss:$128 sm:$0x2] }
 0x3d2   : > { %v5148_v21 = vor.u32 %v5147_v5, %v5146_v42  ;;  %v5152_v11 = vor.u32 %v5151_v4, %v5150_v25  ;;  %v5087_v2 = vld [vmem:[#allocation5 + $0x72] ss:$128 sm:$0x2]  ;;  %v5091_v27 = vld [vmem:[#allocation5 + $0x73] ss:$128 sm:$0x2] }
 0x3d3   : > { %v5088_v23 = vor.u32 %v5087_v2, %v5086_v9  ;;  %v5092_v51 = vor.u32 %v5091_v27, %v5090_v10  ;;  %v5126_v20 = vld [vmem:[#allocation5 + $0x74] ss:$128 sm:$0x2]  ;;  %v5130_v31 = vld [vmem:[#allocation5 + $0x75] ss:$128 sm:$0x2]  ;;  %6041 = vmatpush2.bf16.msra.mxu1 %v7933_v44 }
 0x3d4   : > { %v5153_v34 = vmax.f32 %v5148_v21, %v5152_v11  ;;  %v5127_v12 = vor.u32 %v5126_v20, %v5125_v61  ;;  %v5131_v30 = vor.u32 %v5130_v31, %v5129_v46  ;;  %v5066_v6 = vld [vmem:[#allocation5 + $0x70] ss:$128 sm:$0x2]  ;;  %v5070_v8 = vld [vmem:[#allocation5 + $0x71] ss:$128 sm:$0x2]  ;;  %6042 = vmatprep.subr.bf16.mxu1 %v7938_v45 }
 0x3d5   : > { %v5093_v17 = vmax.f32 %v5088_v23, %v5092_v51  ;;  %v5067_v35 = vor.u32 %v5066_v6, %v5065_v15  ;;  %v5071_v49 = vor.u32 %v5070_v8, %v5069_v59  ;;  %v7936_v42 = vld [vmem:[#allocation7 + $0x90] ss:$8 sps:$4 sm:$0xff]   ;;  %v7947_v9 = vld [vmem:[#allocation7 + $0x274] ss:$8 sps:$4 sm:$0xff]   ;;  %v7954_v20 = vld [vmem:[#allocation7 + $0x264] ss:$8 sps:$4 sm:$0xff]  }
 0x3d6   : > { %v5154_v58 = vmax.f32 %v5144_v22, %v5153_v34  ;;  %v5132_v3 = vmax.f32 %v5127_v12, %v5131_v30  ;;  %v7951_v10 = vld [vmem:[#allocation7 + $0x374] ss:$8 sps:$4 sm:$0xff]   ;;  %v7949_v51 = vld [vmem:[#allocation7 + $0x370] ss:$8 sps:$4 sm:$0xff]   ;;  %v7955_v12 = vld [vmem:[#allocation7 + $0x360] ss:$8 sps:$4 sm:$0xff]  }
 0x3d7   : > { %v5094_v53 = vmax.f32 %v5084_v57, %v5093_v17  ;;  %v5072_v32 = vmax.f32 %v5067_v35, %v5071_v49  ;;  %6043 = vmatpush2.bf16.msra.mxu1 %v7936_v42  ;;  %6137 = vmatprep.subr.bf16.mxu0 %v7951_v10  ;;  %v7960_v34 = vld [vmem:[#allocation7 + $0x254] ss:$8 sps:$4 sm:$0xff]   ;;  %v7958_v6 = vld [vmem:[#allocation7 + $0x250] ss:$8 sps:$4 sm:$0xff]   ;;  %v7966_v8 = vld [vmem:[#allocation7 + $0x244] ss:$8 sps:$4 sm:$0xff]  }
 0x3d8   : > { %v5155_v63 = vpack.c.bf16 %v5154_v58, %v5154_v58  ;;  %v5133_v14 = vmax.f32 %v5123_v39, %v5132_v3  ;;  %6044 = vmatprep.subr.bf16.mxu1 %v7944_v16  ;;  %v7963_v30 = vld [vmem:[#allocation7 + $0x354] ss:$8 sps:$4 sm:$0xff]   ;;  %v7961_v57 = vld [vmem:[#allocation7 + $0x350] ss:$8 sps:$4 sm:$0xff]   ;;  %v7969_v17 = vld [vmem:[#allocation7 + $0x344] ss:$8 sps:$4 sm:$0xff]  }
 0x3d9   : > { %v5095_v60 = vpack.c.bf16 %v5094_v53, %v5094_v53  ;;  %v5073_v38 = vmax.f32 %v5063_v18, %v5072_v32  ;;  %v7964_v35 = vld [vmem:[#allocation7 + $0x240] ss:$8 sps:$4 sm:$0xff]   ;;  %v7972_v49 = vld [vmem:[#allocation7 + $0x234] ss:$8 sps:$4 sm:$0xff]   ;;  %v7970_v44 = vld [vmem:[#allocation7 + $0x230] ss:$8 sps:$4 sm:$0xff]  }
 0x3da   : > { %v5163_v25 = vrot.slane %v5155_v63, %v9679_v43  ;;  %v5134_v28 = vpack.c.bf16 %v5133_v14, %v5133_v14  ;;  %v7978_v58 = vld [vmem:[#allocation7 + $0x224] ss:$8 sps:$4 sm:$0xff]   ;;  %v7973_v3 = vld [vmem:[#allocation7 + $0x330] ss:$8 sps:$4 sm:$0xff]   ;;  %v7984_v45 = vld [vmem:[#allocation7 + $0x214] ss:$8 sps:$4 sm:$0xff]  }
 0x3db   : > { %v5103_v55 = vrot.slane %v5095_v60, %v9679_v43  ;;  %v5074_v33 = vpack.c.bf16 %v5073_v38, %v5073_v38  ;;  %6045 = vmatpush2.bf16.msra.mxu1 %v7942_v26  ;;  %v7981_v39 = vld [vmem:[#allocation7 + $0x324] ss:$8 sps:$4 sm:$0xff]   ;;  %v7979_v53 = vld [vmem:[#allocation7 + $0x320] ss:$8 sps:$4 sm:$0xff]   ;;  %v7987_v32 = vld [vmem:[#allocation7 + $0x314] ss:$8 sps:$4 sm:$0xff]  }
 0x3dc   : > { %v5170_v40 = vrot.slane %v5163_v25, %v9679_v43  ;;  %5135 = vst.msk [vmem:[#allocation6 + $0x7] sm:$0x1] %vm4713_vm8, %v5134_v28  ;;  %6096 = vmatprep.subr.bf16.mxu1 %v7947_v9  ;;  %v7982_v18 = vld [vmem:[#allocation7 + $0x210] ss:$8 sps:$4 sm:$0xff]   ;;  %v7993_v14 = vld [vmem:[#allocation7 + $0x304] ss:$8 sps:$4 sm:$0xff]  }
 0x3dd   : > { %v5110_v56 = vrot.slane %v5103_v55, %v9679_v43  ;;  %5075 = vst.msk [vmem:[#allocation6 + $0x6] sm:$0x1] %vm4713_vm8, %v5074_v33  ;;  %v7985_v63 = vld [vmem:[#allocation7 + $0x310] ss:$8 sps:$4 sm:$0xff]   ;;  %v7996_v60 = vld [vmem:[#allocation7 + $0x2f4] ss:$8 sps:$4 sm:$0xff]  }
 0x3de   : > { %5171 = vrot.lane.b32.xlu1 %v5170_v40, %s8160_s25  ;;  %v7991_v38 = vld [vmem:[#allocation7 + $0x300] ss:$8 sps:$4 sm:$0xff]   ;;  %v7999_v42 = vld [vmem:[#allocation7 + $0x3f4] ss:$8 sps:$4 sm:$0xff]   ;;  %v7994_v25 = vld [vmem:[#allocation7 + $0x2f0] ss:$8 sps:$4 sm:$0xff]  }
 0x3df   : > { %5111 = vrot.lane.b32.xlu0 %v5110_v56, %s8160_s25  ;;  %v8002_v28 = vld [vmem:[#allocation7 + $0x2e4] ss:$8 sps:$4 sm:$0xff]   ;;  %v7997_v16 = vld [vmem:[#allocation7 + $0x3f0] ss:$8 sps:$4 sm:$0xff]   ;;  %v8000_v33 = vld [vmem:[#allocation7 + $0x2e0] ss:$8 sps:$4 sm:$0xff]  }
 0x3e0   : > { %v8005_v55 = vld [vmem:[#allocation7 + $0x3e4] ss:$8 sps:$4 sm:$0xff]   ;;  %v8008_v40 = vld [vmem:[#allocation7 + $0x2d4] ss:$8 sps:$4 sm:$0xff]   ;;  %v8003_v56 = vld [vmem:[#allocation7 + $0x3e0] ss:$8 sps:$4 sm:$0xff]  }
 0x3e1   : > { %v8011_v26 = vld [vmem:[#allocation7 + $0x3d4] ss:$8 sps:$4 sm:$0xff]   ;;  %v8006_v9 = vld [vmem:[#allocation7 + $0x2d0] ss:$8 sps:$4 sm:$0xff]   ;;  %v8014_v10 = vld [vmem:[#allocation7 + $0x2c4] ss:$8 sps:$4 sm:$0xff]  }
 0x3e2   : > { %s6372_s25 = sshll.u32 %s397_s29, 4  ;;  %s6373_s25 = int_to_ptr.vmem [resolvable:$true] %s6372_s25 }
 0x3e3   : > { %s8088_s1 = scalar_lea.vmem %s6373_s25, 32  ;;  %p8095_p11 = scmp.lt.s32.totalorder %s6373_s25, %s8093_s13 }
 0x3e4   : > { %p8089_p8 = scmp.ne.s32.totalorder %s6373_s25, %s8088_s1  ;;  %p8096_p12 = scmp.lt.s32.totalorder %s8094_s22, %s8088_s1 }
 0x3e6   : > { %p8090_p9 = pnand %p8089_p8, %p8261_p5  ;;  %p8097_p13 = por %p8096_p12, %p8095_p11 }
 0x3e8   : > { %p8091_p10 = pneg %p8090_p9 }
 0x3ea   : > { %p8098_p0 = pnand %p8097_p13, %p8091_p10 }
 0x3f0   : > { %v4812_v1 = vpop.permute.xlu1 %4811 }
 0x3f1   : > { %4814 = vst.msk [vmem:[#allocation6 + $0x1] sm:$0x1] %vm4753_vm9, %v4812_v1  ;;  %v8009_v1 = vld [vmem:[#allocation7 + $0x3d0] ss:$8 sps:$4 sm:$0xff]  }
 0x3f2   : > { %v4751_v48 = vpop.permute.xlu0 %4750 }
 0x3f3   : > { %4754 = vst.msk [vmem:[#allocation6] sm:$0x1] %vm4753_vm9, %v4751_v48  ;;  %v8017_v48 = vld [vmem:[#allocation7 + $0x3c4] ss:$8 sps:$4 sm:$0xff]  }
 0x401   : > { %v4932_v62 = vpop.permute.xlu1 %4931 }
 0x402   : > { %4934 = vst.msk [vmem:[#allocation6 + $0x3] sm:$0x1] %vm4753_vm9, %v4932_v62  ;;  %v4872_v19 = vpop.permute.xlu0 %4871  ;;  %v8012_v62 = vld [vmem:[#allocation7 + $0x2c0] ss:$8 sps:$4 sm:$0xff]  }
 0x403   : > { %4874 = vst.msk [vmem:[#allocation6 + $0x2] sm:$0x1] %vm4753_vm9, %v4872_v19  ;;  %v8020_v19 = vld [vmem:[#allocation7 + $0x2b4] ss:$8 sps:$4 sm:$0xff]  }
 0x421   : > { %v5052_v5 = vpop.permute.xlu1 %5051 }
 0x422   : > { %5054 = vst.msk [vmem:[#allocation6 + $0x5] sm:$0x1] %vm4753_vm9, %v5052_v5  ;;  %v4992_v4 = vpop.permute.xlu0 %4991  ;;  %v8015_v5 = vld [vmem:[#allocation7 + $0x3c0] ss:$8 sps:$4 sm:$0xff]  }
 0x423   : > { %4994 = vst.msk [vmem:[#allocation6 + $0x4] sm:$0x1] %vm4753_vm9, %v4992_v4  ;;  %v8023_v4 = vld [vmem:[#allocation7 + $0x3b4] ss:$8 sps:$4 sm:$0xff]  }
 0x450   : > { %v5172_v36 = vpop.permute.xlu1 %5171 }
 0x451   : > { %5174 = vst.msk [vmem:[#allocation6 + $0x7] sm:$0x1] %vm4753_vm9, %v5172_v36  ;;  %v5112_v24 = vpop.permute.xlu0 %5111  ;;  %v8018_v36 = vld [vmem:[#allocation7 + $0x2b0] ss:$8 sps:$4 sm:$0xff]  }
 0x452   : > { %5114 = vst.msk [vmem:[#allocation6 + $0x6] sm:$0x1] %vm4753_vm9, %v5112_v24  ;;  %v8026_v24 = vld [vmem:[#allocation7 + $0x2a4] ss:$8 sps:$4 sm:$0xff]  }
 0x459   : > { %v5175_v61 = vld [vmem:[#allocation6] sm:$0xff] }
 0x45a   : > { %v5324_v46 = vrot.slane %v5175_v61, %v9679_v43  ;;  %v5317_v21 = vcombine.high %v5175_v61, %v5175_v61  ;;  %v8021_v61 = vld [vmem:[#allocation7 + $0x3b0] ss:$8 sps:$4 sm:$0xff]  }
 0x45c   : > { %v5332_v11 = vcombine.high %v5324_v46, %v5324_v46  ;;  %v9756_v2 = vrot.slane %v5317_v21, %v9679_v43  ;;  %v5340_v27 = vrot.slane %v5324_v46, %v9679_v43  ;;  %v8029_v46 = vld [vmem:[#allocation7 + $0x3a4] ss:$8 sps:$4 sm:$0xff]   ;;  %v8024_v21 = vld [vmem:[#allocation7 + $0x2a0] ss:$8 sps:$4 sm:$0xff]  }
 0x45e   : > { %v5354_v13 = vrot.slane %v5332_v11, %v9679_v43  ;;  %v5333_v15 = vcombine.high %v9756_v2, %v9756_v2  ;;  %v5362_v31 = vcombine.high %v5340_v27, %v5340_v27  ;;  %v8032_v11 = vld [vmem:[#allocation7 + $0x294] ss:$8 sps:$4 sm:$0xff]  }
 0x460   : > { %6046 = vmatprep.mubr.bf16.mxu1 %v5354_v13  ;;  %v5364_v59 = vcombine.high %v5354_v13, %v5354_v13  ;;  %v5361_v23 = vrot.slane %v5333_v15, %v9679_v43  ;;  %v8035_v13 = vld [vmem:[#allocation7 + $0x394] ss:$8 sps:$4 sm:$0xff]   ;;  %v8038_v15 = vld [vmem:[#allocation7 + $0x284] ss:$8 sps:$4 sm:$0xff]  }
 0x461   : > { %6047 = vmatmul.mubr.bf16.vlgmr.msra.gmra.mxu1 %v5340_v27  ;;  %v8027_v27 = vld [vmem:[#allocation7 + $0x3a0] ss:$8 sps:$4 sm:$0xff]  }
 0x462   : > { %6097 = vmatpush1.bf16.msra.mxu1 %v7945_v47  ;;  %6087 = vmatprep.mubr.bf16.mxu0 %v5364_v59  ;;  %v5365_v22 = vcombine.high %v5361_v23, %v5361_v23  ;;  %v8030_v47 = vld [vmem:[#allocation7 + $0x290] ss:$8 sps:$4 sm:$0xff]  }
 0x463   : > { %6128 = vmatprep.mubr.bf16.mxu1 %v5361_v23  ;;  %6088 = vmatmul.mubr.bf16.vlgmr.msra.gmra.mxu0 %v5362_v31  ;;  %v8033_v59 = vld [vmem:[#allocation7 + $0x390] ss:$8 sps:$4 sm:$0xff]   ;;  %v8041_v23 = vld [vmem:[#allocation7 + $0x384] ss:$8 sps:$4 sm:$0xff]   ;;  %v5347_v31 = vrot.slane %v9756_v2, %v9679_v43 }
 0x464   : > { %6138 = vmatpush1.bf16.msra.mxu0 %v7949_v51  ;;  %6098 = vmatprep.subr.bf16.mxu1 %v7954_v20  ;;  %v8036_v51 = vld [vmem:[#allocation7 + $0x280] ss:$8 sps:$4 sm:$0xff]  }
 0x465   : > { %6169 = vmatprep.mubr.bf16.mxu0 %v5365_v22  ;;  %6139 = vmatprep.subr.bf16.mxu0 %v7957_v41  ;;  %v8039_v20 = vld [vmem:[#allocation7 + $0x380] ss:$8 sps:$4 sm:$0xff]   ;;  %v5363_v41 = vcombine.high %v5347_v31, %v5347_v31  ;;  %v8043_v22 = vld [vmem:[%s9870_s9 + $0x38] sm:$0xff]  }
 0x466   : > { %6099 = vmatpush1.bf16.msra.mxu1 %v7952_v37  ;;  %v8042_v37 = vld [vmem:[%s9870_s9 + $0x78] sm:$0xff]   ;;  %v8045_v43 = vld [vmem:[%s9870_s9 + $0x30] sm:$0xff]   ;;  %v8046_v2 = vld [vmem:[%s9870_s9 + $0x68] sm:$0xff]  }
 0x467   : > { %6100 = vmatprep.subr.bf16.mxu1 %v7960_v34  ;;  %v8044_v34 = vld [vmem:[%s9870_s9 + $0x70] sm:$0xff]  }
 0x468   : > { %6140 = vmatpush1.bf16.msra.mxu0 %v7955_v12  ;;  %v8047_v12 = vld [vmem:[%s9870_s9 + $0x28] sm:$0xff]  }
 0x469   : > { %6141 = vmatprep.subr.bf16.mxu0 %v7963_v30  ;;  %v8048_v30 = vld [vmem:[%s9870_s9 + $0x60] sm:$0xff]  }
 0x46a   : > { %6101 = vmatpush1.bf16.msra.mxu1 %v7958_v6  ;;  %v8049_v6 = vld [vmem:[%s9870_s9 + $0x20] sm:$0xff]  }
 0x46b   : > { %6102 = vmatprep.subr.bf16.mxu1 %v7966_v8  ;;  %v8050_v8 = vld [vmem:[%s9870_s9 + $0x58] sm:$0xff]  }
 0x46c   : > { %6142 = vmatpush1.bf16.msra.mxu0 %v7961_v57  ;;  %v8051_v57 = vld [vmem:[%s9870_s9 + $0x18] sm:$0xff]  }
 0x46d   : > { %6143 = vmatprep.subr.bf16.mxu0 %v7969_v17  ;;  %v8052_v17 = vld [vmem:[%s9870_s9 + $0x50] sm:$0xff]  }
 0x46e   : > { %6103 = vmatpush1.bf16.msra.mxu1 %v7964_v35  ;;  %v8053_v35 = vld [vmem:[%s9870_s9 + $0x10] sm:$0xff]  }
 0x46f   : > { %6104 = vmatprep.subr.bf16.mxu1 %v7972_v49  ;;  %v8054_v49 = vld [vmem:[%s9870_s9 + $0x48] sm:$0xff]  }
 0x470   : > { %6144 = vmatpush1.bf16.msra.mxu0 %v7967_v0  ;;  %v8055_v0 = vld [vmem:[%s9870_s9 + $0x8] sm:$0xff]  }
 0x471   : > { %6145 = vmatprep.subr.bf16.mxu0 %v7975_v7  ;;  %v8056_v7 = vld [vmem:[%s9870_s9 + $0x40] sm:$0xff]  }
 0x472   : > { %6105 = vmatpush1.bf16.msra.mxu1 %v7970_v44  ;;  %v8057_v44 = vld [vmem:[%s9870_s9] sm:$0xff]  }
 0x473   : > { %6106 = vmatprep.subr.bf16.mxu1 %v7978_v58 }
 0x474   : > { %6146 = vmatpush1.bf16.msra.mxu0 %v7973_v3 }
 0x475   : > { %6147 = vmatprep.subr.bf16.mxu0 %v7981_v39 }
 0x476   : > { %6107 = vmatpush1.bf16.msra.mxu1 %v7976_v54 }
 0x477   : > { %6108 = vmatprep.subr.bf16.mxu1 %v7984_v45 }
 0x478   : > { %6148 = vmatpush1.bf16.msra.mxu0 %v7979_v53 }
 0x479   : > { %6149 = vmatprep.subr.bf16.mxu0 %v7987_v32 }
 0x47a   : > { %6109 = vmatpush1.bf16.msra.mxu1 %v7982_v18 }
 0x47b   : > { %6110 = vmatprep.subr.bf16.mxu1 %v7990_v29  ;;  %v5308_v29 = vsub.s32 0, %v9669_v50 }
 0x47c   : > { %6150 = vmatpush1.bf16.msra.mxu0 %v7985_v63  ;;  %v5304_v63 = vld [vmem:[%s9869_s8] sm:$0x3] }
 0x47d   : > { %6151 = vmatprep.subr.bf16.mxu0 %v7993_v14  ;;  %v5312_v14 = vsub.s32 1, %v9669_v50 }
 0x47e   : > { %6111 = vmatpush1.bf16.msra.mxu1 %v7988_v52  ;;  %v5309_v52 = vrot.slane %v5304_v63, %v5308_v29 }
 0x47f   : > { %6112 = vmatprep.subr.bf16.mxu1 %v7996_v60  ;;  %v5313_v60 = vrot.slane %v5304_v63, %v5312_v14 }
 0x480   : > { %6152 = vmatpush1.bf16.msra.mxu0 %v7991_v38 }
 0x481   : > { %6153 = vmatprep.subr.bf16.mxu0 %v7999_v42 }
 0x482   : > { %6113 = vmatpush2.bf16.msra.mxu1 %v7994_v25 }
 0x483   : > { %6114 = vmatprep.subr.bf16.mxu1 %v8002_v28 }
 0x484   : > { %6154 = vmatpush2.bf16.msra.mxu0 %v7997_v16 }
 0x485   : > { %6155 = vmatprep.subr.bf16.mxu0 %v8005_v55 }
 0x486   : > { %6115 = vmatpush2.bf16.msra.mxu1 %v8000_v33 }
 0x487   : > { %6116 = vmatprep.subr.bf16.mxu1 %v8008_v40 }
 0x488   : > { %6156 = vmatpush2.bf16.msra.mxu0 %v8003_v56 }
 0x489   : > { %6157 = vmatprep.subr.bf16.mxu0 %v8011_v26 }
 0x48a   : > { %6117 = vmatpush2.bf16.msra.mxu1 %v8006_v9 }
 0x48b   : > { %6118 = vmatprep.subr.bf16.mxu1 %v8014_v10 }
 0x48c   : > { %6158 = vmatpush2.bf16.msra.mxu0 %v8009_v1 }
 0x48d   : > { %6159 = vmatprep.subr.bf16.mxu0 %v8017_v48 }
 0x48e   : > { %6119 = vmatpush2.bf16.msra.mxu1 %v8012_v62 }
 0x48f   : > { %6120 = vmatprep.subr.bf16.mxu1 %v8020_v19 }
 0x490   : > { %6160 = vmatpush2.bf16.msra.mxu0 %v8015_v5 }
 0x491   : > { %6161 = vmatprep.subr.bf16.mxu0 %v8023_v4 }
 0x492   : > { %6121 = vmatpush2.bf16.msra.mxu1 %v8018_v36 }
 0x493   : > { %6122 = vmatprep.subr.bf16.mxu1 %v8026_v24 }
 0x494   : > { %6162 = vmatpush2.bf16.msra.mxu0 %v8021_v61  ;;  %v7059_v61 = vld [vmem:[%s9871_s10] ss:$0 sm:$0xff] }
 0x495   : > { %6163 = vmatprep.subr.bf16.mxu0 %v8029_v46 }
 0x496   : > { %6123 = vmatpush2.bf16.msra.mxu1 %v8024_v21 }
 0x497   : > { %6124 = vmatprep.subr.bf16.mxu1 %v8032_v11 }
 0x498   : > { %6164 = vmatpush2.bf16.msra.mxu0 %v8027_v27 }
 0x499   : > { %6165 = vmatprep.subr.bf16.mxu0 %v8035_v13 }
 0x49a   : > { %6125 = vmatpush2.bf16.msra.mxu1 %v8030_v47 }
 0x49b   : > { %6126 = vmatprep.subr.bf16.mxu1 %v8038_v15 }
 0x49c   : > { %6166 = vmatpush2.bf16.msra.mxu0 %v8033_v59 }
 0x49d   : > { %6167 = vmatprep.subr.bf16.mxu0 %v8041_v23 }
 0x49e   : > { %6127 = vmatpush2.bf16.msra.mxu1 %v8036_v51 }
 0x49f   : > { %7537 = vmatprep.subr.bf16.mxu1 %v8042_v37 }
 0x4a0   : > { %6168 = vmatpush2.bf16.msra.mxu0 %v8039_v20 }
 0x4a1   : > { %6129 = vmatmul.mubr.bf16.vlgmr.msra.gmra.mxu1 %v5347_v31 }
 0x4a2   : > { %7538 = vmatpush3.bf16.msra.mxu1 %v8043_v22 }
 0x4a3   : > { %6170 = vmatmul.mubr.bf16.vlgmr.msra.gmra.mxu0 %v5363_v41  ;;  %7539 = vmatprep.subr.bf16.mxu1 %v8044_v34 }
 0x4a6   : > { %7540 = vmatpush3.bf16.msra.mxu1 %v8045_v43 }
 0x4a7   : > { %7541 = vmatprep.subr.bf16.mxu1 %v8046_v2 }
 0x4aa   : > { %7542 = vmatpush3.bf16.msra.mxu1 %v8047_v12 }
 0x4ab   : > { %7543 = vmatprep.subr.bf16.mxu1 %v8048_v30 }
 0x4ae   : > { %7544 = vmatpush3.bf16.msra.mxu1 %v8049_v6 }
 0x4af   : > { %7545 = vmatprep.subr.bf16.mxu1 %v8050_v8 }
 0x4b2   : > { %7546 = vmatpush3.bf16.msra.mxu1 %v8051_v57 }
 0x4b3   : > { %7547 = vmatprep.subr.bf16.mxu1 %v8052_v17 }
 0x4b6   : > { %7548 = vmatpush3.bf16.msra.mxu1 %v8053_v35 }
 0x4b7   : > { %7549 = vmatprep.subr.bf16.mxu1 %v8054_v49 }
 0x4ba   : > { %7550 = vmatpush3.bf16.msra.mxu1 %v8055_v0 }
 0x4bb   : > { %7551 = vmatprep.subr.bf16.mxu1 %v8056_v7 }
 0x4be   : > { %7552 = vmatpush3.bf16.msra.mxu1 %v8057_v44 }
 0x521   : > { %v6048_v58 = vpop.f32.mrf.mxu1 }
 0x522   : > { %v6049_v38 = vadd.f32 %v6048_v58, %v5309_v52 }
 0x523   : > { %v6050_v3 = vpop.f32.mrf.mxu1  ;;  %v6089_v39 = vpop.f32.mrf.mxu0 }
 0x524   : > { %v6051_v42 = vadd.f32 %v6050_v3, %v5313_v60  ;;  %v6090_v25 = vadd.f32 %v6089_v39, %v6049_v38 }
 0x525   : > { %v6052_v54 = vpop.f32.mrf.mxu1  ;;  %v6091_v45 = vpop.f32.mrf.mxu0 }
 0x526   : > { %v6092_v16 = vadd.f32 %v6091_v45, %v6051_v42 }
 0x527   : > { %v6053_v53 = vpop.f32.mrf.mxu1  ;;  %v6093_v32 = vpop.f32.mrf.mxu0 }
 0x529   : > { %v6094_v18 = vpop.f32.mrf.mxu0 }
 0x561   : > { %v6130_v28 = vpop.f32.mrf.mxu1 }
 0x562   : > { %v6131_v55 = vadd.f32 %v6130_v28, %v6090_v25 }
 0x563   : > { %v6132_v33 = vpop.f32.mrf.mxu1  ;;  %v6171_v40 = vpop.f32.mrf.mxu0 }
 0x564   : > { %v6133_v56 = vadd.f32 %v6132_v33, %v6092_v16  ;;  %v6172_v26 = vadd.f32 %v6171_v40, %v6131_v55 }
 0x565   : > { %v6134_v9 = vpop.f32.mrf.mxu1  ;;  %v6173_v10 = vpop.f32.mrf.mxu0 }
 0x566   : > { %v6174_v1 = vadd.f32 %v6173_v10, %v6133_v56  ;;  %v6178_v48 = vmax.f32 %v6172_v26, 0.0 }
 0x567   : > { %v6135_v62 = vpop.f32.mrf.mxu1  ;;  %v6175_v50 = vpop.f32.mrf.mxu0 }
 0x568   : > { %v6179_v19 = vmax.f32 %v6174_v1, 0.0  ;;  %v6180_v36 = vpack.c.bf16 %v6178_v48, %v6178_v48 }
 0x569   : > { %v6176_v5 = vpop.f32.mrf.mxu0 }
 0x56a   : > { %v6181_v4 = vpack.c.bf16 %v6179_v19, %v6179_v19 }
 0x56c   : > { %6349 = vmatprep.mubr.bf16.mxu1 %v6181_v4 }
 0x56d   : > { %6350 = vmatmul.mubr.bf16.vlgmr.msra.gmra.mxu1 %v6180_v36 }
 0x62d   : > { %v7553_v24 = vpop.f32.mrf.mxu1 }
 0x62f   : > { %v7554_v46 = vpop.f32.mrf.mxu1 }
 0x630   : > { %v7555_v21 = vadd.f32 %v7554_v46, %v7553_v24 }
 0x631   : > { %v7556_v11 = vpop.f32.mrf.mxu1 }
 0x632   : > { %v6352_v27 = vadd.f32 %v7555_v21, %v7059_v61 }
 0x633   : > { %v7557_v13 = vpop.f32.mrf.mxu1 }
 0x634   : > { %6357 = vst [vmem:[%s397_s29] sm:$0x3] %v6352_v27 }
 0x635   : > { %8101 = shalt.err (!%p8098_p0)
}
 0x636   : > { %s8102_s14 = scalar_lea.hbm %s9826_s24, 32  ;;  %s8106_s29 = scalar_lea.hbm %s9872_s11, 64 }
 0x637   : > { %p8103_p1 = scmp.ne.s32.totalorder %s9826_s24, %s8102_s14  ;;  %p8107_p4 = scmp.lt.s32.totalorder %s9826_s24, %s9872_s11 }
 0x638   : > { %p8108_p7 = scmp.lt.s32.totalorder %s8106_s29, %s8102_s14 }
 0x639   : > { %p8104_p2 = pnand %p8103_p1, %p8261_p5 }
 0x63a   : > { %p8109_p6 = por %p8108_p7, %p8107_p4 }
 0x63b   : > { %p8105_p3 = pneg %p8104_p2 }
 0x63d   : > { %p8110_p8 = pnand %p8109_p6, %p8105_p3 }
 0x63f   : > { %8113 = shalt.err (!%p8110_p8)
}
 0x640   : > { %7684 = dma.vmem_to_hbm [thread:$0]  (%p8261_p5), %s6373_s25, 32, %s9826_s24, %s6359_s0  }
 0x641 PF: > { %p7696_p9 = scmp.ge.s32.totalorder %s8152_s20, 2  ;;  %s6384_s1 = sand.u32 1, %s8140_s17  }
 0x642   : > { %p9881_p10 = scmp.ne.s32.totalorder %s9876_s28, 0  ;;  %s6385_s21 = scalar_lea.sflag [#allocation9], %s6384_s1 }
 0x644   : > { %p7691_p11 = pnand %p7696_p9, %p9881_p10 }
 0x646   : > { %p7692_p12 = pneg %p7691_p11 }
 0x648   : > { %8135 = dma.done.wait (%p7692_p12), %s6385_s21, 32  }
 0x649   : > { %8137 = vsyncadd (%p7692_p12), %s6385_s21, 4294967264  ;;  %p22_p13 = scmp.ge.s32.totalorder %s8248_s23, 4   ;;  %s9882_s17 = smov %s8144_s18 }
 0x64a   : > { %s9883_s18 = smov %s8148_s19  ;;  %s9884_s19 = smov %s8259_s26 }
 0x64b   : > { %s9885_s20 = smov %s8248_s23  ;;  %24 = sbr.rel (!%p22_p13) target bundleno = 7 (0x7), region = 231 }
 0x650   :  { %6390 = vsyncpa [#allocation8], 1 }
 0x651   :  { %6392 = vsyncpa [#allocation8 + $0x1], 1 }
 0x652   :  { %6393 = vsyncpa [#allocation9], 1 }
 0x653   :  { %6395 = vsyncpa [#allocation9 + $0x1], 1 }

</bundles_post_ra>
